<compile_context>
chip_gen: v5e
topology: v5e:2x2
jax: 0.10.0
libtpu: 0.0.40
codegen_flags: <defaults>
</compile_context>

<pallas_src>
import jax
import jax.numpy as jnp
import numpy as np
from jax import lax
from jax.experimental import pallas as pl
from jax.experimental.pallas import tpu as pltpu

EPS = 1e-5  # nn.BatchNorm2d default


def _conv3x3_fused_matmul(x, w):
    """3x3 'same' convolution of one image as a single fused MXU matmul.

    x: (H+2, W+2, Cin) spatially zero-padded activations
    w: (9*Cin, Cout)   weights with rows ordered (dy, dx, cin)  [HWIO reshape]
    returns (H*W, Cout) float32
    """
    Hp, Wp, Cin = x.shape
    H, W = Hp - 2, Wp - 2
    # 9 shifted views concatenated along the contraction axis -> one K=9*Cin
    # matmul instead of 9 K=Cin matmuls (no per-tap VALU accumulation adds).
    taps = [x[dy:dy + H, dx:dx + W, :].reshape(H * W, Cin)
            for dy in range(3) for dx in range(3)]
    patches = jnp.concatenate(taps, axis=-1)                    # (H*W, 9*Cin)
    return jnp.dot(patches, w, preferred_element_type=jnp.float32)


def conv_stats_kernel(xpad_ref, w_ref, y_ref, sum_ref, sq_ref):
    """conv1 + per-tile BN1 partial statistics (one batch element per step)."""
    # xpad_ref: (1, H+2, W+2, Cin); w_ref: (9*Cin, Cout)
    # y_ref: (1, H*W, Cout); sum_ref / sq_ref: (1, 1, Cout)
    acc = _conv3x3_fused_matmul(xpad_ref[0], w_ref[...])        # (H*W, Cout) f32
    y_ref[0] = acc.astype(y_ref.dtype)
    # BN batch stats folded into the same pass (sum & sum-of-squares).
    sum_ref[0] = jnp.sum(acc, axis=0, keepdims=True)
    sq_ref[0] = jnp.sum(acc * acc, axis=0, keepdims=True)


def bn_relu_conv_stats_kernel(ypad_ref, scale_ref, shift_ref, w_ref,
                              y_ref, sum_ref, sq_ref):
    """Fused bn1-apply + relu + conv2 + per-tile BN2 partial statistics."""
    # ypad_ref: (1, H+2, W+2, C) raw conv1 output, zero-padded by the wrapper.
    _, Hp, Wp, C = ypad_ref.shape
    H, W = Hp - 2, Wp - 2
    y = ypad_ref[0]                                             # (Hp, Wp, C)
    # bn1 apply (scale/shift precomputed from global batch stats) + relu.
    act = jnp.maximum(y * scale_ref[...] + shift_ref[...], 0.0)
    # Re-zero the 1-pixel halo: conv2's padding must be zero *after* bn1+relu.
    row = lax.broadcasted_iota(jnp.int32, (Hp, Wp, 1), 0)
    col = lax.broadcasted_iota(jnp.int32, (Hp, Wp, 1), 1)
    interior = (row >= 1) & (row <= H) & (col >= 1) & (col <= W)
    act = jnp.where(interior, act, 0.0)

    acc = _conv3x3_fused_matmul(act, w_ref[...])                # (H*W, C) f32
    y_ref[0] = acc.astype(y_ref.dtype)
    sum_ref[0] = jnp.sum(acc, axis=0, keepdims=True)
    sq_ref[0] = jnp.sum(acc * acc, axis=0, keepdims=True)


def bn_add_relu_kernel(y_ref, res_ref, scale_ref, shift_ref, out_ref):
    """bn2-apply + residual add + relu in lane-dense (C, N*H*W) layout."""
    # y_ref/res_ref/out_ref: (C, TM) with TM a multiple of 128; scale/shift: (C, 1)
    out_ref[...] = jnp.maximum(
        y_ref[...] * scale_ref[...] + shift_ref[...] + res_ref[...], 0.0
    ).astype(out_ref.dtype)


def _finalize_bn(sum_part, sq_part, gamma, beta, count):
    """Per-channel mean/var from per-tile partials -> BN affine scale/shift."""
    c = sum_part.shape[-1]
    mean = jnp.sum(sum_part, axis=0).reshape(1, c) / count
    ex2 = jnp.sum(sq_part, axis=0).reshape(1, c) / count
    var = ex2 - mean * mean                       # biased batch variance
    scale = gamma.reshape(1, c) * lax.rsqrt(var + EPS)
    shift = beta.reshape(1, c) - mean * scale
    return scale, shift


def residual_block(x_nchw, w1, w2, g1, b1, g2, b2):
    """x_nchw: (N, C, H, W); conv weights in HWIO (3, 3, Cin, Cout).
    Returns (N, C, H, W).  (downsample=None -> Cin == Cout, stride == 1.)"""
    N, C, H, W = x_nchw.shape
    Cout = w1.shape[-1]
    assert C == Cout, "ResidualBlock with downsample=None requires Cin == Cout"
    Hp, Wp = H + 2, W + 2
    M = N * H * W
    count = jnp.float32(M)

    cp = pltpu.CompilerParams(
        dimension_semantics=("parallel",),        # batch tiles -> megacore / 2 TCs
        vmem_limit_bytes=64 * 1024 * 1024,        # headroom above v5e's 16 MiB default
    )

    # Layout prep (XLA glue): NCHW -> NHWC + 1-pixel zero pad; HWIO -> (9*Cin, Cout).
    x_nhwc = jnp.transpose(x_nchw, (0, 2, 3, 1))
    xpad = jnp.pad(x_nhwc, ((0, 0), (1, 1), (1, 1), (0, 0)))
    w1m = w1.reshape(9 * C, Cout)                 # rows ordered (dy, dx, cin)
    w2m = w2.reshape(9 * Cout, Cout)

    conv_out_shapes = (
        jax.ShapeDtypeStruct((N, H * W, Cout), jnp.float32),
        jax.ShapeDtypeStruct((N, 1, Cout), jnp.float32),
        jax.ShapeDtypeStruct((N, 1, Cout), jnp.float32),
    )
    conv_out_specs = (
        pl.BlockSpec((1, H * W, Cout), lambda n: (n, 0, 0)),
        pl.BlockSpec((1, 1, Cout), lambda n: (n, 0, 0)),
        pl.BlockSpec((1, 1, Cout), lambda n: (n, 0, 0)),
    )

    # ---- pass 1: conv1 + partial bn1 stats (grid over batch, parallel) ----
    y1_raw, s1, sq1 = pl.pallas_call(
        conv_stats_kernel,
        grid=(N,),
        in_specs=[
            pl.BlockSpec((1, Hp, Wp, C), lambda n: (n, 0, 0, 0)),
            pl.BlockSpec((9 * C, Cout), lambda n: (0, 0)),
        ],
        out_specs=conv_out_specs,
        out_shape=conv_out_shapes,
        compiler_params=cp,
    )(xpad, w1m)

    scale1, shift1 = _finalize_bn(s1, sq1, g1, b1, count)       # (1, Cout) each

    # ---- pass 2: bn1-apply + relu fused with conv2 + partial bn2 stats ----
    # TODO(synk): for bf16 models keep this intermediate in bf16 (f32 only in the
    # matmul accumulator) to halve the inter-conv HBM/VMEM traffic.
    y1_pad = jnp.pad(y1_raw.reshape(N, H, W, Cout),
                     ((0, 0), (1, 1), (1, 1), (0, 0)))

    y2_raw, s2, sq2 = pl.pallas_call(
        bn_relu_conv_stats_kernel,
        grid=(N,),
        in_specs=[
            pl.BlockSpec((1, Hp, Wp, Cout), lambda n: (n, 0, 0, 0)),
            pl.BlockSpec((1, Cout), lambda n: (0, 0)),
            pl.BlockSpec((1, Cout), lambda n: (0, 0)),
            pl.BlockSpec((9 * Cout, Cout), lambda n: (0, 0)),
        ],
        out_specs=conv_out_specs,
        out_shape=conv_out_shapes,
        compiler_params=cp,
    )(y1_pad, scale1, shift1, w2m)

    scale2, shift2 = _finalize_bn(s2, sq2, g2, b2, count)       # (1, Cout)

    # ---- pass 3: bn2-apply + residual add + relu, lane-dense (C, M) layout ----
    y2_cm = jnp.transpose(y2_raw.reshape(M, Cout))              # (Cout, M)
    res_cm = jnp.transpose(x_nchw, (1, 0, 2, 3)).reshape(C, M)  # (C, M)
    tm = 256 if M % 256 == 0 else M                             # lane-dense tiles

    out_cm = pl.pallas_call(
        bn_add_relu_kernel,
        grid=(M // tm,),
        in_specs=[
            pl.BlockSpec((Cout, tm), lambda i: (0, i)),
            pl.BlockSpec((Cout, tm), lambda i: (0, i)),
            pl.BlockSpec((Cout, 1), lambda i: (0, 0)),
            pl.BlockSpec((Cout, 1), lambda i: (0, 0)),
        ],
        out_specs=pl.BlockSpec((Cout, tm), lambda i: (0, i)),
        out_shape=jax.ShapeDtypeStruct((Cout, M), x_nchw.dtype),
        compiler_params=cp,
    )(y2_cm, res_cm, scale2.reshape(Cout, 1), shift2.reshape(Cout, 1))

    return jnp.transpose(out_cm.reshape(Cout, N, H, W), (1, 0, 2, 3))


def reference(x_nchw, w1, w2, g1, b1, g2, b2):
    """Pure-JAX reference (NHWC lax conv + training-mode BN)."""
    x = jnp.transpose(x_nchw, (0, 2, 3, 1)).astype(jnp.float32)

    def conv(inp, w):
        return lax.conv_general_dilated(inp, w, (1, 1), ((1, 1), (1, 1)),
                                        dimension_numbers=('NHWC', 'HWIO', 'NHWC'))

    def bn(y, g, b):
        m = jnp.mean(y, axis=(0, 1, 2), keepdims=True)
        v = jnp.mean((y - m) ** 2, axis=(0, 1, 2), keepdims=True)
        return (y - m) * lax.rsqrt(v + EPS) * g.reshape(1, 1, 1, -1) + b.reshape(1, 1, 1, -1)

    y = jax.nn.relu(bn(conv(x, w1), g1, b1))
    y = bn(conv(y, w2), g2, b2)
    y = jax.nn.relu(y + x)
    return jnp.transpose(y, (0, 3, 1, 2)).astype(x_nchw.dtype)


if __name__ == "__main__":
    N, C, H, W = 2, 4, 16, 16   # in_channels = out_channels = 4, stride = 1
    key = jax.random.PRNGKey(0)
    kx, k1, k2, kg1, kb1, kg2, kb2 = jax.random.split(key, 7)

    x = jax.random.normal(kx, (N, C, H, W), jnp.float32)
    # conv weights in HWIO layout (3, 3, Cin, Cout)
    w1 = jax.random.normal(k1, (3, 3, C, C), jnp.float32) * 0.2
    w2 = jax.random.normal(k2, (3, 3, C, C), jnp.float32) * 0.2
    # BatchNorm affine params (gamma around 1, beta around 0)
    g1 = 1.0 + 0.1 * jax.random.normal(kg1, (1, C), jnp.float32)
    b1 = 0.1 * jax.random.normal(kb1, (1, C), jnp.float32)
    g2 = 1.0 + 0.1 * jax.random.normal(kg2, (1, C), jnp.float32)
    b2 = 0.1 * jax.random.normal(kb2, (1, C), jnp.float32)

    run = jax.jit(residual_block)
    out = jax.block_until_ready(run(x, w1, w2, g1, b1, g2, b2))
    ref = jax.block_until_ready(reference(x, w1, w2, g1, b1, g2, b2))

    assert out.shape == (N, C, H, W)
    np.testing.assert_allclose(np.asarray(out), np.asarray(ref), rtol=1e-4, atol=1e-4)
    print("KERNEL_OK")
</pallas_src>

<mosaic_0001>
module attributes {stable_mosaic.version = 11 : i64} {
  func.func @conv_stats_kernel(%arg0: i32, %arg1: memref<1x18x18x4xf32, #tpu.memory_space<vmem>>, %arg2: memref<36x4xf32, #tpu.memory_space<vmem>>, %arg3: memref<1x256x4xf32, #tpu.memory_space<vmem>>, %arg4: memref<1x1x4xf32, #tpu.memory_space<vmem>>, %arg5: memref<1x1x4xf32, #tpu.memory_space<vmem>>) attributes {dimension_semantics = [#tpu.dimension_semantics<parallel>], iteration_bounds = array<i64: 2>, scalar_prefetch = 0 : i64, scratch_operands = 0 : i64, tpu.core_type = #tpu.core_type<tc>, window_params = [{transform_indices = @transform_0, window_bounds = array<i64: 1, 18, 18, 4>}, {pipeline_mode = #tpu.pipeline_mode<synchronous>, transform_indices = @transform_1, window_bounds = array<i64: 36, 4>}, {transform_indices = @transform_2, window_bounds = array<i64: 1, 256, 4>}, {transform_indices = @transform_3, window_bounds = array<i64: 1, 1, 4>}, {transform_indices = @transform_4, window_bounds = array<i64: 1, 1, 4>}]} {
    %c0 = arith.constant 0 : index
    %c0_0 = arith.constant 0 : index
    %c0_1 = arith.constant 0 : index
    %c0_2 = arith.constant 0 : index
    %0 = vector.load %arg1[%c0, %c0_0, %c0_1, %c0_2] : memref<1x18x18x4xf32, #tpu.memory_space<vmem>>, vector<1x18x18x4xf32>
    %1 = vector.shape_cast %0 : vector<1x18x18x4xf32> to vector<18x18x4xf32>
    %c0_3 = arith.constant 0 : index
    %c0_4 = arith.constant 0 : index
    %2 = vector.load %arg2[%c0_3, %c0_4] : memref<36x4xf32, #tpu.memory_space<vmem>>, vector<36x4xf32>
    %3 = vector.extract_strided_slice %1 {offsets = [0, 0, 0], sizes = [16, 16, 4], strides = [1, 1, 1]} : vector<18x18x4xf32> to vector<16x16x4xf32>
    %4 = vector.shape_cast %3 : vector<16x16x4xf32> to vector<256x4xf32>
    %5 = vector.extract_strided_slice %1 {offsets = [0, 1, 0], sizes = [16, 16, 4], strides = [1, 1, 1]} : vector<18x18x4xf32> to vector<16x16x4xf32>
    %6 = vector.shape_cast %5 : vector<16x16x4xf32> to vector<256x4xf32>
    %7 = vector.extract_strided_slice %1 {offsets = [0, 2, 0], sizes = [16, 16, 4], strides = [1, 1, 1]} : vector<18x18x4xf32> to vector<16x16x4xf32>
    %8 = vector.shape_cast %7 : vector<16x16x4xf32> to vector<256x4xf32>
    %9 = vector.extract_strided_slice %1 {offsets = [1, 0, 0], sizes = [16, 16, 4], strides = [1, 1, 1]} : vector<18x18x4xf32> to vector<16x16x4xf32>
    %10 = vector.shape_cast %9 : vector<16x16x4xf32> to vector<256x4xf32>
    %11 = vector.extract_strided_slice %1 {offsets = [1, 1, 0], sizes = [16, 16, 4], strides = [1, 1, 1]} : vector<18x18x4xf32> to vector<16x16x4xf32>
    %12 = vector.shape_cast %11 : vector<16x16x4xf32> to vector<256x4xf32>
    %13 = vector.extract_strided_slice %1 {offsets = [1, 2, 0], sizes = [16, 16, 4], strides = [1, 1, 1]} : vector<18x18x4xf32> to vector<16x16x4xf32>
    %14 = vector.shape_cast %13 : vector<16x16x4xf32> to vector<256x4xf32>
    %15 = vector.extract_strided_slice %1 {offsets = [2, 0, 0], sizes = [16, 16, 4], strides = [1, 1, 1]} : vector<18x18x4xf32> to vector<16x16x4xf32>
    %16 = vector.shape_cast %15 : vector<16x16x4xf32> to vector<256x4xf32>
    %17 = vector.extract_strided_slice %1 {offsets = [2, 1, 0], sizes = [16, 16, 4], strides = [1, 1, 1]} : vector<18x18x4xf32> to vector<16x16x4xf32>
    %18 = vector.shape_cast %17 : vector<16x16x4xf32> to vector<256x4xf32>
    %19 = vector.extract_strided_slice %1 {offsets = [2, 2, 0], sizes = [16, 16, 4], strides = [1, 1, 1]} : vector<18x18x4xf32> to vector<16x16x4xf32>
    %20 = vector.shape_cast %19 : vector<16x16x4xf32> to vector<256x4xf32>
    %21 = tpu.concatenate %4, %6, %8, %10, %12, %14, %16, %18, %20 in 1 : vector<256x4xf32>, vector<256x4xf32>, vector<256x4xf32>, vector<256x4xf32>, vector<256x4xf32>, vector<256x4xf32>, vector<256x4xf32>, vector<256x4xf32>, vector<256x4xf32> -> vector<256x36xf32>
    %cst = arith.constant dense<0.000000e+00> : vector<256x4xf32>
    %22 = tpu.matmul %21, %2, %cst {dimension_numbers = #tpu.dot_dimension_numbers<[1], [0], [0], [1], [0, 0, 1, 1], [], []>} : vector<256x36xf32>, vector<36x4xf32>, vector<256x4xf32> -> vector<256x4xf32>
    %c0_5 = arith.constant 0 : index
    %c0_6 = arith.constant 0 : index
    %c0_7 = arith.constant 0 : index
    %23 = vector.load %arg3[%c0_5, %c0_6, %c0_7] : memref<1x256x4xf32, #tpu.memory_space<vmem>>, vector<1x256x4xf32>
    %24 = vector.shape_cast %23 : vector<1x256x4xf32> to vector<256x4xf32>
    %25 = vector.shape_cast %22 : vector<256x4xf32> to vector<1x256x4xf32>
    tpu.vector_store %arg3[%c0_5, %c0_6, %c0_7], %25 {strides = array<i32>} : memref<1x256x4xf32, #tpu.memory_space<vmem>>, vector<1x256x4xf32>,
    %cst_8 = arith.constant dense<0.000000e+00> : vector<4xf32>
    %26 = vector.multi_reduction <add>, %22, %cst_8 [0] : vector<256x4xf32> to vector<4xf32>
    %27 = vector.shape_cast %26 : vector<4xf32> to vector<1x4xf32>
    %c0_9 = arith.constant 0 : index
    %c0_10 = arith.constant 0 : index
    %c0_11 = arith.constant 0 : index
    %28 = vector.load %arg4[%c0_9, %c0_10, %c0_11] : memref<1x1x4xf32, #tpu.memory_space<vmem>>, vector<1x1x4xf32>
    %29 = vector.shape_cast %28 : vector<1x1x4xf32> to vector<1x4xf32>
    %30 = vector.shape_cast %27 : vector<1x4xf32> to vector<1x1x4xf32>
    tpu.vector_store %arg4[%c0_9, %c0_10, %c0_11], %30 {strides = array<i32>} : memref<1x1x4xf32, #tpu.memory_space<vmem>>, vector<1x1x4xf32>,
    %31 = arith.mulf %22, %22 : vector<256x4xf32>
    %cst_12 = arith.constant dense<0.000000e+00> : vector<4xf32>
    %32 = vector.multi_reduction <add>, %31, %cst_12 [0] : vector<256x4xf32> to vector<4xf32>
    %33 = vector.shape_cast %32 : vector<4xf32> to vector<1x4xf32>
    %c0_13 = arith.constant 0 : index
    %c0_14 = arith.constant 0 : index
    %c0_15 = arith.constant 0 : index
    %34 = vector.load %arg5[%c0_13, %c0_14, %c0_15] : memref<1x1x4xf32, #tpu.memory_space<vmem>>, vector<1x1x4xf32>
    %35 = vector.shape_cast %34 : vector<1x1x4xf32> to vector<1x4xf32>
    %36 = vector.shape_cast %33 : vector<1x4xf32> to vector<1x1x4xf32>
    tpu.vector_store %arg5[%c0_13, %c0_14, %c0_15], %36 {strides = array<i32>} : memref<1x1x4xf32, #tpu.memory_space<vmem>>, vector<1x1x4xf32>,
    return
  }
  func.func @transform_0(%arg0: i32) -> (i32, i32, i32, i32) {
    %c0_i32 = arith.constant 0 : i32
    %c0_i32_0 = arith.constant 0 : i32
    %c0_i32_1 = arith.constant 0 : i32
    %c0_i32_2 = arith.constant 0 : i32
    return %arg0, %c0_i32, %c0_i32_0, %c0_i32_1 : i32, i32, i32, i32
  }
  func.func @transform_1(%arg0: i32) -> (i32, i32) {
    %c0_i32 = arith.constant 0 : i32
    %c0_i32_0 = arith.constant 0 : i32
    %c0_i32_1 = arith.constant 0 : i32
    return %c0_i32, %c0_i32_0 : i32, i32
  }
  func.func @transform_2(%arg0: i32) -> (i32, i32, i32) {
    %c0_i32 = arith.constant 0 : i32
    %c0_i32_0 = arith.constant 0 : i32
    %c0_i32_1 = arith.constant 0 : i32
    return %arg0, %c0_i32, %c0_i32_0 : i32, i32, i32
  }
  func.func @transform_3(%arg0: i32) -> (i32, i32, i32) {
    %c0_i32 = arith.constant 0 : i32
    %c0_i32_0 = arith.constant 0 : i32
    %c0_i32_1 = arith.constant 0 : i32
    return %arg0, %c0_i32, %c0_i32_0 : i32, i32, i32
  }
  func.func @transform_4(%arg0: i32) -> (i32, i32, i32) {
    %c0_i32 = arith.constant 0 : i32
    %c0_i32_0 = arith.constant 0 : i32
    %c0_i32_1 = arith.constant 0 : i32
    return %arg0, %c0_i32, %c0_i32_0 : i32, i32, i32
  }
}

module attributes {stable_mosaic.version = 11 : i64} {
  func.func @bn_relu_conv_stats_kernel(%arg0: i32, %arg1: memref<1x18x18x4xf32, #tpu.memory_space<vmem>>, %arg2: memref<1x4xf32, #tpu.memory_space<vmem>>, %arg3: memref<1x4xf32, #tpu.memory_space<vmem>>, %arg4: memref<36x4xf32, #tpu.memory_space<vmem>>, %arg5: memref<1x256x4xf32, #tpu.memory_space<vmem>>, %arg6: memref<1x1x4xf32, #tpu.memory_space<vmem>>, %arg7: memref<1x1x4xf32, #tpu.memory_space<vmem>>) attributes {dimension_semantics = [#tpu.dimension_semantics<parallel>], iteration_bounds = array<i64: 2>, scalar_prefetch = 0 : i64, scratch_operands = 0 : i64, tpu.core_type = #tpu.core_type<tc>, window_params = [{transform_indices = @transform_0, window_bounds = array<i64: 1, 18, 18, 4>}, {pipeline_mode = #tpu.pipeline_mode<synchronous>, transform_indices = @transform_1, window_bounds = array<i64: 1, 4>}, {pipeline_mode = #tpu.pipeline_mode<synchronous>, transform_indices = @transform_2, window_bounds = array<i64: 1, 4>}, {pipeline_mode = #tpu.pipeline_mode<synchronous>, transform_indices = @transform_3, window_bounds = array<i64: 36, 4>}, {transform_indices = @transform_4, window_bounds = array<i64: 1, 256, 4>}, {transform_indices = @transform_5, window_bounds = array<i64: 1, 1, 4>}, {transform_indices = @transform_6, window_bounds = array<i64: 1, 1, 4>}]} {
    %c0 = arith.constant 0 : index
    %c0_0 = arith.constant 0 : index
    %c0_1 = arith.constant 0 : index
    %c0_2 = arith.constant 0 : index
    %0 = vector.load %arg1[%c0, %c0_0, %c0_1, %c0_2] : memref<1x18x18x4xf32, #tpu.memory_space<vmem>>, vector<1x18x18x4xf32>
    %1 = vector.shape_cast %0 : vector<1x18x18x4xf32> to vector<18x18x4xf32>
    %c0_3 = arith.constant 0 : index
    %c0_4 = arith.constant 0 : index
    %2 = vector.load %arg2[%c0_3, %c0_4] : memref<1x4xf32, #tpu.memory_space<vmem>>, vector<1x4xf32>
    %3 = vector.shape_cast %2 : vector<1x4xf32> to vector<1x1x4xf32>
    %4 = vector.broadcast %3 : vector<1x1x4xf32> to vector<18x18x4xf32>
    %5 = arith.mulf %1, %4 : vector<18x18x4xf32>
    %c0_5 = arith.constant 0 : index
    %c0_6 = arith.constant 0 : index
    %6 = vector.load %arg3[%c0_5, %c0_6] : memref<1x4xf32, #tpu.memory_space<vmem>>, vector<1x4xf32>
    %7 = vector.shape_cast %6 : vector<1x4xf32> to vector<1x1x4xf32>
    %8 = vector.broadcast %7 : vector<1x1x4xf32> to vector<18x18x4xf32>
    %9 = arith.addf %5, %8 : vector<18x18x4xf32>
    %cst = arith.constant 0.000000e+00 : f32
    %10 = vector.broadcast %cst : f32 to vector<18x18x4xf32>
    %11 = arith.maximumf %9, %10 : vector<18x18x4xf32>
    %12 = tpu.iota {dimensions = array<i32: 0>} : vector<18x18x1xi32>
    %13 = tpu.iota {dimensions = array<i32: 1>} : vector<18x18x1xi32>
    %c1_i32 = arith.constant 1 : i32
    %14 = vector.broadcast %c1_i32 : i32 to vector<18x18x1xi32>
    %15 = arith.cmpi sge, %12, %14 : vector<18x18x1xi32>
    %c16_i32 = arith.constant 16 : i32
    %16 = vector.broadcast %c16_i32 : i32 to vector<18x18x1xi32>
    %17 = arith.cmpi sle, %12, %16 : vector<18x18x1xi32>
    %18 = arith.andi %15, %17 : vector<18x18x1xi1>
    %c1_i32_7 = arith.constant 1 : i32
    %19 = vector.broadcast %c1_i32_7 : i32 to vector<18x18x1xi32>
    %20 = arith.cmpi sge, %13, %19 : vector<18x18x1xi32>
    %21 = arith.andi %18, %20 : vector<18x18x1xi1>
    %c16_i32_8 = arith.constant 16 : i32
    %22 = vector.broadcast %c16_i32_8 : i32 to vector<18x18x1xi32>
    %23 = arith.cmpi sle, %13, %22 : vector<18x18x1xi32>
    %24 = arith.andi %21, %23 : vector<18x18x1xi1>
    %cst_9 = arith.constant 0.000000e+00 : f32
    %25 = vector.shape_cast %24 : vector<18x18x1xi1> to vector<18x18x1xi1>
    %26 = vector.broadcast %25 : vector<18x18x1xi1> to vector<18x18x4xi1>
    %27 = vector.broadcast %cst_9 : f32 to vector<18x18x4xf32>
    %28 = arith.select %26, %11, %27 : vector<18x18x4xi1>, vector<18x18x4xf32>
    %c0_10 = arith.constant 0 : index
    %c0_11 = arith.constant 0 : index
    %29 = vector.load %arg4[%c0_10, %c0_11] : memref<36x4xf32, #tpu.memory_space<vmem>>, vector<36x4xf32>
    %30 = vector.extract_strided_slice %28 {offsets = [0, 0, 0], sizes = [16, 16, 4], strides = [1, 1, 1]} : vector<18x18x4xf32> to vector<16x16x4xf32>
    %31 = vector.shape_cast %30 : vector<16x16x4xf32> to vector<256x4xf32>
    %32 = vector.extract_strided_slice %28 {offsets = [0, 1, 0], sizes = [16, 16, 4], strides = [1, 1, 1]} : vector<18x18x4xf32> to vector<16x16x4xf32>
    %33 = vector.shape_cast %32 : vector<16x16x4xf32> to vector<256x4xf32>
    %34 = vector.extract_strided_slice %28 {offsets = [0, 2, 0], sizes = [16, 16, 4], strides = [1, 1, 1]} : vector<18x18x4xf32> to vector<16x16x4xf32>
    %35 = vector.shape_cast %34 : vector<16x16x4xf32> to vector<256x4xf32>
    %36 = vector.extract_strided_slice %28 {offsets = [1, 0, 0], sizes = [16, 16, 4], strides = [1, 1, 1]} : vector<18x18x4xf32> to vector<16x16x4xf32>
    %37 = vector.shape_cast %36 : vector<16x16x4xf32> to vector<256x4xf32>
    %38 = vector.extract_strided_slice %28 {offsets = [1, 1, 0], sizes = [16, 16, 4], strides = [1, 1, 1]} : vector<18x18x4xf32> to vector<16x16x4xf32>
    %39 = vector.shape_cast %38 : vector<16x16x4xf32> to vector<256x4xf32>
    %40 = vector.extract_strided_slice %28 {offsets = [1, 2, 0], sizes = [16, 16, 4], strides = [1, 1, 1]} : vector<18x18x4xf32> to vector<16x16x4xf32>
    %41 = vector.shape_cast %40 : vector<16x16x4xf32> to vector<256x4xf32>
    %42 = vector.extract_strided_slice %28 {offsets = [2, 0, 0], sizes = [16, 16, 4], strides = [1, 1, 1]} : vector<18x18x4xf32> to vector<16x16x4xf32>
    %43 = vector.shape_cast %42 : vector<16x16x4xf32> to vector<256x4xf32>
    %44 = vector.extract_strided_slice %28 {offsets = [2, 1, 0], sizes = [16, 16, 4], strides = [1, 1, 1]} : vector<18x18x4xf32> to vector<16x16x4xf32>
    %45 = vector.shape_cast %44 : vector<16x16x4xf32> to vector<256x4xf32>
    %46 = vector.extract_strided_slice %28 {offsets = [2, 2, 0], sizes = [16, 16, 4], strides = [1, 1, 1]} : vector<18x18x4xf32> to vector<16x16x4xf32>
    %47 = vector.shape_cast %46 : vector<16x16x4xf32> to vector<256x4xf32>
    %48 = tpu.concatenate %31, %33, %35, %37, %39, %41, %43, %45, %47 in 1 : vector<256x4xf32>, vector<256x4xf32>, vector<256x4xf32>, vector<256x4xf32>, vector<256x4xf32>, vector<256x4xf32>, vector<256x4xf32>, vector<256x4xf32>, vector<256x4xf32> -> vector<256x36xf32>
    %cst_12 = arith.constant dense<0.000000e+00> : vector<256x4xf32>
    %49 = tpu.matmul %48, %29, %cst_12 {dimension_numbers = #tpu.dot_dimension_numbers<[1], [0], [0], [1], [0, 0, 1, 1], [], []>} : vector<256x36xf32>, vector<36x4xf32>, vector<256x4xf32> -> vector<256x4xf32>
    %c0_13 = arith.constant 0 : index
    %c0_14 = arith.constant 0 : index
    %c0_15 = arith.constant 0 : index
    %50 = vector.load %arg5[%c0_13, %c0_14, %c0_15] : memref<1x256x4xf32, #tpu.memory_space<vmem>>, vector<1x256x4xf32>
    %51 = vector.shape_cast %50 : vector<1x256x4xf32> to vector<256x4xf32>
    %52 = vector.shape_cast %49 : vector<256x4xf32> to vector<1x256x4xf32>
    tpu.vector_store %arg5[%c0_13, %c0_14, %c0_15], %52 {strides = array<i32>} : memref<1x256x4xf32, #tpu.memory_space<vmem>>, vector<1x256x4xf32>,
    %cst_16 = arith.constant dense<0.000000e+00> : vector<4xf32>
    %53 = vector.multi_reduction <add>, %49, %cst_16 [0] : vector<256x4xf32> to vector<4xf32>
    %54 = vector.shape_cast %53 : vector<4xf32> to vector<1x4xf32>
    %c0_17 = arith.constant 0 : index
    %c0_18 = arith.constant 0 : index
    %c0_19 = arith.constant 0 : index
    %55 = vector.load %arg6[%c0_17, %c0_18, %c0_19] : memref<1x1x4xf32, #tpu.memory_space<vmem>>, vector<1x1x4xf32>
    %56 = vector.shape_cast %55 : vector<1x1x4xf32> to vector<1x4xf32>
    %57 = vector.shape_cast %54 : vector<1x4xf32> to vector<1x1x4xf32>
    tpu.vector_store %arg6[%c0_17, %c0_18, %c0_19], %57 {strides = array<i32>} : memref<1x1x4xf32, #tpu.memory_space<vmem>>, vector<1x1x4xf32>,
    %58 = arith.mulf %49, %49 : vector<256x4xf32>
    %cst_20 = arith.constant dense<0.000000e+00> : vector<4xf32>
    %59 = vector.multi_reduction <add>, %58, %cst_20 [0] : vector<256x4xf32> to vector<4xf32>
    %60 = vector.shape_cast %59 : vector<4xf32> to vector<1x4xf32>
    %c0_21 = arith.constant 0 : index
    %c0_22 = arith.constant 0 : index
    %c0_23 = arith.constant 0 : index
    %61 = vector.load %arg7[%c0_21, %c0_22, %c0_23] : memref<1x1x4xf32, #tpu.memory_space<vmem>>, vector<1x1x4xf32>
    %62 = vector.shape_cast %61 : vector<1x1x4xf32> to vector<1x4xf32>
    %63 = vector.shape_cast %60 : vector<1x4xf32> to vector<1x1x4xf32>
    tpu.vector_store %arg7[%c0_21, %c0_22, %c0_23], %63 {strides = array<i32>} : memref<1x1x4xf32, #tpu.memory_space<vmem>>, vector<1x1x4xf32>,
    return
  }
  func.func @transform_0(%arg0: i32) -> (i32, i32, i32, i32) {
    %c0_i32 = arith.constant 0 : i32
    %c0_i32_0 = arith.constant 0 : i32
    %c0_i32_1 = arith.constant 0 : i32
    %c0_i32_2 = arith.constant 0 : i32
    return %arg0, %c0_i32, %c0_i32_0, %c0_i32_1 : i32, i32, i32, i32
  }
  func.func @transform_1(%arg0: i32) -> (i32, i32) {
    %c0_i32 = arith.constant 0 : i32
    %c0_i32_0 = arith.constant 0 : i32
    %c0_i32_1 = arith.constant 0 : i32
    return %c0_i32, %c0_i32_0 : i32, i32
  }
  func.func @transform_2(%arg0: i32) -> (i32, i32) {
    %c0_i32 = arith.constant 0 : i32
    %c0_i32_0 = arith.constant 0 : i32
    %c0_i32_1 = arith.constant 0 : i32
    return %c0_i32, %c0_i32_0 : i32, i32
  }
  func.func @transform_3(%arg0: i32) -> (i32, i32) {
    %c0_i32 = arith.constant 0 : i32
    %c0_i32_0 = arith.constant 0 : i32
    %c0_i32_1 = arith.constant 0 : i32
    return %c0_i32, %c0_i32_0 : i32, i32
  }
  func.func @transform_4(%arg0: i32) -> (i32, i32, i32) {
    %c0_i32 = arith.constant 0 : i32
    %c0_i32_0 = arith.constant 0 : i32
    %c0_i32_1 = arith.constant 0 : i32
    return %arg0, %c0_i32, %c0_i32_0 : i32, i32, i32
  }
  func.func @transform_5(%arg0: i32) -> (i32, i32, i32) {
    %c0_i32 = arith.constant 0 : i32
    %c0_i32_0 = arith.constant 0 : i32
    %c0_i32_1 = arith.constant 0 : i32
    return %arg0, %c0_i32, %c0_i32_0 : i32, i32, i32
  }
  func.func @transform_6(%arg0: i32) -> (i32, i32, i32) {
    %c0_i32 = arith.constant 0 : i32
    %c0_i32_0 = arith.constant 0 : i32
    %c0_i32_1 = arith.constant 0 : i32
    return %arg0, %c0_i32, %c0_i32_0 : i32, i32, i32
  }
}

module attributes {stable_mosaic.version = 11 : i64} {
  func.func @bn_add_relu_kernel(%arg0: i32, %arg1: memref<4x256xf32, #tpu.memory_space<vmem>>, %arg2: memref<4x256xf32, #tpu.memory_space<vmem>>, %arg3: memref<4x1xf32, #tpu.memory_space<vmem>>, %arg4: memref<4x1xf32, #tpu.memory_space<vmem>>, %arg5: memref<4x256xf32, #tpu.memory_space<vmem>>) attributes {dimension_semantics = [#tpu.dimension_semantics<parallel>], iteration_bounds = array<i64: 2>, scalar_prefetch = 0 : i64, scratch_operands = 0 : i64, tpu.core_type = #tpu.core_type<tc>, window_params = [{transform_indices = @transform_0, window_bounds = array<i64: 4, 256>}, {transform_indices = @transform_1, window_bounds = array<i64: 4, 256>}, {pipeline_mode = #tpu.pipeline_mode<synchronous>, transform_indices = @transform_2, window_bounds = array<i64: 4, 1>}, {pipeline_mode = #tpu.pipeline_mode<synchronous>, transform_indices = @transform_3, window_bounds = array<i64: 4, 1>}, {transform_indices = @transform_4, window_bounds = array<i64: 4, 256>}]} {
    %c0 = arith.constant 0 : index
    %c0_0 = arith.constant 0 : index
    %0 = vector.load %arg1[%c0, %c0_0] : memref<4x256xf32, #tpu.memory_space<vmem>>, vector<4x256xf32>
    %c0_1 = arith.constant 0 : index
    %c0_2 = arith.constant 0 : index
    %1 = vector.load %arg3[%c0_1, %c0_2] : memref<4x1xf32, #tpu.memory_space<vmem>>, vector<4x1xf32>
    %2 = vector.broadcast %1 : vector<4x1xf32> to vector<4x256xf32>
    %3 = arith.mulf %0, %2 : vector<4x256xf32>
    %c0_3 = arith.constant 0 : index
    %c0_4 = arith.constant 0 : index
    %4 = vector.load %arg4[%c0_3, %c0_4] : memref<4x1xf32, #tpu.memory_space<vmem>>, vector<4x1xf32>
    %5 = vector.broadcast %4 : vector<4x1xf32> to vector<4x256xf32>
    %6 = arith.addf %3, %5 : vector<4x256xf32>
    %c0_5 = arith.constant 0 : index
    %c0_6 = arith.constant 0 : index
    %7 = vector.load %arg2[%c0_5, %c0_6] : memref<4x256xf32, #tpu.memory_space<vmem>>, vector<4x256xf32>
    %8 = arith.addf %6, %7 : vector<4x256xf32>
    %cst = arith.constant 0.000000e+00 : f32
    %9 = vector.broadcast %cst : f32 to vector<4x256xf32>
    %10 = arith.maximumf %8, %9 : vector<4x256xf32>
    %c0_7 = arith.constant 0 : index
    %c0_8 = arith.constant 0 : index
    %11 = vector.load %arg5[%c0_7, %c0_8] : memref<4x256xf32, #tpu.memory_space<vmem>>, vector<4x256xf32>
    tpu.vector_store %arg5[%c0_7, %c0_8], %10 {strides = array<i32>} : memref<4x256xf32, #tpu.memory_space<vmem>>, vector<4x256xf32>,
    return
  }
  func.func @transform_0(%arg0: i32) -> (i32, i32) {
    %c0_i32 = arith.constant 0 : i32
    %c0_i32_0 = arith.constant 0 : i32
    return %c0_i32, %arg0 : i32, i32
  }
  func.func @transform_1(%arg0: i32) -> (i32, i32) {
    %c0_i32 = arith.constant 0 : i32
    %c0_i32_0 = arith.constant 0 : i32
    return %c0_i32, %arg0 : i32, i32
  }
  func.func @transform_2(%arg0: i32) -> (i32, i32) {
    %c0_i32 = arith.constant 0 : i32
    %c0_i32_0 = arith.constant 0 : i32
    %c0_i32_1 = arith.constant 0 : i32
    return %c0_i32, %c0_i32_0 : i32, i32
  }
  func.func @transform_3(%arg0: i32) -> (i32, i32) {
    %c0_i32 = arith.constant 0 : i32
    %c0_i32_0 = arith.constant 0 : i32
    %c0_i32_1 = arith.constant 0 : i32
    return %c0_i32, %c0_i32_0 : i32, i32
  }
  func.func @transform_4(%arg0: i32) -> (i32, i32) {
    %c0_i32 = arith.constant 0 : i32
    %c0_i32_0 = arith.constant 0 : i32
    return %c0_i32, %arg0 : i32, i32
  }
}

</mosaic_0001>

<bundles_post_ra>
// kernel: residual_block.5
= control target key start
LH: loop header
LB: loop body
LE: loop exit
PB: predicated region body
PF: predicated region fallthrough
CT: control target
= control target key end

     0   :  { %s377_s15 = smov 0   ;;  %s403_s0 = inlined_call_operand.vmem [shape: f32[4,512], index: 0, kind: input, shape index: {}]   ;;  %s404_s1 = inlined_call_operand.vmem [shape: f32[4,512], index: 1, kind: input, shape index: {}]   ;;  %s405_s2 = inlined_call_operand.vmem [shape: f32[4,1], index: 2, kind: input, shape index: {}]   ;;  %s406_s3 = inlined_call_operand.vmem [shape: f32[4,1], index: 3, kind: input, shape index: {}]   ;;  %s407_s4 = inlined_call_operand.vmem [shape: f32[4,512], index: 4, kind: output, shape index: {}]  }
   0x1 LB: > { %s318_s16 = sadd.s32 4294967295, %s348_s15   ;;  %p322_p0 = scmp.ge.s32.totalorder %s348_s15, 1  ;;  %s348_s15 = sphi %s377_s15, %s14_s15  }
   0x2   : > { %p174_p1 = scmp.lt.s32.totalorder %s348_s15, 3 }
   0x4   : > { %p175_p2 = pnand %p322_p0, %p174_p1 }
   0x5   : > { %s323_s21 = sshll.u32 (!%p175_p2), %s318_s16, 1 }
   0x6   : > { %178 = sbr.rel (%p175_p2) target bundleno = 145 (0x91), region = 36  ;;  %p206_p3 = scmp.lt.s32.totalorder (!%p175_p2), %s323_s21, 3 }
   0xb   : > { %v224_v0 = vld [vmem:[%s405_s2] sm:$0xf]  ;;  %v350_v1 = vmov 0   ;;  %s409_s21 = smov (!%p206_p3, %s323_s21), 3  ;;  %v351_v3 = vmov 839922192  }
   0xc   : > { %341 = vset.pattern.permute.xlu0 %v350_v1  ;;  %v235_v2 = vld [vmem:[%s406_s3] sm:$0xf]  ;;  %v230_v4 = vunpack.c.l.s4 %v351_v3  ;;  %s324_s22 = sshll.u32 %s409_s21, 2 }
   0xd   : > { %227 = vperm.xlu0 %341, %v224_v0   ;;  %s209_s25 = scalar_lea.vmem %s403_s0, %s324_s22  ;;  %s215_s28 = scalar_lea.vmem %s404_s1, %s324_s22 }
   0xe   : > { %v231_v6 = vunpack.c.0.s8 %v230_v4  ;;  %v223_v8 = vld [vmem:[%s209_s25] sm:$0xff]  ;;  %s221_s5 = scalar_lea.vmem %s407_s4, %s324_s22 }
   0xf   : > { %v246_v12 = vld [vmem:[%s215_s28] sm:$0xff] }
  0x15   : > { %238 = vperm.xlu0 %341, %v235_v2  }
  0x7f   : > { %v228_v5 = vpop.permute.xlu0 %227 }
  0x80   : > { %v232_v7 = vperm.slane %v228_v5, %v231_v6 }
  0x82   : > { %v234_v10 = vmul.f32 %v232_v7, %v223_v8 }
  0x87   : > { %v239_v9 = vpop.permute.xlu0 %238 }
  0x88   : > { %v243_v11 = vperm.slane %v239_v9, %v231_v6 }
  0x8a   : > { %v245_v13 = vadd.f32 %v243_v11, %v234_v10 }
  0x8c   : > { %v247_v14 = vadd.f32 %v246_v12, %v245_v13 }
  0x8e   : > { %v248_v15 = vmax.f32 %v247_v14, 0.0 }
  0x90   : > { %249 = vst [vmem:[%s221_s5] sm:$0xff] %v248_v15 }
  0x91 PF: > { %s14_s15 = sadd.s32 1, %s348_s15  }
  0x92   : > { %p11_p4 = scmp.ge.s32.totalorder %s14_s15, 4  }
  0x94   :  { %13 = sbr.rel (!%p11_p4) target bundleno = 1 (0x1), region = 69 }

// kernel: residual_block.3
= control target key start
LH: loop header
LB: loop body
LE: loop exit
PB: predicated region body
PF: predicated region fallthrough
CT: control target
= control target key end

     0   :  { %s2216_s15 = smov 0   ;;  %s4272_s0 = inlined_call_operand.vmem [shape: f32[2,18,18,4], index: 0, kind: input, shape index: {}]   ;;  %s4273_s1 = inlined_call_operand.vmem [shape: f32[36,4], index: 1, kind: input, shape index: {}]   ;;  %s4274_s2 = inlined_call_operand.vmem [shape: f32[2,256,4], index: 2, kind: output, shape index: {0}]   ;;  %s4275_s3 = inlined_call_operand.vmem [shape: f32[2,1,4], index: 3, kind: output, shape index: {1}]   ;;  %s4276_s4 = inlined_call_operand.vmem [shape: f32[2,1,4], index: 4, kind: output, shape index: {2}]  }
   0x1 LB: > { %s2066_s16 = sadd.s32 4294967295, %s2181_s15   ;;  %p2070_p0 = scmp.ge.s32.totalorder %s2181_s15, 1  ;;  %s2181_s15 = sphi %s2216_s15, %s15_s15  }
   0x2   : > { %p167_p1 = scmp.lt.s32.totalorder %s2181_s15, 3 }
   0x4   : > { %p168_p2 = pnand %p2070_p0, %p167_p1 }
   0x6   : > { %171 = sbr.rel (%p168_p2) target bundleno = 969 (0x3c9), region = 28 }
   0xb   : > { %p199_p3 = scmp.lt.s32.totalorder %s2066_s16, 1  ;;  %vm322_vm0 = vcmask 1046528   ;;  %s2183_s21 = smov 4   ;;  %vm403_vm1 = vcmask 1045504   ;;  %vm1278_vm2 = vcmask 31744   ;;  %vm1311_vm3 = vcmask 64512  }
   0xc   : > { %s2184_s22 = smov 8   ;;  %s2185_s23 = smov 12   ;;  %vm1344_vm4 = vcmask 97280   ;;  %vm1377_vm5 = vcmask 130048   ;;  %vm1410_vm6 = vcmask 162816   ;;  %vm1639_vm7 = vcmask 1043456  }
   0xd   : > { %s4682_s16 = smov (!%p199_p3, %s2066_s16), 1  ;;  %s2186_s24 = smov 16   ;;  %vm1443_vm8 = vcmask 195584   ;;  %vm1476_vm9 = vcmask 228352   ;;  %vm1509_vm10 = vcmask 261120   ;;  %vm1542_vm11 = vcmask 293888  }
   0xe   : > { %s2125_s17 = smul.u32 432, %s4682_s16  ;;  %s2187_s25 = smov 20   ;;  %vm1857_vm12 = vcmask 24576  }
   0xf   : > { %s2188_s26 = smov 28   ;;  %s2189_s27 = smov 24  }
  0x10   : > { %s2230_s20 = scalar_lea.vmem %s4272_s0, %s2125_s17  ;;  %s2190_s28 = smov 32  }
  0x11   : > { %v2233_v0 = vld [vmem:[%s2230_s20 + $0x30] sm:$0xff]  ;;  %v2236_v1 = vld [vmem:[%s2230_s20 + $0x38] sm:$0xff]  ;;  %v2244_v5 = vld [vmem:[%s2230_s20 + $0x20] sm:$0xff]  ;;  %s2109_s13 = sshll.u32 %s4682_s16, 8 }
  0x12   : > { %v2239_v2 = vld [vmem:[%s2230_s20 + $0x18] sm:$0xff]  ;;  %v333_v3 = vrot.slane %v2233_v0, 1  ;;  %v334_v4 = vrot.slane %v2236_v1, 1  ;;  %v2248_v7 = vld [vmem:[%s2230_s20] sm:$0xff]  ;;  %v2251_v8 = vld [vmem:[%s2230_s20 + $0x8] sm:$0xff]  ;;  %v329_v9 = vrot.slane %v2244_v5, 1  ;;  %s3968_s18 = scalar_lea.vmem %s4274_s2, %s2109_s13 }
  0x13   : > { %v328_v6 = vrot.slane %v2239_v2, 1  ;;  %v323_v10 = vrot.slane %v2248_v7, 1  ;;  %v324_v11 = vrot.slane %v2251_v8, 1  ;;  %v2257_v12 = vld [vmem:[%s2230_s20 + $0x40] sm:$0x3]  ;;  %v2291_v25 = vld [vmem:[%s2230_s20 + $0x68] sm:$0xff] }
  0x14   : > { %v2260_v13 = vsel %vm322_vm0, %v333_v3, %v334_v4  ;;  %v2263_v14 = vld [vmem:[%s2230_s20 + $0x28] sm:$0x3]  ;;  %v2266_v15 = vld [vmem:[%s2230_s20 + $0x10] sm:$0x3]  ;;  %v336_v18 = vrot.slane %v2257_v12, 1  ;;  %v2288_v24 = vld [vmem:[%s2230_s20 + $0x60] sm:$0xff] }
  0x15   : > { %518 = vrot.lane.b32.xlu2 %v2260_v13, %s2183_s21  ;;  %v2271_v16 = vsel %vm322_vm0, %v328_v6, %v329_v9  ;;  %v325_v17 = vsel %vm322_vm0, %v323_v10, %v324_v11  ;;  %v331_v19 = vrot.slane %v2263_v14, 1  ;;  %v326_v20 = vrot.slane %v2266_v15, 1  ;;  %v2294_v26 = vld [vmem:[%s2230_s20 + $0x50] sm:$0xff]  ;;  %v2297_v27 = vld [vmem:[%s2230_s20 + $0x58] sm:$0x3]  ;;  %v2300_v28 = vld [vmem:[%s2230_s20 + $0x48] sm:$0xff] }
  0x16   : > { %514 = vrot.lane.b32.xlu1 %v2271_v16, %s2183_s21  ;;  %510 = vrot.lane.b32.xlu0 %v325_v17, %s2183_s21  ;;  %v2281_v21 = vsel %vm322_vm0, %v334_v4, %v336_v18  ;;  %v343_v29 = vrot.slane %v2288_v24, 1  ;;  %v344_v30 = vrot.slane %v2291_v25, 1  ;;  %v339_v31 = vrot.slane %v2294_v26, 1  ;;  %v2322_v37 = vld [vmem:[%s2230_s20 + $0x80] sm:$0xff]  ;;  %v2325_v38 = vld [vmem:[%s2230_s20 + $0x88] sm:$0x3] }
  0x17   : > { %v2284_v22 = vsel %vm322_vm0, %v329_v9, %v331_v19  ;;  %v327_v23 = vsel %vm322_vm0, %v324_v11, %v326_v20  ;;  %v341_v32 = vrot.slane %v2297_v27, 1  ;;  %v338_v33 = vrot.slane %v2300_v28, 1  ;;  %v2328_v39 = vld [vmem:[%s2230_s20 + $0x78] sm:$0xff]  ;;  %v2331_v40 = vld [vmem:[%s2230_s20 + $0x70] sm:$0x3]  ;;  %v2353_v48 = vld [vmem:[%s2230_s20 + $0xa8] sm:$0xff] }
  0x18   : > { %v2313_v34 = vsel %vm322_vm0, %v343_v29, %v344_v30  ;;  %v349_v41 = vrot.slane %v2322_v37, 1  ;;  %v351_v42 = vrot.slane %v2325_v38, 1  ;;  %v348_v43 = vrot.slane %v2328_v39, 1  ;;  %v2356_v49 = vld [vmem:[%s2230_s20 + $0xb0] sm:$0xff]  ;;  %v2359_v50 = vld [vmem:[%s2230_s20 + $0x98] sm:$0xff]  ;;  %v2388_v61 = vld [vmem:[%s2230_s20 + $0xc8] sm:$0xff] }
  0x19   : > { %4364 = vst [vmem:[#allocation2_spill] sm:$0xff] %v2313_v34  ;;  %v2316_v35 = vsel %vm322_vm0, %v339_v31, %v341_v32  ;;  %v2319_v36 = vsel %vm322_vm0, %v338_v33, %v339_v31  ;;  %v346_v44 = vrot.slane %v2331_v40, 1  ;;  %v2362_v51 = vld [vmem:[%s2230_s20 + $0xa0] sm:$0x3]  ;;  %v2365_v52 = vld [vmem:[%s2230_s20 + $0x90] sm:$0xff]  ;;  %v358_v53 = vrot.slane %v2353_v48, 1 }
  0x1a   : > { %v2344_v45 = vsel %vm322_vm0, %v349_v41, %v351_v42  ;;  %v2347_v46 = vsel %vm322_vm0, %v348_v43, %v349_v41  ;;  %v359_v54 = vrot.slane %v2356_v49, 1  ;;  %v354_v55 = vrot.slane %v2359_v50, 1  ;;  %v2391_v62 = vld [vmem:[%s2230_s20 + $0xd0] sm:$0x3]  ;;  %v2394_v63 = vld [vmem:[%s2230_s20 + $0xc0] sm:$0xff]  ;;  %v2422_v20 = vld [vmem:[%s2230_s20 + $0xf8] sm:$0xff] }
  0x1b   : > { %4365 = vst [vmem:[#allocation3_spill] sm:$0xff] %v2344_v45  ;;  %v2350_v47 = vsel %vm322_vm0, %v344_v30, %v346_v44  ;;  %v356_v56 = vrot.slane %v2362_v51, 1  ;;  %v353_v57 = vrot.slane %v2365_v52, 1  ;;  %v2397_v3 = vld [vmem:[%s2230_s20 + $0xb8] sm:$0x3]  ;;  %v364_v4 = vrot.slane %v2388_v61, 1 }
  0x1c   : > { %4366 = vst [vmem:[#allocation4_spill] sm:$0xff] %v2347_v46  ;;  %v2379_v58 = vsel %vm322_vm0, %v358_v53, %v359_v54  ;;  %v366_v6 = vrot.slane %v2391_v62, 1  ;;  %v363_v9 = vrot.slane %v2394_v63, 1  ;;  %v361_v10 = vrot.slane %v2397_v3, 1  ;;  %v2419_v19 = vld [vmem:[%s2230_s20 + $0xf0] sm:$0xff]  ;;  %v2431_v30 = vld [vmem:[%s2230_s20 + $0xd8] sm:$0xff] }
  0x1d   : > { %520 = vrot.lane.b32.xlu2 %v2281_v21, %s2183_s21  ;;  %4367 = vst [vmem:[#allocation5_spill] sm:$0xff] %v2350_v47  ;;  %v2382_v59 = vsel %vm322_vm0, %v354_v55, %v356_v56  ;;  %v2385_v60 = vsel %vm322_vm0, %v353_v57, %v354_v55  ;;  %v2428_v29 = vld [vmem:[%s2230_s20 + $0xe8] sm:$0x3]  ;;  %v373_v31 = vrot.slane %v2419_v19, 1  ;;  %v374_v32 = vrot.slane %v2422_v20, 1 }
  0x1e   : > { %516 = vrot.lane.b32.xlu1 %v2284_v22, %s2183_s21  ;;  %512 = vrot.lane.b32.xlu0 %v327_v23, %s2183_s21  ;;  %4368 = vst [vmem:[#allocation6_spill] sm:$0xff] %v2379_v58  ;;  %v2410_v11 = vsel %vm322_vm0, %v364_v4, %v366_v6  ;;  %v2413_v17 = vsel %vm322_vm0, %v363_v9, %v364_v4  ;;  %v2425_v23 = vld [vmem:[%s2230_s20 + $0xe0] sm:$0xff]  ;;  %v371_v41 = vrot.slane %v2428_v29, 1  ;;  %v368_v42 = vrot.slane %v2431_v30, 1  ;;  %v2457_v55 = vld [vmem:[%s2230_s20 + $0x118] sm:$0x3] }
  0x1f   : > { %4369 = vst [vmem:[#allocation7_spill] sm:$0xff] %v2382_v59  ;;  %v2416_v18 = vsel %vm322_vm0, %v359_v54, %v361_v10  ;;  %v369_v33 = vrot.slane %v2425_v23, 1  ;;  %v2445_v43 = vsel %vm322_vm0, %v373_v31, %v374_v32  ;;  %v2454_v54 = vld [vmem:[%s2230_s20 + $0x110] sm:$0xff]  ;;  %v2460_v56 = vld [vmem:[%s2230_s20 + $0x108] sm:$0xff]  ;;  %v2463_v57 = vld [vmem:[%s2230_s20 + $0x100] sm:$0x3] }
  0x20   : > { %4370 = vst [vmem:[#allocation8_spill] sm:$0xff] %v2385_v60  ;;  %v379_v4 = vrot.slane %v2454_v54, 1  ;;  %v381_v6 = vrot.slane %v2457_v55, 1  ;;  %v378_v9 = vrot.slane %v2460_v56, 1  ;;  %v376_v10 = vrot.slane %v2463_v57, 1 }
  0x21   : > { %4371 = vst [vmem:[#allocation9_spill] sm:$0xff] %v2410_v11  ;;  %v2448_v44 = vsel %vm322_vm0, %v369_v33, %v371_v41  ;;  %v2451_v53 = vsel %vm322_vm0, %v368_v42, %v369_v33  ;;  %v2485_v42 = vld [vmem:[%s2230_s20 + $0x138] sm:$0xff] }
  0x22   : > { %4372 = vst [vmem:[#allocation10_spill] sm:$0xff] %v2413_v17  ;;  %v2476_v31 = vsel %vm322_vm0, %v379_v4, %v381_v6  ;;  %v2479_v33 = vsel %vm322_vm0, %v378_v9, %v379_v4  ;;  %v2482_v41 = vsel %vm322_vm0, %v374_v32, %v376_v10  ;;  %v2497_v6 = vld [vmem:[%s2230_s20 + $0x120] sm:$0xff]  ;;  %v388_v32 = vrot.slane %v2485_v42, 1 }
  0x23   : > { %4373 = vst [vmem:[#allocation11_spill] sm:$0xff] %v2416_v18 }
  0x24   : > { %4374 = vst [vmem:[#allocation12_spill] sm:$0xff] %v2445_v43 }
  0x25   : > { %526 = vrot.lane.b32.xlu2 %v2313_v34, %s2183_s21  ;;  %4375 = vst [vmem:[#allocation13_spill] sm:$0xff] %v2448_v44  ;;  %v2557_v34 = vld [vmem:[%s2230_s20 + $0x168] sm:$0xff] }
  0x26   : > { %524 = vrot.lane.b32.xlu1 %v2316_v35, %s2183_s21  ;;  %522 = vrot.lane.b32.xlu0 %v2319_v36, %s2183_s21  ;;  %4376 = vst [vmem:[#allocation14_spill] sm:$0xff] %v2451_v53 }
  0x27   : > { %4377 = vst [vmem:[#allocation15_spill] sm:$0xff] %v2476_v31 }
  0x28   : > { %4378 = vst [vmem:[#allocation16_spill] sm:$0xff] %v2479_v33 }
  0x29   : > { %4379 = vst [vmem:[#allocation17_spill] sm:$0xff] %v2482_v41 }
  0x2a   : > { %4387 = vst [vmem:[#allocation25_spill] sm:$0xff] %v2557_v34 }
  0x2d   : > { %532 = vrot.lane.b32.xlu2 %v2344_v45, %s2183_s21  ;;  %v2529_v45 = vld [vmem:[%s2230_s20 + $0x148] sm:$0x3] }
  0x2e   : > { %530 = vrot.lane.b32.xlu1 %v2347_v46, %s2183_s21  ;;  %528 = vrot.lane.b32.xlu0 %v2350_v47, %s2183_s21 }
  0x35   : > { %538 = vrot.lane.b32.xlu2 %v2379_v58, %s2183_s21 }
  0x36   : > { %536 = vrot.lane.b32.xlu1 %v2382_v59, %s2183_s21  ;;  %534 = vrot.lane.b32.xlu0 %v2385_v60, %s2183_s21 }
  0x3d   : > { %544 = vrot.lane.b32.xlu2 %v2410_v11, %s2183_s21  ;;  %v2491_v11 = vld [vmem:[%s2230_s20 + $0x128] sm:$0xff] }
  0x3e   : > { %542 = vrot.lane.b32.xlu1 %v2413_v17, %s2183_s21  ;;  %540 = vrot.lane.b32.xlu0 %v2416_v18, %s2183_s21  ;;  %v384_v9 = vrot.slane %v2491_v11, 1  ;;  %v2523_v18 = vld [vmem:[%s2230_s20 + $0x160] sm:$0x3]  ;;  %v2526_v17 = vld [vmem:[%s2230_s20 + $0x150] sm:$0xff] }
  0x45   : > { %550 = vrot.lane.b32.xlu2 %v2445_v43, %s2183_s21  ;;  %v2488_v43 = vld [vmem:[%s2230_s20 + $0x140] sm:$0xff] }
  0x46   : > { %548 = vrot.lane.b32.xlu1 %v2448_v44, %s2183_s21  ;;  %546 = vrot.lane.b32.xlu0 %v2451_v53, %s2183_s21  ;;  %4380 = vst [vmem:[#allocation18_spill] sm:$0xff] %v2488_v43  ;;  %v2494_v53 = vld [vmem:[%s2230_s20 + $0x130] sm:$0x3]  ;;  %v389_v4 = vrot.slane %v2488_v43, 1  ;;  %v383_v44 = vrot.slane %v2497_v6, 1 }
  0x47   : > { %v386_v10 = vrot.slane %v2494_v53, 1 }
  0x48   : > { %v2511_v58 = vsel %vm322_vm0, %v388_v32, %v389_v4  ;;  %v396_v32 = vrot.slane %v2523_v18, 1 }
  0x49   : > { %4381 = vst [vmem:[#allocation19_spill] sm:$0xff] %v2511_v58 }
  0x4d   : > { %556 = vrot.lane.b32.xlu2 %v2476_v31, %s2183_s21  ;;  %v2514_v31 = vsel %vm322_vm0, %v384_v9, %v386_v10  ;;  %v391_v10 = vrot.slane %v2529_v45, 1 }
  0x4e   : > { %554 = vrot.lane.b32.xlu1 %v2479_v33, %s2183_s21  ;;  %552 = vrot.lane.b32.xlu0 %v2482_v41, %s2183_s21  ;;  %4382 = vst [vmem:[#allocation20_spill] sm:$0xff] %v2514_v31  ;;  %v2517_v33 = vsel %vm322_vm0, %v383_v44, %v384_v9  ;;  %v2520_v41 = vld [vmem:[%s2230_s20 + $0x158] sm:$0xff]  ;;  %v393_v9 = vrot.slane %v2526_v17, 1 }
  0x4f   : > { %4383 = vst [vmem:[#allocation21_spill] sm:$0xff] %v2517_v33  ;;  %v394_v44 = vrot.slane %v2520_v41, 1 }
  0x51   : > { %v2542_v60 = vsel %vm322_vm0, %v394_v44, %v396_v32  ;;  %v2545_v59 = vsel %vm322_vm0, %v393_v9, %v394_v44  ;;  %v404_v44 = vrot.slane %v2248_v7, 2  ;;  %v410_v7 = vrot.slane %v2244_v5, 2 }
  0x52   : > { %4384 = vst [vmem:[#allocation22_spill] sm:$0xff] %v2542_v60 }
  0x53   : > { %4385 = vst [vmem:[#allocation23_spill] sm:$0xff] %v2545_v59 }
  0x55   : > { %562 = vrot.lane.b32.xlu2 %v2511_v58, %s2183_s21  ;;  %v2548_v58 = vsel %vm322_vm0, %v389_v4, %v391_v10  ;;  %v405_v4 = vrot.slane %v2251_v8, 2  ;;  %v398_v10 = vrot.slane %v2557_v34, 1  ;;  %v412_v8 = vrot.slane %v2263_v14, 2 }
  0x56   : > { %560 = vrot.lane.b32.xlu1 %v2514_v31, %s2183_s21  ;;  %558 = vrot.lane.b32.xlu0 %v2517_v33, %s2183_s21  ;;  %4386 = vst [vmem:[#allocation24_spill] sm:$0xff] %v2548_v58  ;;  %v2551_v31 = vld [vmem:[%s2230_s20 + $0x170] sm:$0xff]  ;;  %v2554_v33 = vld [vmem:[%s2230_s20 + $0x178] sm:$0x3]  ;;  %v419_v14 = vrot.slane %v2300_v28, 2 }
  0x57   : > { %v399_v32 = vrot.slane %v2551_v31, 1  ;;  %v401_v9 = vrot.slane %v2554_v33, 1  ;;  %v406_v47 = vsel %vm403_vm1, %v404_v44, %v405_v4  ;;  %v409_v44 = vrot.slane %v2239_v2, 2 }
  0x5d   : > { %568 = vrot.lane.b32.xlu2 %v2542_v60, %s2183_s21  ;;  %v2572_v60 = vsel %vm322_vm0, %v399_v32, %v401_v9  ;;  %v407_v9 = vrot.slane %v2266_v15, 2  ;;  %v420_v15 = vrot.slane %v2294_v26, 2 }
  0x5e   : > { %566 = vrot.lane.b32.xlu1 %v2545_v59, %s2183_s21  ;;  %564 = vrot.lane.b32.xlu0 %v2548_v58, %s2183_s21  ;;  %4388 = vst [vmem:[#allocation26_spill] sm:$0xff] %v2572_v60  ;;  %v2575_v59 = vsel %vm322_vm0, %v398_v10, %v399_v32  ;;  %v2587_v32 = vsel %vm403_vm1, %v410_v7, %v412_v8  ;;  %v415_v8 = vrot.slane %v2236_v1, 2 }
  0x5f   : > { %4389 = vst [vmem:[#allocation27_spill] sm:$0xff] %v2575_v59  ;;  %v2590_v10 = vsel %vm403_vm1, %v409_v44, %v410_v7  ;;  %v417_v7 = vrot.slane %v2257_v12, 2  ;;  %v2606_v44 = vsel %vm403_vm1, %v419_v14, %v420_v15  ;;  %v425_v12 = vrot.slane %v2291_v25, 2 }
  0x60   : > { %4390 = vst [vmem:[#allocation28_spill] sm:$0xff] %v2587_v32  ;;  %v427_v14 = vrot.slane %v2331_v40, 2  ;;  %v435_v40 = vrot.slane %v2359_v50, 2 }
  0x61   : > { %4392 = vst [vmem:[#allocation30_spill] sm:$0xff] %v2606_v44 }
  0x65   : > { %606 = vrot.lane.b32.xlu2 %v406_v47, %s2184_s22  ;;  %v408_v47 = vsel %vm403_vm1, %v405_v4, %v407_v9  ;;  %v414_v4 = vrot.slane %v2233_v0, 2  ;;  %v2609_v9 = vsel %vm403_vm1, %v415_v8, %v417_v7  ;;  %v424_v7 = vrot.slane %v2288_v24, 2 }
  0x66   : > { %572 = vrot.lane.b32.xlu1 %v2572_v60, %s2183_s21  ;;  %570 = vrot.lane.b32.xlu0 %v2575_v59, %s2183_s21  ;;  %s211_s21 = scalar_lea.vmem %s4275_s3, %s4682_s16 }
  0x6d   : > { %612 = vrot.lane.b32.xlu2 %v2587_v32, %s2184_s22 }
  0x6e   : > { %610 = vrot.lane.b32.xlu1 %v2590_v10, %s2184_s22  ;;  %608 = vrot.lane.b32.xlu0 %v408_v47, %s2184_s22  ;;  %v2612_v47 = vsel %vm403_vm1, %v414_v4, %v415_v8  ;;  %v422_v8 = vrot.slane %v2297_v27, 2  ;;  %v2627_v4 = vsel %vm403_vm1, %v425_v12, %v427_v14  ;;  %v434_v27 = vrot.slane %v2365_v52, 2 }
  0x6f   : > { %v2600_v59 = vpop.permute.xlu2 %518  ;;  %4394 = vst [vmem:[#allocation32_spill] sm:$0xff] %v2627_v4 }
  0x70   : > { %4391 = vst [vmem:[#allocation29_spill] sm:$0xff] %v2600_v59  ;;  %v2633_v32 = vsel %vm403_vm1, %v420_v15, %v422_v8  ;;  %v432_v15 = vrot.slane %v2325_v38, 2  ;;  %v2649_v8 = vsel %vm403_vm1, %v434_v27, %v435_v40  ;;  %v440_v38 = vrot.slane %v2356_v49, 2 }
  0x71   : > { %4396 = vst [vmem:[#allocation34_spill] sm:$0xff] %v2633_v32  ;;  %v442_v27 = vrot.slane %v2397_v3, 2  ;;  %v450_v3 = vrot.slane %v2425_v23, 2 }
  0x72   : > { %4398 = vst [vmem:[#allocation36_spill] sm:$0xff] %v2649_v8 }
  0x75   : > { %618 = vrot.lane.b32.xlu2 %v2606_v44, %s2184_s22  ;;  %v2630_v44 = vsel %vm403_vm1, %v424_v7, %v425_v12  ;;  %v430_v12 = vrot.slane %v2322_v37, 2  ;;  %v429_v7 = vrot.slane %v2328_v39, 2 }
  0x76   : > { %616 = vrot.lane.b32.xlu1 %v2609_v9, %s2184_s22  ;;  %614 = vrot.lane.b32.xlu0 %v2612_v47, %s2184_s22  ;;  %4395 = vst [vmem:[#allocation33_spill] sm:$0xff] %v2630_v44 }
  0x77   : > { %v2622_v59 = vpop.permute.xlu2 %520 }
  0x78   : > { %4393 = vst [vmem:[#allocation31_spill] sm:$0xff] %v2622_v59  ;;  %v2652_v59 = vsel %vm403_vm1, %v430_v12, %v432_v15  ;;  %v439_v15 = vrot.slane %v2353_v48, 2 }
  0x79   : > { %4399 = vst [vmem:[#allocation37_spill] sm:$0xff] %v2652_v59 }
  0x7d   : > { %624 = vrot.lane.b32.xlu2 %v2627_v4, %s2184_s22  ;;  %v2655_v4 = vsel %vm403_vm1, %v429_v7, %v430_v12  ;;  %v437_v12 = vrot.slane %v2362_v51, 2  ;;  %v449_v51 = vrot.slane %v2431_v30, 2 }
  0x7e   : > { %622 = vrot.lane.b32.xlu1 %v2630_v44, %s2184_s22  ;;  %620 = vrot.lane.b32.xlu0 %v2633_v32, %s2184_s22  ;;  %4400 = vst [vmem:[#allocation38_spill] sm:$0xff] %v2655_v4 }
  0x7f   : > { %v2643_v14 = vpop.permute.xlu2 %526 }
  0x80   : > { %4397 = vst [vmem:[#allocation35_spill] sm:$0xff] %v2643_v14 }
  0x85   : > { %630 = vrot.lane.b32.xlu2 %v2649_v8, %s2184_s22  ;;  %v2674_v8 = vsel %vm403_vm1, %v440_v38, %v442_v27 }
  0x86   : > { %628 = vrot.lane.b32.xlu1 %v2652_v59, %s2184_s22  ;;  %626 = vrot.lane.b32.xlu0 %v2655_v4, %s2184_s22  ;;  %4404 = vst [vmem:[#allocation42_spill] sm:$0xff] %v2674_v8  ;;  %v2677_v59 = vsel %vm403_vm1, %v439_v15, %v440_v38  ;;  %v2680_v4 = vsel %vm403_vm1, %v435_v40, %v437_v12  ;;  %v445_v38 = vrot.slane %v2388_v61, 2  ;;  %v447_v40 = vrot.slane %v2391_v62, 2 }
  0x87   : > { %v2665_v14 = vpop.permute.xlu2 %532  ;;  %4405 = vst [vmem:[#allocation43_spill] sm:$0xff] %v2677_v59  ;;  %v444_v15 = vrot.slane %v2394_v63, 2  ;;  %v455_v62 = vrot.slane %v2422_v20, 2 }
  0x88   : > { %4401 = vst [vmem:[#allocation39_spill] sm:$0xff] %v2665_v14  ;;  %v2669_v7 = vpop.permute.xlu1 %514  ;;  %v2671_v32 = vpop.permute.xlu0 %510 }
  0x89   : > { %4402 = vst [vmem:[#allocation40_spill] sm:$0xff] %v2669_v7  ;;  %v2700_v7 = vsel %vm403_vm1, %v449_v51, %v450_v3  ;;  %v457_v51 = vrot.slane %v2463_v57, 2  ;;  %v465_v57 = vrot.slane %v2491_v11, 2 }
  0x8a   : > { %4403 = vst [vmem:[#allocation41_spill] sm:$0xff] %v2671_v32  ;;  %v2703_v32 = vsel %vm403_vm1, %v445_v38, %v447_v40  ;;  %v454_v40 = vrot.slane %v2419_v19, 2 }
  0x8b   : > { %4409 = vst [vmem:[#allocation47_spill] sm:$0xff] %v2700_v7 }
  0x8c   : > { %4410 = vst [vmem:[#allocation48_spill] sm:$0xff] %v2703_v32 }
  0x8d   : > { %636 = vrot.lane.b32.xlu2 %v2674_v8, %s2184_s22  ;;  %v2706_v8 = vsel %vm403_vm1, %v444_v15, %v445_v38  ;;  %v452_v38 = vrot.slane %v2428_v29, 2  ;;  %v464_v29 = vrot.slane %v2497_v6, 2 }
  0x8e   : > { %634 = vrot.lane.b32.xlu1 %v2677_v59, %s2184_s22  ;;  %632 = vrot.lane.b32.xlu0 %v2680_v4, %s2184_s22  ;;  %4411 = vst [vmem:[#allocation49_spill] sm:$0xff] %v2706_v8 }
  0x8f   : > { %v2690_v27 = vpop.permute.xlu2 %538 }
  0x90   : > { %4406 = vst [vmem:[#allocation44_spill] sm:$0xff] %v2690_v27  ;;  %v2695_v12 = vpop.permute.xlu1 %516  ;;  %v2697_v14 = vpop.permute.xlu0 %512  ;;  %v2725_v27 = vsel %vm403_vm1, %v455_v62, %v457_v51 }
  0x91   : > { %4407 = vst [vmem:[#allocation45_spill] sm:$0xff] %v2695_v12 }
  0x92   : > { %4408 = vst [vmem:[#allocation46_spill] sm:$0xff] %v2697_v14 }
  0x93   : > { %4415 = vst [vmem:[#allocation53_spill] sm:$0xff] %v2725_v27 }
  0x95   : > { %642 = vrot.lane.b32.xlu2 %v2700_v7, %s2184_s22  ;;  %v2728_v7 = vsel %vm403_vm1, %v454_v40, %v455_v62  ;;  %v460_v62 = vrot.slane %v2454_v54, 2  ;;  %v459_v40 = vrot.slane %v2460_v56, 2 }
  0x96   : > { %640 = vrot.lane.b32.xlu1 %v2703_v32, %s2184_s22  ;;  %638 = vrot.lane.b32.xlu0 %v2706_v8, %s2184_s22  ;;  %v2731_v8 = vsel %vm403_vm1, %v450_v3, %v452_v38  ;;  %v462_v3 = vrot.slane %v2457_v55, 2  ;;  %v470_v55 = vrot.slane %v2488_v43, 2 }
  0x97   : > { %v2716_v12 = vpop.permute.xlu2 %544  ;;  %4416 = vst [vmem:[#allocation54_spill] sm:$0xff] %v2731_v8 }
  0x98   : > { %4412 = vst [vmem:[#allocation50_spill] sm:$0xff] %v2716_v12  ;;  %v2720_v15 = vpop.permute.xlu1 %524  ;;  %v2722_v14 = vpop.permute.xlu0 %522  ;;  %v2754_v12 = vsel %vm403_vm1, %v460_v62, %v462_v3  ;;  %v469_v3 = vrot.slane %v2485_v42, 2 }
  0x99   : > { %4413 = vst [vmem:[#allocation51_spill] sm:$0xff] %v2720_v15 }
  0x9a   : > { %4414 = vst [vmem:[#allocation52_spill] sm:$0xff] %v2722_v14  ;;  %v2751_v14 = vsel %vm403_vm1, %v464_v29, %v465_v57  ;;  %v472_v29 = vrot.slane %v2529_v45, 2  ;;  %v479_v45 = vrot.slane %v2557_v34, 2 }
  0x9b   : > { %4420 = vst [vmem:[#allocation58_spill] sm:$0xff] %v2751_v14 }
  0x9c   : > { %4421 = vst [vmem:[#allocation59_spill] sm:$0xff] %v2754_v12 }
  0x9d   : > { %648 = vrot.lane.b32.xlu2 %v2725_v27, %s2184_s22  ;;  %v2757_v27 = vsel %vm403_vm1, %v459_v40, %v460_v62  ;;  %v467_v62 = vrot.slane %v2494_v53, 2  ;;  %v480_v53 = vrot.slane %v2551_v31, 2 }
  0x9e   : > { %646 = vrot.lane.b32.xlu1 %v2728_v7, %s2184_s22  ;;  %644 = vrot.lane.b32.xlu0 %v2731_v8, %s2184_s22  ;;  %4422 = vst [vmem:[#allocation60_spill] sm:$0xff] %v2757_v27 }
  0x9f   : > { %v2741_v51 = vpop.permute.xlu2 %550 }
  0xa0   : > { %4417 = vst [vmem:[#allocation55_spill] sm:$0xff] %v2741_v51  ;;  %v2746_v38 = vpop.permute.xlu1 %530  ;;  %v2748_v15 = vpop.permute.xlu0 %528  ;;  %v2776_v51 = vsel %vm403_vm1, %v470_v55, %v472_v29 }
  0xa1   : > { %4418 = vst [vmem:[#allocation56_spill] sm:$0xff] %v2746_v38 }
  0xa2   : > { %4419 = vst [vmem:[#allocation57_spill] sm:$0xff] %v2748_v15 }
  0xa3   : > { %4426 = vst [vmem:[#allocation64_spill] sm:$0xff] %v2776_v51 }
  0xa5   : > { %654 = vrot.lane.b32.xlu2 %v2751_v14, %s2184_s22  ;;  %v2779_v14 = vsel %vm403_vm1, %v469_v3, %v470_v55  ;;  %v475_v55 = vrot.slane %v2520_v41, 2  ;;  %v474_v3 = vrot.slane %v2526_v17, 2 }
  0xa6   : > { %652 = vrot.lane.b32.xlu1 %v2754_v12, %s2184_s22  ;;  %650 = vrot.lane.b32.xlu0 %v2757_v27, %s2184_s22  ;;  %4427 = vst [vmem:[#allocation65_spill] sm:$0xff] %v2779_v14  ;;  %v2782_v27 = vsel %vm403_vm1, %v465_v57, %v467_v62  ;;  %v477_v57 = vrot.slane %v2523_v18, 2 }
  0xa7   : > { %v2767_v38 = vpop.permute.xlu2 %556  ;;  %4428 = vst [vmem:[#allocation66_spill] sm:$0xff] %v2782_v27 }
  0xa8   : > { %4423 = vst [vmem:[#allocation61_spill] sm:$0xff] %v2767_v38  ;;  %v2771_v40 = vpop.permute.xlu1 %536  ;;  %v2773_v15 = vpop.permute.xlu0 %534  ;;  %v2802_v38 = vsel %vm403_vm1, %v479_v45, %v480_v53  ;;  %v482_v45 = vrot.slane %v2554_v33, 2 }
  0xa9   : > { %4424 = vst [vmem:[#allocation62_spill] sm:$0xff] %v2771_v40  ;;  %v2805_v40 = vsel %vm403_vm1, %v475_v55, %v477_v57 }
  0xaa   : > { %4425 = vst [vmem:[#allocation63_spill] sm:$0xff] %v2773_v15 }
  0xab   : > { %4431 = vst [vmem:[#allocation69_spill] sm:$0xff] %v2805_v40 }
  0xad   : > { %660 = vrot.lane.b32.xlu2 %v2776_v51, %s2184_s22  ;;  %v2808_v51 = vsel %vm403_vm1, %v474_v3, %v475_v55  ;;  %v2824_v55 = vsel %vm403_vm1, %v480_v53, %v482_v45 }
  0xae   : > { %658 = vrot.lane.b32.xlu1 %v2779_v14, %s2184_s22  ;;  %656 = vrot.lane.b32.xlu0 %v2782_v27, %s2184_s22  ;;  %4434 = vst [vmem:[#allocation72_spill] sm:$0xff] %v2824_v55 }
  0xaf   : > { %v2792_v29 = vpop.permute.xlu2 %562 }
  0xb0   : > { %4429 = vst [vmem:[#allocation67_spill] sm:$0xff] %v2792_v29  ;;  %v2797_v62 = vpop.permute.xlu1 %542  ;;  %v2799_v15 = vpop.permute.xlu0 %540 }
  0xb1   : > { %4430 = vst [vmem:[#allocation68_spill] sm:$0xff] %v2797_v62 }
  0xb5   : > { %666 = vrot.lane.b32.xlu2 %v2802_v38, %s2184_s22 }
  0xb6   : > { %664 = vrot.lane.b32.xlu1 %v2805_v40, %s2184_s22  ;;  %662 = vrot.lane.b32.xlu0 %v2808_v51, %s2184_s22 }
  0xb7   : > { %v2816_v18 = vpop.permute.xlu2 %568 }
  0xb8   : > { %4432 = vst [vmem:[#allocation70_spill] sm:$0xff] %v2816_v18  ;;  %v2819_v29 = vpop.permute.xlu1 %548  ;;  %v2821_v57 = vpop.permute.xlu0 %546 }
  0xb9   : > { %4433 = vst [vmem:[#allocation71_spill] sm:$0xff] %v2819_v29 }
  0xbd   : > { %704 = vrot.lane.b32.xlu2 %v2244_v5, %s2185_s23 }
  0xbe   : > { %702 = vrot.lane.b32.xlu1 %v2239_v2, %s2185_s23  ;;  %668 = vrot.lane.b32.xlu0 %v2824_v55, %s2184_s22 }
  0xbf   : > { %v2832_v3 = vpop.permute.xlu2 %606 }
  0xc0   : > { %4435 = vst [vmem:[#allocation73_spill] sm:$0xff] %v2832_v3  ;;  %v2834_v33 = vpop.permute.xlu1 %554  ;;  %v2836_v18 = vpop.permute.xlu0 %552 }
  0xc1   : > { %4436 = vst [vmem:[#allocation74_spill] sm:$0xff] %v2834_v33 }
  0xc5   : > { %710 = vrot.lane.b32.xlu2 %v2300_v28, %s2185_s23 }
  0xc6   : > { %708 = vrot.lane.b32.xlu1 %v2236_v1, %s2185_s23  ;;  %706 = vrot.lane.b32.xlu0 %v2233_v0, %s2185_s23 }
  0xc7   : > { %v2844_v5 = vpop.permute.xlu2 %612 }
  0xc8   : > { %4437 = vst [vmem:[#allocation75_spill] sm:$0xff] %v2844_v5  ;;  %v2846_v2 = vpop.permute.xlu1 %560  ;;  %v2848_v53 = vpop.permute.xlu0 %558 }
  0xc9   : > { %4438 = vst [vmem:[#allocation76_spill] sm:$0xff] %v2846_v2 }
  0xcd   : > { %716 = vrot.lane.b32.xlu2 %v2291_v25, %s2185_s23 }
  0xce   : > { %714 = vrot.lane.b32.xlu1 %v2288_v24, %s2185_s23  ;;  %712 = vrot.lane.b32.xlu0 %v2294_v26, %s2185_s23 }
  0xcf   : > { %v2856_v45 = vpop.permute.xlu2 %618 }
  0xd0   : > { %4439 = vst [vmem:[#allocation77_spill] sm:$0xff] %v2856_v45  ;;  %v2858_v1 = vpop.permute.xlu1 %566  ;;  %v2860_v3 = vpop.permute.xlu0 %564 }
  0xd1   : > { %4440 = vst [vmem:[#allocation78_spill] sm:$0xff] %v2858_v1 }
  0xd2   : > { %4441 = vst [vmem:[#allocation79_spill] sm:$0xff] %v2860_v3 }
  0xd5   : > { %722 = vrot.lane.b32.xlu2 %v2365_v52, %s2185_s23 }
  0xd6   : > { %720 = vrot.lane.b32.xlu1 %v2322_v37, %s2185_s23  ;;  %718 = vrot.lane.b32.xlu0 %v2328_v39, %s2185_s23 }
  0xd7   : > { %v2868_v25 = vpop.permute.xlu2 %624 }
  0xd8   : > { %4442 = vst [vmem:[#allocation80_spill] sm:$0xff] %v2868_v25  ;;  %v2870_v24 = vpop.permute.xlu1 %572  ;;  %v2872_v5 = vpop.permute.xlu0 %570 }
  0xd9   : > { %4443 = vst [vmem:[#allocation81_spill] sm:$0xff] %v2870_v24 }
  0xda   : > { %4444 = vst [vmem:[#allocation82_spill] sm:$0xff] %v2872_v5 }
  0xdd   : > { %728 = vrot.lane.b32.xlu2 %v2356_v49, %s2185_s23 }
  0xde   : > { %726 = vrot.lane.b32.xlu1 %v2353_v48, %s2185_s23  ;;  %724 = vrot.lane.b32.xlu0 %v2359_v50, %s2185_s23 }
  0xdf   : > { %v2880_v45 = vpop.permute.xlu2 %630 }
  0xe0   : > { %4445 = vst [vmem:[#allocation83_spill] sm:$0xff] %v2880_v45  ;;  %v2882_v37 = vpop.permute.xlu1 %610  ;;  %v2884_v39 = vpop.permute.xlu0 %608 }
  0xe1   : > { %4446 = vst [vmem:[#allocation84_spill] sm:$0xff] %v2882_v37 }
  0xe2   : > { %4447 = vst [vmem:[#allocation85_spill] sm:$0xff] %v2884_v39 }
  0xe5   : > { %734 = vrot.lane.b32.xlu2 %v2431_v30, %s2185_s23 }
  0xe6   : > { %732 = vrot.lane.b32.xlu1 %v2388_v61, %s2185_s23  ;;  %730 = vrot.lane.b32.xlu0 %v2394_v63, %s2185_s23 }
  0xe7   : > { %v2892_v25 = vpop.permute.xlu2 %636 }
  0xe8   : > { %v2894_v24 = vpop.permute.xlu1 %616  ;;  %v2896_v1 = vpop.permute.xlu0 %614 }
  0xe9   : > { %4448 = vst [vmem:[#allocation86_spill] sm:$0xff] %v2894_v24 }
  0xea   : > { %4449 = vst [vmem:[#allocation87_spill] sm:$0xff] %v2896_v1 }
  0xed   : > { %740 = vrot.lane.b32.xlu2 %v2422_v20, %s2185_s23 }
  0xee   : > { %738 = vrot.lane.b32.xlu1 %v2419_v19, %s2185_s23  ;;  %736 = vrot.lane.b32.xlu0 %v2425_v23, %s2185_s23 }
  0xef   : > { %v2904_v45 = vpop.permute.xlu2 %642 }
  0xf0   : > { %v2906_v61 = vpop.permute.xlu1 %622  ;;  %v2908_v63 = vpop.permute.xlu0 %620 }
  0xf1   : > { %4450 = vst [vmem:[#allocation88_spill] sm:$0xff] %v2906_v61  ;;  %v2950_v61 = vld [vmem:[%s2230_s20 + $0x180] sm:$0xff] }
  0xf2   : > { %4451 = vst [vmem:[#allocation89_spill] sm:$0xff] %v2908_v63 }
  0xf5   : > { %746 = vrot.lane.b32.xlu2 %v2497_v6, %s2185_s23 }
  0xf6   : > { %744 = vrot.lane.b32.xlu1 %v2454_v54, %s2185_s23  ;;  %742 = vrot.lane.b32.xlu0 %v2460_v56, %s2185_s23 }
  0xf7   : > { %v2916_v24 = vpop.permute.xlu2 %648 }
  0xf8   : > { %v2918_v23 = vpop.permute.xlu1 %628  ;;  %v2920_v1 = vpop.permute.xlu0 %626 }
  0xf9   : > { %4452 = vst [vmem:[#allocation90_spill] sm:$0xff] %v2918_v23 }
  0xfa   : > { %4453 = vst [vmem:[#allocation91_spill] sm:$0xff] %v2920_v1  ;;  %v2947_v1 = vld [vmem:[%s2230_s20 + $0x188] sm:$0xff] }
  0xfd   : > { %752 = vrot.lane.b32.xlu2 %v2488_v43, %s2185_s23 }
  0xfe   : > { %750 = vrot.lane.b32.xlu1 %v2485_v42, %s2185_s23  ;;  %748 = vrot.lane.b32.xlu0 %v2491_v11, %s2185_s23 }
  0xff   : > { %v2928_v54 = vpop.permute.xlu2 %654 }
 0x100   : > { %v2930_v56 = vpop.permute.xlu1 %634  ;;  %v2932_v63 = vpop.permute.xlu0 %632 }
 0x105   : > { %758 = vrot.lane.b32.xlu2 %v2557_v34, %s2185_s23 }
 0x106   : > { %756 = vrot.lane.b32.xlu1 %v2520_v41, %s2185_s23  ;;  %754 = vrot.lane.b32.xlu0 %v2526_v17, %s2185_s23 }
 0x107   : > { %v2940_v23 = vpop.permute.xlu2 %660 }
 0x108   : > { %4454 = vst [vmem:[#allocation92_spill] sm:$0xff] %v2940_v23  ;;  %v2942_v42 = vpop.permute.xlu1 %640  ;;  %v2944_v11 = vpop.permute.xlu0 %638 }
 0x109   : > { %4455 = vst [vmem:[#allocation93_spill] sm:$0xff] %v2942_v42 }
 0x10a   : > { %4456 = vst [vmem:[#allocation94_spill] sm:$0xff] %v2944_v11  ;;  %v4488_v11 = vld [vmem:[#allocation16_spill] sm:$0xff] }
 0x10d   : > { %764 = vrot.lane.b32.xlu2 %v2947_v1, %s2185_s23 }
 0x10e   : > { %762 = vrot.lane.b32.xlu1 %v2950_v61, %s2185_s23  ;;  %760 = vrot.lane.b32.xlu0 %v2551_v31, %s2185_s23 }
 0x10f   : > { %v2958_v17 = vpop.permute.xlu2 %666 }
 0x110   : > { %4457 = vst [vmem:[#allocation95_spill] sm:$0xff] %v2958_v17  ;;  %v2960_v41 = vpop.permute.xlu1 %646  ;;  %v2962_v37 = vpop.permute.xlu0 %644 }
 0x111   : > { %4458 = vst [vmem:[#allocation96_spill] sm:$0xff] %v2960_v41 }
 0x112   : > { %4459 = vst [vmem:[#allocation97_spill] sm:$0xff] %v2962_v37 }
 0x115   : > { %802 = vrot.lane.b32.xlu2 %v2260_v13, %s2186_s24 }
 0x116   : > { %800 = vrot.lane.b32.xlu1 %v2284_v22, %s2186_s24  ;;  %798 = vrot.lane.b32.xlu0 %v2271_v16, %s2186_s24 }
 0x117   : > { %v2970_v39 = vpop.permute.xlu2 %704 }
 0x118   : > { %4460 = vst [vmem:[#allocation98_spill] sm:$0xff] %v2970_v39  ;;  %v2972_v2 = vpop.permute.xlu1 %652  ;;  %v2974_v31 = vpop.permute.xlu0 %650  ;;  %v4466_v39 = vld [vmem:[#allocation5_spill] sm:$0xff] }
 0x119   : > { %4461 = vst [vmem:[#allocation99_spill] sm:$0xff] %v2972_v2 }
 0x11a   : > { %4462 = vst [vmem:[#allocation100_spill] sm:$0xff] %v2974_v31  ;;  %v4467_v31 = vld [vmem:[#allocation2_spill] sm:$0xff] }
 0x11d   : > { %808 = vrot.lane.b32.xlu2 %v2316_v35, %s2186_s24 }
 0x11e   : > { %806 = vrot.lane.b32.xlu1 %v2319_v36, %s2186_s24  ;;  %804 = vrot.lane.b32.xlu0 %v2281_v21, %s2186_s24 }
 0x11f   : > { %v2982_v33 = vpop.permute.xlu2 %710 }
 0x120   : > { %4463 = vst [vmem:[#allocation101_spill] sm:$0xff] %v2982_v33  ;;  %v2984_v22 = vpop.permute.xlu1 %658  ;;  %v2986_v16 = vpop.permute.xlu0 %656  ;;  %v4471_v33 = vld [vmem:[#allocation7_spill] sm:$0xff] }
 0x121   : > { %4464 = vst [vmem:[#allocation102_spill] sm:$0xff] %v2984_v22 }
 0x122   : > { %4465 = vst [vmem:[#allocation103_spill] sm:$0xff] %v2986_v16  ;;  %v4472_v16 = vld [vmem:[#allocation8_spill] sm:$0xff] }
 0x125   : > { %814 = vrot.lane.b32.xlu2 %v2347_v46, %s2186_s24  ;;  %v4473_v46 = vld [vmem:[#allocation3_spill] sm:$0xff] }
 0x126   : > { %812 = vrot.lane.b32.xlu1 %v4466_v39, %s2186_s24  ;;  %810 = vrot.lane.b32.xlu0 %v4467_v31, %s2186_s24 }
 0x127   : > { %v2994_v2 = vpop.permute.xlu2 %716 }
 0x128   : > { %4468 = vst [vmem:[#allocation2_spill] sm:$0xff] %v2994_v2  ;;  %v2996_v37 = vpop.permute.xlu1 %664  ;;  %v2998_v41 = vpop.permute.xlu0 %662  ;;  %v4477_v2 = vld [vmem:[#allocation10_spill] sm:$0xff] }
 0x129   : > { %4469 = vst [vmem:[#allocation104_spill] sm:$0xff] %v2996_v37  ;;  %v4479_v37 = vld [vmem:[#allocation6_spill] sm:$0xff] }
 0x12a   : > { %4470 = vst [vmem:[#allocation105_spill] sm:$0xff] %v2998_v41  ;;  %v4478_v41 = vld [vmem:[#allocation11_spill] sm:$0xff] }
 0x12d   : > { %820 = vrot.lane.b32.xlu2 %v4471_v33, %s2186_s24 }
 0x12e   : > { %818 = vrot.lane.b32.xlu1 %v4472_v16, %s2186_s24  ;;  %816 = vrot.lane.b32.xlu0 %v4473_v46, %s2186_s24 }
 0x12f   : > { %v3006_v22 = vpop.permute.xlu2 %722 }
 0x130   : > { %4474 = vst [vmem:[#allocation7_spill] sm:$0xff] %v3006_v22  ;;  %v3008_v39 = vpop.permute.xlu1 %702  ;;  %v3010_v17 = vpop.permute.xlu0 %668  ;;  %v4482_v22 = vld [vmem:[#allocation13_spill] sm:$0xff] }
 0x131   : > { %4475 = vst [vmem:[#allocation8_spill] sm:$0xff] %v3008_v39  ;;  %v4483_v39 = vld [vmem:[#allocation14_spill] sm:$0xff] }
 0x132   : > { %4476 = vst [vmem:[#allocation106_spill] sm:$0xff] %v3010_v17 }
 0x135   : > { %826 = vrot.lane.b32.xlu2 %v4477_v2, %s2186_s24  ;;  %v4484_v2 = vld [vmem:[#allocation9_spill] sm:$0xff] }
 0x136   : > { %824 = vrot.lane.b32.xlu1 %v4478_v41, %s2186_s24  ;;  %822 = vrot.lane.b32.xlu0 %v4479_v37, %s2186_s24 }
 0x137   : > { %v3018_v29 = vpop.permute.xlu2 %728 }
 0x138   : > { %v3020_v34 = vpop.permute.xlu1 %708  ;;  %v3022_v46 = vpop.permute.xlu0 %706 }
 0x139   : > { %4480 = vst [vmem:[#allocation6_spill] sm:$0xff] %v3020_v34  ;;  %v4489_v34 = vld [vmem:[#allocation17_spill] sm:$0xff] }
 0x13a   : > { %4481 = vst [vmem:[#allocation107_spill] sm:$0xff] %v3022_v46 }
 0x13d   : > { %832 = vrot.lane.b32.xlu2 %v4482_v22, %s2186_s24  ;;  %v4490_v22 = vld [vmem:[#allocation12_spill] sm:$0xff] }
 0x13e   : > { %830 = vrot.lane.b32.xlu1 %v4483_v39, %s2186_s24  ;;  %828 = vrot.lane.b32.xlu0 %v4484_v2, %s2186_s24 }
 0x13f   : > { %v3030_v17 = vpop.permute.xlu2 %734 }
 0x140   : > { %4485 = vst [vmem:[#allocation108_spill] sm:$0xff] %v3030_v17  ;;  %v3032_v41 = vpop.permute.xlu1 %714  ;;  %v3034_v5 = vpop.permute.xlu0 %712 }
 0x141   : > { %4486 = vst [vmem:[#allocation109_spill] sm:$0xff] %v3032_v41  ;;  %v4494_v41 = vld [vmem:[#allocation20_spill] sm:$0xff] }
 0x142   : > { %4487 = vst [vmem:[#allocation110_spill] sm:$0xff] %v3034_v5  ;;  %v4495_v5 = vld [vmem:[#allocation21_spill] sm:$0xff] }
 0x145   : > { %838 = vrot.lane.b32.xlu2 %v4488_v11, %s2186_s24  ;;  %v4496_v11 = vld [vmem:[#allocation15_spill] sm:$0xff] }
 0x146   : > { %836 = vrot.lane.b32.xlu1 %v4489_v34, %s2186_s24  ;;  %834 = vrot.lane.b32.xlu0 %v4490_v22, %s2186_s24 }
 0x147   : > { %v3042_v39 = vpop.permute.xlu2 %740 }
 0x148   : > { %4491 = vst [vmem:[#allocation12_spill] sm:$0xff] %v3042_v39  ;;  %v3044_v46 = vpop.permute.xlu1 %720  ;;  %v3046_v2 = vpop.permute.xlu0 %718  ;;  %v4500_v39 = vld [vmem:[#allocation23_spill] sm:$0xff] }
 0x149   : > { %4492 = vst [vmem:[#allocation111_spill] sm:$0xff] %v3044_v46 }
 0x14a   : > { %4493 = vst [vmem:[#allocation112_spill] sm:$0xff] %v3046_v2 }
 0x14d   : > { %844 = vrot.lane.b32.xlu2 %v4494_v41, %s2186_s24  ;;  %v4501_v41 = vld [vmem:[#allocation19_spill] sm:$0xff] }
 0x14e   : > { %842 = vrot.lane.b32.xlu1 %v4495_v5, %s2186_s24  ;;  %840 = vrot.lane.b32.xlu0 %v4496_v11, %s2186_s24  ;;  %v3073_v11 = vld [vmem:[%s2230_s20 + $0x190] sm:$0x3] }
 0x14f   : > { %v3054_v17 = vpop.permute.xlu2 %746 }
 0x150   : > { %4497 = vst [vmem:[#allocation113_spill] sm:$0xff] %v3054_v17  ;;  %v3056_v42 = vpop.permute.xlu1 %726  ;;  %v3058_v34 = vpop.permute.xlu0 %724 }
 0x151   : > { %4498 = vst [vmem:[#allocation114_spill] sm:$0xff] %v3056_v42  ;;  %v4503_v42 = vld [vmem:[#allocation27_spill] sm:$0xff] }
 0x152   : > { %4499 = vst [vmem:[#allocation115_spill] sm:$0xff] %v3058_v34  ;;  %v4504_v34 = vld [vmem:[#allocation22_spill] sm:$0xff] }
 0x155   : > { %850 = vrot.lane.b32.xlu2 %v4500_v39, %s2186_s24  ;;  %v490_v39 = vrot.slane %v3073_v11, 1 }
 0x156   : > { %848 = vrot.lane.b32.xlu1 %v2548_v58, %s2186_s24  ;;  %846 = vrot.lane.b32.xlu0 %v4501_v41, %s2186_s24  ;;  %v488_v41 = vrot.slane %v2947_v1, 1 }
 0x157   : > { %v3066_v46 = vpop.permute.xlu2 %752 }
 0x158   : > { %4502 = vst [vmem:[#allocation116_spill] sm:$0xff] %v3066_v46  ;;  %v3068_v5 = vpop.permute.xlu1 %732  ;;  %v3070_v2 = vpop.permute.xlu0 %730  ;;  %v487_v46 = vrot.slane %v2950_v61, 1 }
 0x15d   : > { %856 = vrot.lane.b32.xlu2 %v2572_v60, %s2186_s24  ;;  %v3091_v60 = vsel %vm322_vm0, %v488_v41, %v490_v39 }
 0x15e   : > { %854 = vrot.lane.b32.xlu1 %v4503_v42, %s2186_s24  ;;  %852 = vrot.lane.b32.xlu0 %v4504_v34, %s2186_s24  ;;  %4507 = vst [vmem:[#allocation119_spill] sm:$0xff] %v3091_v60  ;;  %v3094_v42 = vsel %vm322_vm0, %v487_v46, %v488_v41  ;;  %v4511_v46 = vld [vmem:[#allocation28_spill] sm:$0xff] }
 0x15f   : > { %v3081_v58 = vpop.permute.xlu2 %758  ;;  %4508 = vst [vmem:[#allocation120_spill] sm:$0xff] %v3094_v42 }
 0x160   : > { %4505 = vst [vmem:[#allocation117_spill] sm:$0xff] %v3081_v58  ;;  %v3086_v17 = vpop.permute.xlu1 %738  ;;  %v3088_v23 = vpop.permute.xlu0 %736 }
 0x161   : > { %4506 = vst [vmem:[#allocation118_spill] sm:$0xff] %v3088_v23 }
 0x165   : > { %894 = vrot.lane.b32.xlu2 %v2590_v10, %s2187_s25 }
 0x166   : > { %860 = vrot.lane.b32.xlu1 %v3091_v60, %s2186_s24  ;;  %858 = vrot.lane.b32.xlu0 %v3094_v42, %s2186_s24  ;;  %v4514_v60 = vld [vmem:[#allocation34_spill] sm:$0xff]  ;;  %s214_s24 = scalar_lea.vmem %s4276_s4, %s4682_s16 }
 0x167   : > { %v3102_v34 = vpop.permute.xlu2 %764  ;;  %v4515_v42 = vld [vmem:[#allocation30_spill] sm:$0xff] }
 0x168   : > { %4509 = vst [vmem:[#allocation121_spill] sm:$0xff] %v3102_v34  ;;  %v3104_v58 = vpop.permute.xlu1 %744  ;;  %v3106_v23 = vpop.permute.xlu0 %742 }
 0x169   : > { %4510 = vst [vmem:[#allocation122_spill] sm:$0xff] %v3106_v23 }
 0x16d   : > { %900 = vrot.lane.b32.xlu2 %v2609_v9, %s2187_s25 }
 0x16e   : > { %898 = vrot.lane.b32.xlu1 %v2612_v47, %s2187_s25  ;;  %896 = vrot.lane.b32.xlu0 %v4511_v46, %s2187_s25 }
 0x16f   : > { %v3114_v10 = vpop.permute.xlu2 %802 }
 0x170   : > { %4512 = vst [vmem:[#allocation28_spill] sm:$0xff] %v3114_v10  ;;  %v3116_v39 = vpop.permute.xlu1 %750  ;;  %v3118_v41 = vpop.permute.xlu0 %748  ;;  %v4518_v10 = vld [vmem:[#allocation37_spill] sm:$0xff] }
 0x171   : > { %4513 = vst [vmem:[#allocation123_spill] sm:$0xff] %v3118_v41  ;;  %v4519_v41 = vld [vmem:[#allocation38_spill] sm:$0xff] }
 0x175   : > { %906 = vrot.lane.b32.xlu2 %v2630_v44, %s2187_s25  ;;  %v4520_v44 = vld [vmem:[#allocation32_spill] sm:$0xff] }
 0x176   : > { %904 = vrot.lane.b32.xlu1 %v4514_v60, %s2187_s25  ;;  %902 = vrot.lane.b32.xlu0 %v4515_v42, %s2187_s25 }
 0x177   : > { %v3126_v34 = vpop.permute.xlu2 %808 }
 0x178   : > { %4516 = vst [vmem:[#allocation34_spill] sm:$0xff] %v3126_v34  ;;  %v3128_v23 = vpop.permute.xlu1 %756  ;;  %v3130_v46 = vpop.permute.xlu0 %754  ;;  %v4524_v34 = vld [vmem:[#allocation36_spill] sm:$0xff] }
 0x179   : > { %4517 = vst [vmem:[#allocation30_spill] sm:$0xff] %v3130_v46 }
 0x17d   : > { %912 = vrot.lane.b32.xlu2 %v4518_v10, %s2187_s25 }
 0x17e   : > { %910 = vrot.lane.b32.xlu1 %v4519_v41, %s2187_s25  ;;  %908 = vrot.lane.b32.xlu0 %v4520_v44, %s2187_s25 }
 0x17f   : > { %v3138_v62 = vpop.permute.xlu2 %814 }
 0x180   : > { %4521 = vst [vmem:[#allocation124_spill] sm:$0xff] %v3138_v62  ;;  %v3140_v43 = vpop.permute.xlu1 %762  ;;  %v3142_v3 = vpop.permute.xlu0 %760  ;;  %v4528_v62 = vld [vmem:[#allocation49_spill] sm:$0xff] }
 0x181   : > { %4522 = vst [vmem:[#allocation125_spill] sm:$0xff] %v3140_v43 }
 0x182   : > { %4523 = vst [vmem:[#allocation126_spill] sm:$0xff] %v3142_v3  ;;  %v4529_v3 = vld [vmem:[#allocation42_spill] sm:$0xff] }
 0x185   : > { %918 = vrot.lane.b32.xlu2 %v2677_v59, %s2187_s25 }
 0x186   : > { %916 = vrot.lane.b32.xlu1 %v2680_v4, %s2187_s25  ;;  %914 = vrot.lane.b32.xlu0 %v4524_v34, %s2187_s25 }
 0x187   : > { %v3150_v10 = vpop.permute.xlu2 %820 }
 0x188   : > { %4525 = vst [vmem:[#allocation36_spill] sm:$0xff] %v3150_v10  ;;  %v3152_v41 = vpop.permute.xlu1 %800  ;;  %v3154_v46 = vpop.permute.xlu0 %798  ;;  %v4532_v10 = vld [vmem:[#allocation47_spill] sm:$0xff] }
 0x189   : > { %4526 = vst [vmem:[#allocation127_spill] sm:$0xff] %v3152_v41 }
 0x18a   : > { %4527 = vst [vmem:[#allocation128_spill] sm:$0xff] %v3154_v46 }
 0x18d   : > { %924 = vrot.lane.b32.xlu2 %v2703_v32, %s2187_s25 }
 0x18e   : > { %922 = vrot.lane.b32.xlu1 %v4528_v62, %s2187_s25  ;;  %920 = vrot.lane.b32.xlu0 %v4529_v3, %s2187_s25 }
 0x18f   : > { %v3162_v44 = vpop.permute.xlu2 %826 }
 0x190   : > { %v3164_v43 = vpop.permute.xlu1 %806  ;;  %v3166_v59 = vpop.permute.xlu0 %804 }
 0x191   : > { %4530 = vst [vmem:[#allocation129_spill] sm:$0xff] %v3164_v43  ;;  %v4535_v43 = vld [vmem:[#allocation60_spill] sm:$0xff] }
 0x192   : > { %4531 = vst [vmem:[#allocation130_spill] sm:$0xff] %v3166_v59  ;;  %v4536_v59 = vld [vmem:[#allocation53_spill] sm:$0xff] }
 0x195   : > { %930 = vrot.lane.b32.xlu2 %v2728_v7, %s2187_s25 }
 0x196   : > { %928 = vrot.lane.b32.xlu1 %v2731_v8, %s2187_s25  ;;  %926 = vrot.lane.b32.xlu0 %v4532_v10, %s2187_s25 }
 0x197   : > { %v3174_v32 = vpop.permute.xlu2 %832 }
 0x198   : > { %v3176_v62 = vpop.permute.xlu1 %812  ;;  %v3178_v41 = vpop.permute.xlu0 %810 }
 0x199   : > { %4533 = vst [vmem:[#allocation131_spill] sm:$0xff] %v3176_v62  ;;  %v4539_v62 = vld [vmem:[#allocation58_spill] sm:$0xff] }
 0x19a   : > { %4534 = vst [vmem:[#allocation132_spill] sm:$0xff] %v3178_v41 }
 0x19d   : > { %936 = vrot.lane.b32.xlu2 %v2754_v12, %s2187_s25 }
 0x19e   : > { %934 = vrot.lane.b32.xlu1 %v4535_v43, %s2187_s25  ;;  %932 = vrot.lane.b32.xlu0 %v4536_v59, %s2187_s25 }
 0x19f   : > { %v3186_v46 = vpop.permute.xlu2 %838 }
 0x1a0   : > { %v3188_v8 = vpop.permute.xlu1 %818  ;;  %v3190_v10 = vpop.permute.xlu0 %816 }
 0x1a1   : > { %4537 = vst [vmem:[#allocation53_spill] sm:$0xff] %v3188_v8  ;;  %v492_v8 = vrot.slane %v2950_v61, 2  ;;  %v495_v61 = vrot.slane %v3073_v11, 2 }
 0x1a2   : > { %4538 = vst [vmem:[#allocation133_spill] sm:$0xff] %v3190_v10  ;;  %v493_v10 = vrot.slane %v2947_v1, 2 }
 0x1a5   : > { %942 = vrot.lane.b32.xlu2 %v2779_v14, %s2187_s25  ;;  %v4541_v14 = vld [vmem:[#allocation64_spill] sm:$0xff] }
 0x1a6   : > { %940 = vrot.lane.b32.xlu1 %v2782_v27, %s2187_s25  ;;  %938 = vrot.lane.b32.xlu0 %v4539_v62, %s2187_s25 }
 0x1a7   : > { %v3198_v41 = vpop.permute.xlu2 %844 }
 0x1a8   : > { %v3200_v12 = vpop.permute.xlu1 %824  ;;  %v3202_v43 = vpop.permute.xlu0 %822 }
 0x1a9   : > { %4540 = vst [vmem:[#allocation134_spill] sm:$0xff] %v3202_v43  ;;  %v3217_v43 = vsel %vm403_vm1, %v492_v8, %v493_v10  ;;  %v3231_v8 = vsel %vm403_vm1, %v493_v10, %v495_v61  ;;  %v3246_v10 = vld [vmem:[%s2230_s20 + $0x38] sm:$0xff] }
 0x1aa   : > { %4542 = vst [vmem:[#allocation135_spill] sm:$0xff] %v3217_v43 }
 0x1ab   : > { %4543 = vst [vmem:[#allocation136_spill] sm:$0xff] %v3231_v8 }
 0x1ad   : > { %948 = vrot.lane.b32.xlu2 %v2805_v40, %s2187_s25 }
 0x1ae   : > { %946 = vrot.lane.b32.xlu1 %v2808_v51, %s2187_s25  ;;  %944 = vrot.lane.b32.xlu0 %v4541_v14, %s2187_s25 }
 0x1af   : > { %v3212_v27 = vpop.permute.xlu2 %850 }
 0x1b0   : > { %v3214_v62 = vpop.permute.xlu1 %830  ;;  %v829_v3 = vpop.permute.xlu0 %828 }
 0x1b5   : > { %954 = vrot.lane.b32.xlu2 %v3217_v43, %s2187_s25 }
 0x1b6   : > { %952 = vrot.lane.b32.xlu1 %v2824_v55, %s2187_s25  ;;  %950 = vrot.lane.b32.xlu0 %v2802_v38, %s2187_s25 }
 0x1b7   : > { %v3225_v1 = vpop.permute.xlu2 %856 }
 0x1b8   : > { %v3228_v14 = vpop.permute.xlu1 %836  ;;  %v835_v40 = vpop.permute.xlu0 %834 }
 0x1bd   : > { %1086 = vrot.lane.b32.xlu2 %v2260_v13, %s2188_s26 }
 0x1be   : > { %990 = vrot.lane.b32.xlu1 %v2233_v0, %s2189_s27  ;;  %956 = vrot.lane.b32.xlu0 %v3231_v8, %s2187_s25 }
 0x1bf   : > { %v3239_v43 = vpop.permute.xlu2 %894 }
 0x1c0   : > { %v3241_v11 = vpop.permute.xlu1 %842  ;;  %v841_v55 = vpop.permute.xlu0 %840 }
 0x1c5   : > { %1088 = vrot.lane.b32.xlu2 %v2281_v21, %s2188_s26 }
 0x1c6   : > { %992 = vrot.lane.b32.xlu1 %v3246_v10, %s2189_s27  ;;  %1182 = vrot.lane.b32.xlu0 %v2612_v47, %s2190_s28 }
 0x1c7   : > { %v3252_v0 = vpop.permute.xlu2 %900 }
 0x1c8   : > { %v3254_v13 = vpop.permute.xlu1 %848  ;;  %v3256_v61 = vpop.permute.xlu0 %846 }
 0x1cd   : > { %1006 = vrot.lane.b32.xlu2 %v2365_v52, %s2189_s27 }
 0x1ce   : > { %994 = vrot.lane.b32.xlu1 %v2300_v28, %s2189_s27  ;;  %1184 = vrot.lane.b32.xlu0 %v2609_v9, %s2190_s28 }
 0x1cf   : > { %v3264_v21 = vpop.permute.xlu2 %906 }
 0x1d0   : > { %4544 = vst [vmem:[#allocation137_spill] sm:$0xff] %v3264_v21  ;;  %v3266_v8 = vpop.permute.xlu1 %854  ;;  %v3268_v47 = vpop.permute.xlu0 %852  ;;  %v1294_v21 = vsel %vm1278_vm2, %v2356_v49, %v2799_v15 }
 0x1d5   : > { %1186 = vrot.lane.b32.xlu2 %v4515_v42, %s2190_s28 }
 0x1d6   : > { %1102 = vrot.lane.b32.xlu1 %v4472_v16, %s2188_s26  ;;  %1090 = vrot.lane.b32.xlu0 %v2319_v36, %s2188_s26 }
 0x1d7   : > { %v3276_v52 = vpop.permute.xlu2 %912 }
 0x1d8   : > { %v3278_v28 = vpop.permute.xlu1 %860  ;;  %v3280_v9 = vpop.permute.xlu0 %858 }
 0x1dd   : > { %1008 = vrot.lane.b32.xlu2 %v2359_v50, %s2189_s27  ;;  %v1327_v50 = vsel %vm1311_vm3, %v1294_v21, %v2892_v25 }
 0x1de   : > { %996 = vrot.lane.b32.xlu1 %v2294_v26, %s2189_s27  ;;  %1198 = vrot.lane.b32.xlu0 %v4524_v34, %s2190_s28  ;;  %v1360_v26 = vsel %vm1344_vm4, %v1327_v50, %v3068_v5  ;;  %v1297_v5 = vsel %vm1278_vm2, %v2431_v30, %v2821_v57 }
 0x1df   : > { %v3288_v42 = vpop.permute.xlu2 %918  ;;  %v1393_v34 = vsel %vm1377_vm5, %v1360_v26, %v829_v3  ;;  %v2144_v26 = vld [vmem:[%s2230_s20 + $0xa8] sm:$0xff] }
 0x1e0   : > { %v3290_v16 = vpop.permute.xlu1 %898  ;;  %v3292_v36 = vpop.permute.xlu0 %896 }
 0x1e5   : > { %1022 = vrot.lane.b32.xlu2 %v2419_v19, %s2189_s27 }
 0x1e6   : > { %1104 = vrot.lane.b32.xlu1 %v4471_v33, %s2188_s26  ;;  %1092 = vrot.lane.b32.xlu0 %v2316_v35, %s2188_s26  ;;  %v1330_v33 = vsel %vm1311_vm3, %v1297_v5, %v2904_v45  ;;  %v1300_v45 = vsel %vm1278_vm2, %v2422_v20, %v2836_v18  ;;  %v2145_v5 = vld [vmem:[%s2230_s20 + $0x98] sm:$0xff] }
 0x1e7   : > { %v925_v49 = vpop.permute.xlu2 %924  ;;  %v1363_v35 = vsel %vm1344_vm4, %v1330_v33, %v3086_v17 }
 0x1e8   : > { %v3308_v15 = vpop.permute.xlu1 %904  ;;  %v3311_v25 = vsel %vm1410_vm6, %v1393_v34, %v925_v49  ;;  %v3313_v19 = vpop.permute.xlu0 %902  ;;  %v1396_v3 = vsel %vm1377_vm5, %v1363_v35, %v835_v40  ;;  %v3346_v40 = vld [vmem:[%s2230_s20 + $0x60] sm:$0xff]  ;;  %v4545_v34 = vld [vmem:[#allocation44_spill] sm:$0xff] }
 0x1e9   : > { %v1293_v49 = vsel %vm1278_vm2, %v2144_v26, %v4545_v34  ;;  %v4551_v26 = vld [vmem:[#allocation92_spill] sm:$0xff] }
 0x1ea   : > { %v1326_v35 = vsel %vm1311_vm3, %v1293_v49, %v2930_v56  ;;  %v4552_v49 = vld [vmem:[#allocation17_spill] sm:$0xff] }
 0x1ed   : > { %1118 = vrot.lane.b32.xlu2 %v4490_v22, %s2188_s26 }
 0x1ee   : > { %1200 = vrot.lane.b32.xlu1 %v2680_v4, %s2190_s28  ;;  %1188 = vrot.lane.b32.xlu0 %v4514_v60, %s2190_s28  ;;  %v1333_v4 = vsel %vm1311_vm3, %v1300_v45, %v2916_v24  ;;  %v4547_v45 = vld [vmem:[#allocation79_spill] sm:$0xff] }
 0x1ef   : > { %v931_v21 = vpop.permute.xlu2 %930  ;;  %v1366_v60 = vsel %vm1344_vm4, %v1333_v4, %v3104_v58  ;;  %v1303_v58 = vsel %vm1278_vm2, %v2497_v6, %v2848_v53 }
 0x1f0   : > { %v3329_v50 = vpop.permute.xlu1 %910  ;;  %v3332_v30 = vsel %vm1410_vm6, %v1396_v3, %v931_v21  ;;  %v3334_v57 = vpop.permute.xlu0 %908  ;;  %v1399_v17 = vsel %vm1377_vm5, %v1366_v60, %v841_v55  ;;  %v1336_v33 = vsel %vm1311_vm3, %v1303_v58, %v2928_v54  ;;  %v1359_v54 = vsel %vm1344_vm4, %v1326_v35, %v3070_v2  ;;  %v3406_v60 = vld [vmem:[%s2230_s20 + $0xc8] sm:$0xff] }
 0x1f1   : > { %v1369_v53 = vsel %vm1344_vm4, %v1336_v33, %v3116_v39  ;;  %v1392_v39 = vsel %vm1377_vm5, %v1359_v54, %v3162_v44  ;;  %v4549_v44 = vld [vmem:[#allocation50_spill] sm:$0xff] }
 0x1f5   : > { %1010 = vrot.lane.b32.xlu2 %v2353_v48, %s2189_s27 }
 0x1f6   : > { %998 = vrot.lane.b32.xlu1 %v3346_v40, %s2189_s27  ;;  %1214 = vrot.lane.b32.xlu0 %v2728_v7, %s2190_s28  ;;  %v4546_v7 = vld [vmem:[#allocation62_spill] sm:$0xff] }
 0x1f7   : > { %v937_v18 = vpop.permute.xlu2 %936  ;;  %v1292_v55 = vsel %vm1278_vm2, %v2145_v5, %v4546_v7  ;;  %v4553_v5 = vld [vmem:[#allocation93_spill] sm:$0xff] }
 0x1f8   : > { %v3353_v22 = vpop.permute.xlu1 %916  ;;  %v3356_v24 = vsel %vm1410_vm6, %v1399_v17, %v937_v18  ;;  %v3358_v48 = vpop.permute.xlu0 %914  ;;  %v1325_v6 = vsel %vm1311_vm3, %v1292_v55, %v2932_v63  ;;  %v1402_v63 = vsel %vm1377_vm5, %v1369_v53, %v3256_v61  ;;  %v4548_v61 = vld [vmem:[#allocation18_spill] sm:$0xff]  ;;  %v4550_v18 = vld [vmem:[#allocation68_spill] sm:$0xff]  ;;  %v4556_v53 = vld [vmem:[#allocation33_spill] sm:$0xff] }
 0x1f9   : > { %v1306_v4 = vsel %vm1278_vm2, %v4548_v61, %v4547_v45  ;;  %v3412_v17 = vld [vmem:[%s2230_s20 + $0xc0] sm:$0xff] }
 0x1fa   : > { %v1295_v58 = vsel %vm1278_vm2, %v3412_v17, %v4550_v18  ;;  %v1339_v34 = vsel %vm1311_vm3, %v1306_v4, %v4551_v26  ;;  %v4554_v55 = vld [vmem:[#allocation94_spill] sm:$0xff] }
 0x1fb   : > { %v1328_v33 = vsel %vm1311_vm3, %v1295_v58, %v4554_v55  ;;  %v1372_v35 = vsel %vm1344_vm4, %v1339_v34, %v3128_v23  ;;  %v4561_v58 = vld [vmem:[#allocation55_spill] sm:$0xff]  ;;  %v3457_v26 = vld [vmem:[%s2230_s20 + $0xe0] sm:$0xff]  ;;  %v2150_v55 = vld [vmem:[%s2230_s20 + $0xb0] sm:$0xff] }
 0x1fc   : > { %v4562_v34 = vld [vmem:[#allocation71_spill] sm:$0xff] }
 0x1fd   : > { %1024 = vrot.lane.b32.xlu2 %v2422_v20, %s2189_s27  ;;  %v1358_v20 = vsel %vm1344_vm4, %v1325_v6, %v3018_v29  ;;  %v4555_v6 = vld [vmem:[#allocation43_spill] sm:$0xff] }
 0x1fe   : > { %1106 = vrot.lane.b32.xlu1 %v4479_v37, %s2188_s26  ;;  %1094 = vrot.lane.b32.xlu0 %v4467_v31, %s2188_s26  ;;  %v1391_v37 = vsel %vm1377_vm5, %v1358_v20, %v3200_v12  ;;  %v1296_v12 = vsel %vm1278_vm2, %v3406_v60, %v4549_v44  ;;  %v4557_v20 = vld [vmem:[#allocation108_spill] sm:$0xff] }
 0x1ff   : > { %v943_v56 = vpop.permute.xlu2 %942  ;;  %v1329_v7 = vsel %vm1311_vm3, %v1296_v12, %v4553_v5  ;;  %v1361_v54 = vsel %vm1344_vm4, %v1328_v33, %v4557_v20  ;;  %v4560_v12 = vld [vmem:[#allocation25_spill] sm:$0xff]  ;;  %v4563_v5 = vld [vmem:[#allocation95_spill] sm:$0xff]  ;;  %v4564_v33 = vld [vmem:[#allocation96_spill] sm:$0xff] }
 0x200   : > { %v923_v3 = vpop.permute.xlu1 %922  ;;  %v3394_v21 = vsel %vm1410_vm6, %v1402_v63, %v943_v56  ;;  %v921_v31 = vpop.permute.xlu0 %920  ;;  %v4558_v63 = vld [vmem:[#allocation118_spill] sm:$0xff]  ;;  %v4566_v20 = vld [vmem:[#allocation125_spill] sm:$0xff] }
 0x201   : > { %v3397_v29 = vsel %vm1410_vm6, %v1392_v39, %v923_v3  ;;  %v3400_v2 = vsel %vm1410_vm6, %v1391_v37, %v921_v31  ;;  %v1362_v56 = vsel %vm1344_vm4, %v1329_v7, %v4558_v63  ;;  %v1405_v39 = vsel %vm1377_vm5, %v1372_v35, %v3268_v47  ;;  %v4559_v47 = vld [vmem:[#allocation82_spill] sm:$0xff]  ;;  %v3473_v63 = vld [vmem:[%s2230_s20 + $0x68] sm:$0xff] }
 0x202   : > { %v1395_v23 = vsel %vm1377_vm5, %v1362_v56, %v3174_v32  ;;  %v1394_v3 = vsel %vm1377_vm5, %v1361_v54, %v3214_v62  ;;  %v1309_v18 = vsel %vm1278_vm2, %v4560_v12, %v4559_v47  ;;  %v2148_v32 = vld [vmem:[%s2230_s20 + $0xf0] sm:$0xff] }
 0x203   : > { %v1299_v62 = vsel %vm1278_vm2, %v2148_v32, %v4561_v58  ;;  %v1342_v7 = vsel %vm1311_vm3, %v1309_v18, %v4563_v5  ;;  %v4567_v56 = vld [vmem:[#allocation12_spill] sm:$0xff]  ;;  %v273_v32 = vld [vmem:[%s4273_s1 + $0x20] sm:$0xf]  ;;  %v2153_v5 = vld [vmem:[%s2230_s20 + $0x108] sm:$0xff] }
 0x204   : > { %v1332_v35 = vsel %vm1311_vm3, %v1299_v62, %v4564_v33  ;;  %v1375_v54 = vsel %vm1344_vm4, %v1342_v7, %v4566_v20  ;;  %2074 = vmatpush.msk.msra.mxu0 %vm1639_vm7, %v273_v32  ;;  %2110 = vmatpush.msk.msra.mxu1 %vm1639_vm7, %v273_v32  ;;  %v271_v58 = vld [vmem:[%s4273_s1 + $0x10] sm:$0xff]  ;;  %v4570_v7 = vld [vmem:[#allocation74_spill] sm:$0xff]  ;;  %v4571_v33 = vld [vmem:[#allocation99_spill] sm:$0xff] }
 0x205   : > { %1120 = vrot.lane.b32.xlu2 %v4552_v49, %s2188_s26  ;;  %v1298_v49 = vsel %vm1278_vm2, %v3457_v26, %v4562_v34  ;;  %2111 = vmatpush.msk.msra.mxu2 %vm1639_vm7, %v273_v32  ;;  %v3508_v62 = vld [vmem:[%s2230_s20 + $0x110] sm:$0xff]  ;;  %v4569_v34 = vld [vmem:[#allocation61_spill] sm:$0xff]  ;;  %v4573_v20 = vld [vmem:[#allocation11_spill] sm:$0xff] }
 0x206   : > { %1202 = vrot.lane.b32.xlu1 %v4555_v6, %s2190_s28  ;;  %1190 = vrot.lane.b32.xlu0 %v4556_v53, %s2190_s28  ;;  %v4565_v6 = vld [vmem:[#allocation97_spill] sm:$0xff] }
 0x207   : > { %v949_v37 = vpop.permute.xlu2 %948  ;;  %v1331_v53 = vsel %vm1311_vm3, %v1298_v49, %v4565_v6  ;;  %2112 = vmatpush.msk.msra.mxu3 %vm1639_vm7, %v273_v32  ;;  %v1302_v49 = vsel %vm1278_vm2, %v3508_v62, %v4569_v34  ;;  %v4572_v6 = vld [vmem:[#allocation100_spill] sm:$0xff]  ;;  %v269_v32 = vld [vmem:[%s4273_s1] sm:$0xff] }
 0x208   : > { %v929_v31 = vpop.permute.xlu1 %928  ;;  %v3442_v45 = vsel %vm1410_vm6, %v1405_v39, %v949_v37  ;;  %v927_v61 = vpop.permute.xlu0 %926  ;;  %v1364_v39 = vsel %vm1344_vm4, %v1331_v53, %v4567_v56  ;;  %v4568_v37 = vld [vmem:[#allocation122_spill] sm:$0xff]  ;;  %v270_v56 = vld [vmem:[%s4273_s1 + $0x8] sm:$0xff] }
 0x209   : > { %v3445_v4 = vsel %vm1410_vm6, %v1395_v23, %v929_v31  ;;  %v3448_v44 = vsel %vm1410_vm6, %v1394_v3, %v927_v61  ;;  %v1365_v23 = vsel %vm1344_vm4, %v1332_v35, %v4568_v37  ;;  %v1408_v3 = vsel %vm1377_vm5, %v1375_v54, %v3280_v9  ;;  %v4574_v54 = vld [vmem:[#allocation5_spill] sm:$0xff] }
 0x20a   : > { %v1398_v61 = vsel %vm1377_vm5, %v1365_v23, %v3186_v46  ;;  %v1397_v47 = vsel %vm1377_vm5, %v1364_v39, %v3228_v14  ;;  %v272_v14 = vld [vmem:[%s4273_s1 + $0x18] sm:$0xff]  ;;  %v1335_v35 = vsel %vm1311_vm3, %v1302_v49, %v4571_v33  ;;  %v4576_v23 = vld [vmem:[#allocation123_spill] sm:$0xff]  ;;  %v4580_v33 = vld [vmem:[#allocation102_spill] sm:$0xff] }
 0x20b   : > { %1655 = vmatpush.msra.mxu0 %v272_v14  ;;  %2113 = vmatpush.msra.mxu1 %v272_v14  ;;  %v4575_v39 = vld [vmem:[#allocation113_spill] sm:$0xff]  ;;  %v3554_v49 = vld [vmem:[%s2230_s20 + $0x128] sm:$0xff] }
 0x20c   : > { %2114 = vmatpush.msra.mxu2 %v272_v14  ;;  %2115 = vmatpush.msra.mxu3 %v272_v14 }
 0x20d   : > { %1012 = vrot.lane.b32.xlu2 %v2150_v55, %s2189_s27  ;;  %v1301_v55 = vsel %vm1278_vm2, %v2153_v5, %v4570_v7  ;;  %1656 = vmatpush.msra.mxu0 %v271_v58 }
 0x20e   : > { %1000 = vrot.lane.b32.xlu1 %v3473_v63, %s2189_s27  ;;  %1216 = vrot.lane.b32.xlu0 %v4536_v59, %s2190_s28  ;;  %v1334_v53 = vsel %vm1311_vm3, %v1301_v55, %v4572_v6  ;;  %v4579_v55 = vld [vmem:[#allocation42_spill] sm:$0xff]  ;;  %v4581_v6 = vld [vmem:[#allocation103_spill] sm:$0xff] }
 0x20f   : > { %v955_v31 = vpop.permute.xlu2 %954  ;;  %v1367_v37 = vsel %vm1344_vm4, %v1334_v53, %v4575_v39  ;;  %1657 = vmatpush.msra.mxu0 %v270_v56  ;;  %2116 = vmatpush.msra.mxu1 %v271_v58 }
 0x210   : > { %v935_v12 = vpop.permute.xlu1 %934  ;;  %v3490_v18 = vsel %vm1410_vm6, %v1408_v3, %v955_v31  ;;  %v933_v59 = vpop.permute.xlu0 %932  ;;  %v1368_v3 = vsel %vm1344_vm4, %v1335_v35, %v4576_v23  ;;  %2117 = vmatpush.msra.mxu2 %v271_v58  ;;  %2118 = vmatpush.msra.mxu3 %v271_v58 }
 0x211   : > { %v3496_v9 = vsel %vm1410_vm6, %v1398_v61, %v935_v12  ;;  %v3499_v46 = vsel %vm1410_vm6, %v1397_v47, %v933_v59  ;;  %v1401_v61 = vsel %vm1377_vm5, %v1368_v3, %v3198_v41  ;;  %v1400_v47 = vsel %vm1377_vm5, %v1367_v37, %v3241_v11  ;;  %1658 = vmatpush.msra.mxu0 %v269_v32  ;;  %v3548_v41 = vld [vmem:[%s2230_s20 + $0x138] sm:$0xff]  ;;  %v4577_v11 = vld [vmem:[#allocation67_spill] sm:$0xff]  ;;  %v4584_v37 = vld [vmem:[#allocation30_spill] sm:$0xff] }
 0x212   : > { %2119 = vmatpush.msra.mxu1 %v270_v56  ;;  %2120 = vmatpush.msra.mxu2 %v270_v56  ;;  %v1305_v58 = vsel %vm1278_vm2, %v3548_v41, %v4577_v11 }
 0x213   : > { %2121 = vmatpush.msra.mxu3 %v270_v56  ;;  %v1338_v35 = vsel %vm1311_vm3, %v1305_v58, %v4580_v33  ;;  %v4583_v56 = vld [vmem:[#allocation116_spill] sm:$0xff]  ;;  %v2157_v58 = vld [vmem:[%s2230_s20 + $0x158] sm:$0xff] }
 0x214   : > { %2122 = vmatpush.msra.mxu1 %v269_v32  ;;  %2123 = vmatpush.msra.mxu2 %v269_v32  ;;  %v1371_v23 = vsel %vm1344_vm4, %v1338_v35, %v4584_v37 }
 0x215   : > { %1026 = vrot.lane.b32.xlu2 %v2153_v5, %s2189_s27  ;;  %2124 = vmatpush.msra.mxu3 %v269_v32  ;;  %v4578_v5 = vld [vmem:[#allocation76_spill] sm:$0xff] }
 0x216   : > { %1108 = vrot.lane.b32.xlu1 %v4573_v20, %s2188_s26  ;;  %1096 = vrot.lane.b32.xlu0 %v4574_v54, %s2188_s26  ;;  %v1304_v7 = vsel %vm1278_vm2, %v3554_v49, %v4578_v5  ;;  %v4582_v20 = vld [vmem:[#allocation32_spill] sm:$0xff]  ;;  %v4585_v5 = vld [vmem:[#allocation70_spill] sm:$0xff] }
 0x217   : > { %v3532_v31 = vpop.permute.xlu2 %1086  ;;  %v1337_v53 = vsel %vm1311_vm3, %v1304_v7, %v4581_v6  ;;  %v2156_v54 = vld [vmem:[%s2230_s20 + $0x150] sm:$0xff]  ;;  %v1308_v7 = vsel %vm1278_vm2, %v2157_v58, %v4585_v5  ;;  %v4589_v6 = vld [vmem:[#allocation105_spill] sm:$0xff] }
 0x218   : > { %v941_v12 = vpop.permute.xlu1 %940  ;;  %v939_v59 = vpop.permute.xlu0 %938  ;;  %v1370_v39 = vsel %vm1344_vm4, %v1337_v53, %v4583_v56  ;;  %v4591_v56 = vld [vmem:[#allocation16_spill] sm:$0xff] }
 0x219   : > { %v3542_v14 = vsel %vm1410_vm6, %v1401_v61, %v941_v12  ;;  %v3545_v34 = vsel %vm1410_vm6, %v1400_v47, %v939_v59  ;;  %v1404_v61 = vsel %vm1377_vm5, %v1371_v23, %v3212_v27  ;;  %v1403_v47 = vsel %vm1377_vm5, %v1370_v39, %v3254_v13  ;;  %v4587_v27 = vld [vmem:[#allocation60_spill] sm:$0xff]  ;;  %v4592_v39 = vld [vmem:[#allocation117_spill] sm:$0xff] }
 0x21a   : > { %v4588_v13 = vld [vmem:[#allocation104_spill] sm:$0xff] }
 0x21b   : > { %v1341_v35 = vsel %vm1311_vm3, %v1308_v7, %v4588_v13 }
 0x21d   : > { %1204 = vrot.lane.b32.xlu2 %v4579_v55, %s2190_s28  ;;  %v4586_v55 = vld [vmem:[#allocation78_spill] sm:$0xff] }
 0x21e   : > { %1192 = vrot.lane.b32.xlu1 %v4582_v20, %s2190_s28  ;;  %1038 = vrot.lane.b32.xlu0 %v2156_v54, %s2189_s27  ;;  %v1307_v33 = vsel %vm1278_vm2, %v2156_v54, %v4586_v55  ;;  %v4590_v20 = vld [vmem:[#allocation23_spill] sm:$0xff]  ;;  %v4593_v54 = vld [vmem:[#allocation126_spill] sm:$0xff] }
 0x21f   : > { %v3573_v3 = vpop.permute.xlu2 %1088  ;;  %v1340_v53 = vsel %vm1311_vm3, %v1307_v33, %v4589_v6  ;;  %v1374_v23 = vsel %vm1344_vm4, %v1341_v35, %v4593_v54  ;;  %v3617_v33 = vld [vmem:[%s2230_s20 + $0x170] sm:$0xff]  ;;  %v3627_v35 = vld [vmem:[%s2230_s20 + $0x78] sm:$0xff] }
 0x220   : > { %v947_v12 = vpop.permute.xlu1 %946  ;;  %v945_v59 = vpop.permute.xlu0 %944  ;;  %v1373_v37 = vsel %vm1344_vm4, %v1340_v53, %v4592_v39  ;;  %v4596_v6 = vld [vmem:[#allocation121_spill] sm:$0xff] }
 0x221   : > { %v3580_v32 = vsel %vm1410_vm6, %v1404_v61, %v947_v12  ;;  %v3583_v11 = vsel %vm1410_vm6, %v1403_v47, %v945_v59  ;;  %v1407_v47 = vsel %vm1377_vm5, %v1374_v23, %v3225_v1  ;;  %v1406_v12 = vsel %vm1377_vm5, %v1373_v37, %v3266_v8  ;;  %v4595_v1 = vld [vmem:[#allocation106_spill] sm:$0xff]  ;;  %v4597_v39 = vld [vmem:[#allocation41_spill] sm:$0xff] }
 0x225   : > { %1218 = vrot.lane.b32.xlu2 %v4587_v27, %s2190_s28  ;;  %v4594_v27 = vld [vmem:[#allocation81_spill] sm:$0xff] }
 0x226   : > { %1134 = vrot.lane.b32.xlu1 %v4590_v20, %s2188_s26  ;;  %1122 = vrot.lane.b32.xlu0 %v4591_v56, %s2188_s26  ;;  %v1310_v13 = vsel %vm1278_vm2, %v3617_v33, %v4594_v27  ;;  %v2160_v56 = vld [vmem:[%s2230_s20] sm:$0xff]  ;;  %v4600_v27 = vld [vmem:[#allocation128_spill] sm:$0xff] }
 0x227   : > { %v3604_v61 = vpop.permute.xlu2 %1006  ;;  %v1343_v8 = vsel %vm1311_vm3, %v1310_v13, %v4595_v1  ;;  %v1279_v37 = vsel %vm1278_vm2, %v2160_v56, %v4597_v39  ;;  %v2161_v56 = vld [vmem:[%s2230_s20 + $0x8] sm:$0xff]  ;;  %v4603_v39 = vld [vmem:[#allocation46_spill] sm:$0xff] }
 0x228   : > { %v953_v59 = vpop.permute.xlu1 %952  ;;  %v951_v5 = vpop.permute.xlu0 %950  ;;  %v1376_v53 = vsel %vm1344_vm4, %v1343_v8, %v4596_v6  ;;  %v4601_v8 = vld [vmem:[#allocation10_spill] sm:$0xff]  ;;  %v4602_v6 = vld [vmem:[#allocation4_spill] sm:$0xff] }
 0x229   : > { %v3611_v7 = vsel %vm1410_vm6, %v1407_v47, %v953_v59  ;;  %v3614_v55 = vsel %vm1410_vm6, %v1406_v12, %v951_v5  ;;  %v4598_v47 = vld [vmem:[#allocation73_spill] sm:$0xff] }
 0x22a   : > { %v1312_v12 = vsel %vm1311_vm3, %v1279_v37, %v4598_v47 }
 0x22d   : > { %1014 = vrot.lane.b32.xlu2 %v3412_v17, %s2189_s27  ;;  %v1409_v17 = vsel %vm1377_vm5, %v1376_v53, %v3278_v28 }
 0x22e   : > { %1002 = vrot.lane.b32.xlu1 %v3627_v35, %s2189_s27  ;;  %1230 = vrot.lane.b32.xlu0 %v2808_v51, %s2190_s28  ;;  %v4599_v51 = vld [vmem:[#allocation8_spill] sm:$0xff] }
 0x22f   : > { %v1187_v20 = vpop.permute.xlu2 %1186  ;;  %v1345_v5 = vsel %vm1344_vm4, %v1312_v12, %v4599_v51  ;;  %v4605_v12 = vld [vmem:[#allocation98_spill] sm:$0xff] }
 0x230   : > { %v991_v54 = vpop.permute.xlu1 %990  ;;  %v957_v23 = vpop.permute.xlu0 %956  ;;  %v1378_v13 = vsel %vm1377_vm5, %v1345_v5, %v4600_v27  ;;  %v4606_v5 = vld [vmem:[#allocation127_spill] sm:$0xff] }
 0x231   : > { %v3643_v59 = vsel %vm1410_vm6, %v1409_v17, %v957_v23  ;;  %v1411_v1 = vsel %vm1410_vm6, %v1378_v13, %v3239_v43  ;;  %v1280_v43 = vsel %vm1278_vm2, %v2161_v56, %v4603_v39 }
 0x232   : > { %v1444_v28 = vsel %vm1443_vm8, %v1411_v1, %v991_v54  ;;  %v4604_v54 = vld [vmem:[#allocation85_spill] sm:$0xff] }
 0x233   : > { %v1313_v23 = vsel %vm1311_vm3, %v1280_v43, %v4604_v54 }
 0x234   : > { %v1346_v51 = vsel %vm1344_vm4, %v1313_v23, %v4605_v12  ;;  %v4611_v23 = vld [vmem:[#allocation107_spill] sm:$0xff]  ;;  %v4613_v12 = vld [vmem:[#allocation28_spill] sm:$0xff] }
 0x235   : > { %1028 = vrot.lane.b32.xlu2 %v3508_v62, %s2189_s27  ;;  %v1477_v62 = vsel %vm1476_vm9, %v1444_v28, %v3532_v31  ;;  %v1379_v27 = vsel %vm1377_vm5, %v1346_v51, %v4606_v5  ;;  %v4607_v31 = vld [vmem:[#allocation49_spill] sm:$0xff]  ;;  %v4608_v28 = vld [vmem:[#allocation38_spill] sm:$0xff]  ;;  %v4615_v5 = vld [vmem:[#allocation15_spill] sm:$0xff] }
 0x236   : > { %1110 = vrot.lane.b32.xlu1 %v4601_v8, %s2188_s26  ;;  %1098 = vrot.lane.b32.xlu0 %v4602_v6, %s2188_s26  ;;  %v1412_v13 = vsel %vm1410_vm6, %v1379_v27, %v3292_v36  ;;  %v2162_v36 = vld [vmem:[%s2230_s20 + $0x18] sm:$0xff]  ;;  %v4614_v51 = vld [vmem:[#allocation22_spill] sm:$0xff] }
 0x237   : > { %v3658_v53 = vpop.permute.xlu2 %1008 }
 0x238   : > { %v993_v37 = vpop.permute.xlu1 %992  ;;  %v1183_v17 = vpop.permute.xlu0 %1182 }
 0x239   : > { %v1510_v47 = vsel %vm1509_vm10, %v1477_v62, %v1183_v17  ;;  %v1445_v1 = vsel %vm1443_vm8, %v1412_v13, %v993_v37  ;;  %v4609_v37 = vld [vmem:[#allocation40_spill] sm:$0xff] }
 0x23a   : > { %2075 = vmatmul.msk.f32.vlgmr.msra.gmra.mxu0 %vm1542_vm11, %v1510_v47  ;;  %v1478_v39 = vsel %vm1476_vm9, %v1445_v1, %v3573_v3  ;;  %v1281_v17 = vsel %vm1278_vm2, %v2162_v36, %v4609_v37  ;;  %v4610_v62 = vld [vmem:[#allocation84_spill] sm:$0xff]  ;;  %v4612_v47 = vld [vmem:[#allocation59_spill] sm:$0xff] }
 0x23b   : > { %v1314_v54 = vsel %vm1311_vm3, %v1281_v17, %v4610_v62  ;;  %v4617_v37 = vld [vmem:[#allocation88_spill] sm:$0xff] }
 0x23d   : > { %1206 = vrot.lane.b32.xlu2 %v4607_v31, %s2190_s28 }
 0x23e   : > { %1194 = vrot.lane.b32.xlu1 %v4608_v28, %s2190_s28  ;;  %1040 = vrot.lane.b32.xlu0 %v2157_v58, %s2189_s27  ;;  %v1347_v58 = vsel %vm1344_vm4, %v1314_v54, %v4611_v23  ;;  %v3722_v23 = vld [vmem:[%s2230_s20 + $0x80] sm:$0xff] }
 0x23f   : > { %v3681_v8 = vpop.permute.xlu2 %1022  ;;  %v1380_v3 = vsel %vm1377_vm5, %v1347_v58, %v4613_v12 }
 0x240   : > { %v995_v6 = vpop.permute.xlu1 %994  ;;  %v1185_v56 = vpop.permute.xlu0 %1184  ;;  %v1413_v27 = vsel %vm1410_vm6, %v1380_v3, %v3290_v16  ;;  %v4618_v16 = vld [vmem:[#allocation112_spill] sm:$0xff] }
 0x241   : > { %v1511_v43 = vsel %vm1509_vm10, %v1478_v39, %v1185_v56  ;;  %v1446_v1 = vsel %vm1443_vm8, %v1413_v27, %v995_v6  ;;  %v4616_v39 = vld [vmem:[#allocation35_spill] sm:$0xff]  ;;  %v4619_v6 = vld [vmem:[#allocation124_spill] sm:$0xff] }
 0x242   : > { %2076 = vmatmul.msk.f32.gmra.mxu0 %vm1542_vm11, %v1511_v43  ;;  %v1287_v43 = vsel %vm1278_vm2, %v3346_v40, %v4616_v39  ;;  %v4622_v27 = vld [vmem:[#allocation3_spill] sm:$0xff] }
 0x243   : > { %v1320_v17 = vsel %vm1311_vm3, %v1287_v43, %v4617_v37  ;;  %v4624_v43 = vld [vmem:[#allocation57_spill] sm:$0xff]  ;;  %v4625_v37 = vld [vmem:[#allocation75_spill] sm:$0xff] }
 0x244   : > { %v1353_v62 = vsel %vm1344_vm4, %v1320_v17, %v4618_v16  ;;  %v4626_v16 = vld [vmem:[#allocation80_spill] sm:$0xff] }
 0x245   : > { %1220 = vrot.lane.b32.xlu2 %v4612_v47, %s2190_s28  ;;  %v1386_v54 = vsel %vm1377_vm5, %v1353_v62, %v4619_v6  ;;  %v4627_v6 = vld [vmem:[#allocation6_spill] sm:$0xff] }
 0x246   : > { %1136 = vrot.lane.b32.xlu1 %v4614_v51, %s2188_s26  ;;  %1124 = vrot.lane.b32.xlu0 %v4615_v5, %s2188_s26  ;;  %v1419_v40 = vsel %vm1410_vm6, %v1386_v54, %v3329_v50  ;;  %v2164_v51 = vld [vmem:[%s2230_s20 + $0x120] sm:$0xff]  ;;  %v4621_v5 = vld [vmem:[#allocation9_spill] sm:$0xff] }
 0x247   : > { %v1119_v13 = vpop.permute.xlu2 %1118  ;;  %v1452_v58 = vsel %vm1443_vm8, %v1419_v40, %v3604_v61  ;;  %v4628_v40 = vld [vmem:[#allocation111_spill] sm:$0xff] }
 0x248   : > { %v1103_v31 = vpop.permute.xlu1 %1102  ;;  %v1091_v28 = vpop.permute.xlu0 %1090 }
 0x249   : > { %v1479_v56 = vsel %vm1476_vm9, %v1446_v1, %v1091_v28  ;;  %v1485_v12 = vsel %vm1476_vm9, %v1452_v58, %v1103_v31  ;;  %v2165_v28 = vld [vmem:[%s2230_s20 + $0x20] sm:$0xff] }
 0x24a   : > { %v1512_v36 = vsel %vm1509_vm10, %v1479_v56, %v1187_v20  ;;  %v4620_v20 = vld [vmem:[#allocation69_spill] sm:$0xff]  ;;  %v4629_v58 = vld [vmem:[#allocation130_spill] sm:$0xff] }
 0x24b   : > { %2077 = vmatmul.msk.f32.gmra.mxu0 %vm1542_vm11, %v1512_v36  ;;  %v4623_v56 = vld [vmem:[#allocation45_spill] sm:$0xff]  ;;  %v1288_v36 = vsel %vm1278_vm2, %v3473_v63, %v4624_v43  ;;  %v4631_v63 = vld [vmem:[#allocation48_spill] sm:$0xff] }
 0x24c   : > { %v1282_v39 = vsel %vm1278_vm2, %v2165_v28, %v4623_v56  ;;  %v1321_v62 = vsel %vm1311_vm3, %v1288_v36, %v4626_v16  ;;  %v2166_v28 = vld [vmem:[%s2230_s20 + $0x168] sm:$0xff] }
 0x24d   : > { %1016 = vrot.lane.b32.xlu2 %v3406_v60, %s2189_s27  ;;  %v1315_v17 = vsel %vm1311_vm3, %v1282_v39, %v4625_v37 }
 0x24e   : > { %1004 = vrot.lane.b32.xlu1 %v3722_v23, %s2189_s27  ;;  %1232 = vrot.lane.b32.xlu0 %v4620_v20, %s2190_s28  ;;  %v1348_v54 = vsel %vm1344_vm4, %v1315_v17, %v4627_v6  ;;  %v1354_v20 = vsel %vm1344_vm4, %v1321_v62, %v4628_v40 }
 0x24f   : > { %v3730_v47 = vpop.permute.xlu2 %1010 }
 0x250   : > { %v997_v60 = vpop.permute.xlu1 %996  ;;  %v1199_v3 = vpop.permute.xlu0 %1198 }
 0x251   : > { %v1518_v50 = vsel %vm1509_vm10, %v1485_v12, %v1199_v3  ;;  %v1381_v12 = vsel %vm1377_vm5, %v1348_v54, %v4629_v58  ;;  %v4630_v3 = vld [vmem:[#allocation133_spill] sm:$0xff]  ;;  %v4636_v58 = vld [vmem:[#allocation14_spill] sm:$0xff] }
 0x252   : > { %2083 = vmatmul.msk.f32.vlgmr.msra.gmra.mxu1 %vm1542_vm11, %v1518_v50  ;;  %v1387_v50 = vsel %vm1377_vm5, %v1354_v20, %v4630_v3 }
 0x255   : > { %1030 = vrot.lane.b32.xlu2 %v2164_v51, %s2189_s27  ;;  %v1414_v51 = vsel %vm1410_vm6, %v1381_v12, %v3252_v0  ;;  %v2167_v12 = vld [vmem:[%s2230_s20 + $0xd8] sm:$0xff] }
 0x256   : > { %1112 = vrot.lane.b32.xlu1 %v4621_v5, %s2188_s26  ;;  %1100 = vrot.lane.b32.xlu0 %v4622_v27, %s2188_s26  ;;  %v1420_v5 = vsel %vm1410_vm6, %v1387_v50, %v3276_v52  ;;  %v4632_v27 = vld [vmem:[#allocation37_spill] sm:$0xff]  ;;  %v1447_v39 = vsel %vm1443_vm8, %v1414_v51, %v997_v60  ;;  %v4634_v60 = vld [vmem:[#allocation27_spill] sm:$0xff]  ;;  %v4638_v51 = vld [vmem:[#allocation56_spill] sm:$0xff] }
 0x257   : > { %v3741_v61 = vpop.permute.xlu2 %1024  ;;  %v1453_v56 = vsel %vm1443_vm8, %v1420_v5, %v3658_v53  ;;  %v4633_v53 = vld [vmem:[#allocation58_spill] sm:$0xff]  ;;  %v4637_v50 = vld [vmem:[#allocation29_spill] sm:$0xff]  ;;  %v1289_v5 = vsel %vm1278_vm2, %v3627_v35, %v4638_v51  ;;  %v4645_v35 = vld [vmem:[#allocation47_spill] sm:$0xff] }
 0x258   : > { %v1105_v1 = vpop.permute.xlu1 %1104  ;;  %v1093_v31 = vpop.permute.xlu0 %1092 }
 0x259   : > { %v1486_v36 = vsel %vm1476_vm9, %v1453_v56, %v1105_v1  ;;  %v1480_v37 = vsel %vm1476_vm9, %v1447_v39, %v1093_v31  ;;  %v4635_v1 = vld [vmem:[#allocation21_spill] sm:$0xff]  ;;  %v1460_v31 = vsel %vm1443_vm8, %v3448_v44, %v3681_v8  ;;  %v4640_v56 = vld [vmem:[#allocation91_spill] sm:$0xff] }
 0x25a   : > { %v1493_v6 = vsel %vm1476_vm9, %v1460_v31, %v1119_v13  ;;  %v2168_v13 = vld [vmem:[%s2230_s20 + $0x30] sm:$0xff]  ;;  %v1322_v39 = vsel %vm1311_vm3, %v1289_v5, %v4640_v56  ;;  %v4649_v5 = vld [vmem:[#allocation39_spill] sm:$0xff] }
 0x25d   : > { %1208 = vrot.lane.b32.xlu2 %v4631_v63, %s2190_s28  ;;  %v1283_v63 = vsel %vm1278_vm2, %v2168_v13, %v4637_v50 }
 0x25e   : > { %1196 = vrot.lane.b32.xlu1 %v4632_v27, %s2190_s28  ;;  %1042 = vrot.lane.b32.xlu0 %v2166_v28, %s2189_s27  ;;  %v4639_v27 = vld [vmem:[#allocation87_spill] sm:$0xff] }
 0x25f   : > { %v1121_v43 = vpop.permute.xlu2 %1120  ;;  %v1316_v28 = vsel %vm1311_vm3, %v1283_v63, %v4639_v27  ;;  %v1290_v27 = vsel %vm1278_vm2, %v3722_v23, %v4649_v5  ;;  %v2170_v5 = vld [vmem:[%s2230_s20 + $0x188] sm:$0xff] }
 0x260   : > { %v1201_v0 = vpop.permute.xlu1 %1200  ;;  %v1189_v17 = vpop.permute.xlu0 %1188 }
 0x261   : > { %v1513_v52 = vsel %vm1509_vm10, %v1480_v37, %v1189_v17  ;;  %v1519_v16 = vsel %vm1509_vm10, %v1486_v36, %v1201_v0  ;;  %v4641_v36 = vld [vmem:[#allocation101_spill] sm:$0xff]  ;;  %v4642_v37 = vld [vmem:[#allocation7_spill] sm:$0xff] }
 0x262   : > { %2078 = vmatmul.msk.f32.gmra.mxu0 %vm1542_vm11, %v1513_v52  ;;  %2084 = vmatmul.msk.f32.gmra.mxu1 %vm1542_vm11, %v1519_v16  ;;  %v1355_v0 = vsel %vm1344_vm4, %v1322_v39, %v4642_v37  ;;  %v4643_v17 = vld [vmem:[#allocation129_spill] sm:$0xff]  ;;  %v4651_v39 = vld [vmem:[#allocation115_spill] sm:$0xff] }
 0x263   : > { %v4644_v16 = vld [vmem:[#allocation53_spill] sm:$0xff] }
 0x265   : > { %1222 = vrot.lane.b32.xlu2 %v4633_v53, %s2190_s28  ;;  %v1388_v53 = vsel %vm1377_vm5, %v1355_v0, %v4644_v16 }
 0x266   : > { %1138 = vrot.lane.b32.xlu1 %v4634_v60, %s2188_s26  ;;  %1126 = vrot.lane.b32.xlu0 %v4635_v1, %s2188_s26  ;;  %v1421_v1 = vsel %vm1410_vm6, %v1388_v53, %v3358_v48  ;;  %v4655_v53 = vld [vmem:[#allocation31_spill] sm:$0xff] }
 0x267   : > { %v1013_v62 = vpop.permute.xlu2 %1012  ;;  %v1454_v31 = vsel %vm1443_vm8, %v1421_v1, %v3730_v47  ;;  %v4648_v47 = vld [vmem:[#allocation20_spill] sm:$0xff] }
 0x268   : > { %v999_v54 = vpop.permute.xlu1 %998  ;;  %v1215_v40 = vpop.permute.xlu0 %1214 }
 0x269   : > { %v1526_v20 = vsel %vm1509_vm10, %v1493_v6, %v1215_v40 }
 0x26a   : > { %2091 = vmatmul.msk.f32.vlgmr.msra.gmra.mxu2 %vm1542_vm11, %v1526_v20 }
 0x26d   : > { %1114 = vrot.lane.b32.xlu2 %v4636_v58, %s2188_s26 }
 0x26e   : > { %1018 = vrot.lane.b32.xlu1 %v2167_v12, %s2189_s27  ;;  %1234 = vrot.lane.b32.xlu0 %v2802_v38, %s2190_s28  ;;  %v1349_v38 = vsel %vm1344_vm4, %v1316_v28, %v4641_v36  ;;  %v4650_v28 = vld [vmem:[#allocation90_spill] sm:$0xff] }
 0x26f   : > { %v3798_v3 = vpop.permute.xlu2 %1026  ;;  %v1382_v52 = vsel %vm1377_vm5, %v1349_v38, %v4643_v17  ;;  %v1323_v56 = vsel %vm1311_vm3, %v1290_v27, %v4650_v28  ;;  %v4654_v38 = vld [vmem:[#allocation72_spill] sm:$0xff]  ;;  %v2171_v27 = vld [vmem:[%s2230_s20 + $0x140] sm:$0xff]  ;;  %v4663_v28 = vld [vmem:[#allocation135_spill] sm:$0xff] }
 0x270   : > { %v1107_v44 = vpop.permute.xlu1 %1106  ;;  %v1095_v8 = vpop.permute.xlu0 %1094  ;;  %v1415_v60 = vsel %vm1410_vm6, %v1382_v52, %v3313_v19  ;;  %v1356_v36 = vsel %vm1344_vm4, %v1323_v56, %v4651_v39 }
 0x271   : > { %v1448_v6 = vsel %vm1443_vm8, %v1415_v60, %v999_v54  ;;  %v1487_v20 = vsel %vm1476_vm9, %v1454_v31, %v1107_v44  ;;  %v1461_v54 = vsel %vm1443_vm8, %v3445_v4, %v3741_v61  ;;  %v4652_v4 = vld [vmem:[#allocation13_spill] sm:$0xff]  ;;  %v4653_v61 = vld [vmem:[#allocation36_spill] sm:$0xff]  ;;  %v4656_v60 = vld [vmem:[#allocation86_spill] sm:$0xff] }
 0x272   : > { %v1481_v58 = vsel %vm1476_vm9, %v1448_v6, %v1095_v8  ;;  %v1494_v8 = vsel %vm1476_vm9, %v1461_v54, %v1121_v43  ;;  %v1389_v43 = vsel %vm1377_vm5, %v1356_v36, %v4653_v61  ;;  %v4657_v31 = vld [vmem:[#allocation110_spill] sm:$0xff]  ;;  %v1462_v54 = vsel %vm1443_vm8, %v3332_v30, %v3798_v3  ;;  %v4664_v61 = vld [vmem:[#allocation63_spill] sm:$0xff] }
 0x273   : > { %v1422_v23 = vsel %vm1410_vm6, %v1389_v43, %v3353_v22  ;;  %v4658_v6 = vld [vmem:[#allocation34_spill] sm:$0xff] }
 0x274   : > { %v1455_v0 = vsel %vm1443_vm8, %v1422_v23, %v1013_v62 }
 0x275   : > { %1210 = vrot.lane.b32.xlu2 %v4645_v35, %s2190_s28  ;;  %v1284_v35 = vsel %vm1278_vm2, %v3246_v10, %v4655_v53  ;;  %v2169_v10 = vld [vmem:[%s2230_s20 + $0x180] sm:$0xff] }
 0x276   : > { %1044 = vrot.lane.b32.xlu1 %v3617_v33, %s2189_s27  ;;  %1032 = vrot.lane.b32.xlu0 %v3554_v49, %s2189_s27  ;;  %v4646_v49 = vld [vmem:[#allocation66_spill] sm:$0xff]  ;;  %v1317_v1 = vsel %vm1311_vm3, %v1284_v35, %v4656_v60  ;;  %v4670_v60 = vld [vmem:[#allocation24_spill] sm:$0xff] }
 0x277   : > { %v1205_v40 = vpop.permute.xlu2 %1204  ;;  %v4647_v33 = vld [vmem:[#allocation26_spill] sm:$0xff]  ;;  %v1350_v22 = vsel %vm1344_vm4, %v1317_v1, %v4657_v31 }
 0x278   : > { %v1203_v19 = vpop.permute.xlu1 %1202  ;;  %v1191_v12 = vpop.permute.xlu0 %1190  ;;  %v1383_v62 = vsel %vm1377_vm5, %v1350_v22, %v4658_v6  ;;  %v4668_v53 = vld [vmem:[#allocation134_spill] sm:$0xff] }
 0x279   : > { %v1514_v48 = vsel %vm1509_vm10, %v1481_v58, %v1191_v12  ;;  %v1520_v13 = vsel %vm1509_vm10, %v1487_v20, %v1203_v19  ;;  %v4659_v20 = vld [vmem:[#allocation54_spill] sm:$0xff]  ;;  %v1416_v58 = vsel %vm1410_vm6, %v1383_v62, %v3308_v15  ;;  %v4660_v15 = vld [vmem:[#allocation65_spill] sm:$0xff] }
 0x27a   : > { %2079 = vmatmul.msk.f32.gmra.mxu0 %vm1542_vm11, %v1514_v48  ;;  %2085 = vmatmul.msk.f32.gmra.mxu1 %vm1542_vm11, %v1520_v13 }
 0x27d   : > { %1224 = vrot.lane.b32.xlu2 %v4646_v49, %s2190_s28 }
 0x27e   : > { %1140 = vrot.lane.b32.xlu1 %v4647_v33, %s2188_s26  ;;  %1128 = vrot.lane.b32.xlu0 %v4648_v47, %s2188_s26  ;;  %v4661_v33 = vld [vmem:[#allocation120_spill] sm:$0xff] }
 0x27f   : > { %v1219_v44 = vpop.permute.xlu2 %1218 }
 0x280   : > { %v1001_v50 = vpop.permute.xlu1 %1000  ;;  %v1217_v63 = vpop.permute.xlu0 %1216 }
 0x281   : > { %v1527_v51 = vsel %vm1509_vm10, %v1494_v8, %v1217_v63 }
 0x282   : > { %2092 = vmatmul.msk.f32.gmra.mxu2 %vm1542_vm11, %v1527_v51 }
 0x285   : > { %1116 = vrot.lane.b32.xlu2 %v4652_v4, %s2188_s26  ;;  %v2172_v4 = vld [vmem:[%s2230_s20 + $0x90] sm:$0xff] }
 0x286   : > { %1020 = vrot.lane.b32.xlu1 %v3457_v26, %s2189_s27  ;;  %1236 = vrot.lane.b32.xlu0 %v4654_v38, %s2190_s28  ;;  %v1291_v43 = vsel %vm1278_vm2, %v2172_v4, %v4664_v61  ;;  %v4665_v38 = vld [vmem:[#allocation83_spill] sm:$0xff] }
 0x287   : > { %v1015_v37 = vpop.permute.xlu2 %1014  ;;  %v1324_v23 = vsel %vm1311_vm3, %v1291_v43, %v4665_v38 }
 0x288   : > { %v1109_v17 = vpop.permute.xlu1 %1108  ;;  %v1097_v52 = vpop.permute.xlu0 %1096 }
 0x289   : > { %v1488_v16 = vsel %vm1476_vm9, %v1455_v0, %v1109_v17  ;;  %v4666_v0 = vld [vmem:[#allocation114_spill] sm:$0xff]  ;;  %v266_v17 = vld [vmem:[%s2230_s20 + $0x198] sm:$0xff] }
 0x28a   : > { %v1521_v26 = vsel %vm1509_vm10, %v1488_v16, %v1205_v40  ;;  %v1449_v40 = vsel %vm1443_vm8, %v1416_v58, %v1001_v50  ;;  %v4667_v16 = vld [vmem:[#allocation64_spill] sm:$0xff]  ;;  %v500_v1 = vrot.slane %v266_v17, 1 }
 0x28b   : > { %2086 = vmatmul.msk.f32.gmra.mxu1 %vm1542_vm11, %v1521_v26  ;;  %v1482_v12 = vsel %vm1476_vm9, %v1449_v40, %v1097_v52  ;;  %v267_v52 = vld [vmem:[%s2230_s20 + $0x1a0] sm:$0xff]  ;;  %v4669_v26 = vld [vmem:[#allocation119_spill] sm:$0xff] }
 0x28c   : > { %v501_v31 = vrot.slane %v267_v52, 1  ;;  %v2173_v40 = vld [vmem:[%s2230_s20 + $0x48] sm:$0xff] }
 0x28d   : > { %1212 = vrot.lane.b32.xlu2 %v4659_v20, %s2190_s28 }
 0x28e   : > { %1046 = vrot.lane.b32.xlu1 %v2169_v10, %s2189_s27  ;;  %1034 = vrot.lane.b32.xlu0 %v3548_v41, %s2189_s27  ;;  %v4662_v41 = vld [vmem:[#allocation19_spill] sm:$0xff] }
 0x28f   : > { %v3888_v19 = vpop.permute.xlu2 %1028 }
 0x290   : > { %v1193_v48 = vpop.permute.xlu1 %1192  ;;  %v1039_v13 = vpop.permute.xlu0 %1038 }
 0x291   : > { %v1515_v49 = vsel %vm1509_vm10, %v1482_v12, %v1193_v48  ;;  %v1468_v30 = vsel %vm1443_vm8, %v3394_v21, %v1039_v13  ;;  %v1357_v21 = vsel %vm1344_vm4, %v1324_v23, %v4666_v0  ;;  %v4671_v12 = vld [vmem:[#allocation52_spill] sm:$0xff]  ;;  %v1463_v23 = vsel %vm1443_vm8, %v3499_v46, %v3888_v19 }
 0x292   : > { %2080 = vmatmul.msk.f32.gmra.mxu0 %vm1542_vm11, %v1515_v49  ;;  %v1390_v35 = vsel %vm1377_vm5, %v1357_v21, %v4668_v53  ;;  %v1285_v48 = vsel %vm1278_vm2, %v2173_v40, %v4671_v12  ;;  %v502_v49 = vsel %vm322_vm0, %v500_v1, %v501_v31 }
 0x293   : > { %v1423_v22 = vsel %vm1410_vm6, %v1390_v35, %v3288_v42  ;;  %v4673_v42 = vld [vmem:[#allocation109_spill] sm:$0xff] }
 0x294   : > { %v1456_v6 = vsel %vm1443_vm8, %v1423_v22, %v1015_v37 }
 0x295   : > { %1226 = vrot.lane.b32.xlu2 %v4660_v15, %s2190_s28  ;;  %v4672_v15 = vld [vmem:[#allocation77_spill] sm:$0xff] }
 0x296   : > { %1142 = vrot.lane.b32.xlu1 %v4661_v33, %s2188_s26  ;;  %1130 = vrot.lane.b32.xlu0 %v4662_v41, %s2188_s26  ;;  %v1318_v33 = vsel %vm1311_vm3, %v1285_v48, %v4672_v15  ;;  %v4674_v41 = vld [vmem:[#allocation132_spill] sm:$0xff] }
 0x297   : > { %v1207_v47 = vpop.permute.xlu2 %1206  ;;  %v1351_v37 = vsel %vm1344_vm4, %v1318_v33, %v4673_v42 }
 0x298   : > { %v1135_v8 = vpop.permute.xlu1 %1134  ;;  %v1123_v50 = vpop.permute.xlu0 %1122 }
 0x299   : > { %v1495_v63 = vsel %vm1476_vm9, %v1462_v54, %v1123_v50  ;;  %v1501_v56 = vsel %vm1476_vm9, %v1468_v30, %v1135_v8  ;;  %v1384_v54 = vsel %vm1377_vm5, %v1351_v37, %v4674_v41  ;;  %v268_v8 = vld [vmem:[%s2230_s20 + $0x1a8] sm:$0x3]  ;;  %v4675_v50 = vld [vmem:[#allocation137_spill] sm:$0xff]  ;;  %v2174_v37 = vld [vmem:[%s2230_s20 + $0x50] sm:$0xff] }
 0x29a   : > { %v1528_v51 = vsel %vm1509_vm10, %v1495_v63, %v1219_v44  ;;  %v4676_v63 = vld [vmem:[#allocation136_spill] sm:$0xff]  ;;  %v508_v38 = vrot.slane %v268_v8, 2  ;;  %v4677_v41 = vld [vmem:[#allocation51_spill] sm:$0xff] }
 0x29b   : > { %2093 = vmatmul.msk.f32.gmra.mxu2 %vm1542_vm11, %v1528_v51  ;;  %v503_v51 = vrot.slane %v268_v8, 1 }
 0x29d   : > { %1048 = vrot.lane.b32.xlu2 %v2170_v5, %s2189_s27  ;;  %v504_v4 = vsel %vm322_vm0, %v501_v31, %v503_v51 }
 0x29e   : > { %1036 = vrot.lane.b32.xlu1 %v2171_v27, %s2189_s27  ;;  %1238 = vrot.lane.b32.xlu0 %v4663_v28, %s2190_s28  ;;  %v505_v27 = vrot.slane %v266_v17, 2  ;;  %v506_v28 = vrot.slane %v267_v52, 2 }
 0x29f   : > { %v1221_v3 = vpop.permute.xlu2 %1220 }
 0x2a0   : > { %v1003_v44 = vpop.permute.xlu1 %1002  ;;  %v1231_v39 = vpop.permute.xlu0 %1230  ;;  %v507_v43 = vsel %vm403_vm1, %v505_v27, %v506_v28  ;;  %v4680_v27 = vld [vmem:[#allocation131_spill] sm:$0xff] }
 0x2a1   : > { %v1534_v36 = vsel %vm1509_vm10, %v1501_v56, %v1231_v39 }
 0x2a2   : > { %2099 = vmatmul.msk.f32.vlgmr.msra.gmra.mxu3 %vm1542_vm11, %v1534_v36 }
 0x2a5   : > { %1228 = vrot.lane.b32.xlu2 %v4667_v16, %s2190_s28 }
 0x2a6   : > { %1144 = vrot.lane.b32.xlu1 %v4669_v26, %s2188_s26  ;;  %1132 = vrot.lane.b32.xlu0 %v4670_v60, %s2188_s26 }
 0x2a7   : > { %v1017_v10 = vpop.permute.xlu2 %1016 }
 0x2a8   : > { %v1111_v62 = vpop.permute.xlu1 %1110  ;;  %v1099_v20 = vpop.permute.xlu0 %1098  ;;  %v1457_v12 = vsel %vm1443_vm8, %v3400_v2, %v1017_v10 }
 0x2a9   : > { %v1489_v58 = vsel %vm1476_vm9, %v1456_v6, %v1111_v62 }
 0x2aa   : > { %v1522_v13 = vsel %vm1509_vm10, %v1489_v58, %v1207_v47  ;;  %v1417_v47 = vsel %vm1410_vm6, %v1384_v54, %v4675_v50  ;;  %v1286_v54 = vsel %vm1278_vm2, %v2174_v37, %v4677_v41 }
 0x2ab   : > { %2087 = vmatmul.msk.f32.gmra.mxu1 %vm1542_vm11, %v1522_v13  ;;  %v1450_v5 = vsel %vm1443_vm8, %v1417_v47, %v1003_v44  ;;  %v4678_v47 = vld [vmem:[#allocation89_spill] sm:$0xff] }
 0x2ac   : > { %v1483_v30 = vsel %vm1476_vm9, %v1450_v5, %v1099_v20  ;;  %v1319_v2 = vsel %vm1311_vm3, %v1286_v54, %v4678_v47 }
 0x2ad   : > { %1146 = vrot.lane.b32.xlu2 %v502_v49, %s2188_s26 }
 0x2ae   : > { %1050 = vrot.lane.b32.xlu1 %v266_v17, %s2189_s27  ;;  %1240 = vrot.lane.b32.xlu0 %v4676_v63, %s2190_s28  ;;  %v4679_v63 = vld [vmem:[#allocation2_spill] sm:$0xff] }
 0x2af   : > { %v3962_v61 = vpop.permute.xlu2 %1030  ;;  %v1352_v51 = vsel %vm1344_vm4, %v1319_v2, %v4679_v63 }
 0x2b0   : > { %v1195_v56 = vpop.permute.xlu1 %1194  ;;  %v1041_v39 = vpop.permute.xlu0 %1040 }
 0x2b1   : > { %v1516_v36 = vsel %vm1509_vm10, %v1483_v30, %v1195_v56  ;;  %v1469_v26 = vsel %vm1443_vm8, %v3583_v11, %v1041_v39 }
 0x2b2   : > { %2081 = vmatmul.msk.f32.gmra.mxu0 %vm1542_vm11, %v1516_v36 }
 0x2b5   : > { %1148 = vrot.lane.b32.xlu2 %v504_v4, %s2188_s26 }
 0x2b6   : > { %1052 = vrot.lane.b32.xlu1 %v267_v52, %s2189_s27  ;;  %1242 = vrot.lane.b32.xlu0 %v507_v43, %s2190_s28  ;;  %v509_v52 = vsel %vm403_vm1, %v506_v28, %v508_v38  ;;  %v1385_v28 = vsel %vm1377_vm5, %v1352_v51, %v4680_v27 }
 0x2b7   : > { %v1660_v44 = vpop.f32.mrf.mxu0  ;;  %v1209_v53 = vpop.permute.xlu2 %1208  ;;  %v1418_v30 = vsel %vm1410_vm6, %v1385_v28, %v3334_v57  ;;  %v1464_v57 = vsel %vm1443_vm8, %v3496_v9, %v3962_v61 }
 0x2b8   : > { %1756 = vst.msk [vmem:[%s3968_s18] sm:$0xff] %vm1278_vm2, %v1660_v44  ;;  %v1137_v0 = vpop.permute.xlu1 %1136  ;;  %v1125_v21 = vpop.permute.xlu0 %1124  ;;  %v1859_v35 = vmul.f32 %v1660_v44, %v1660_v44  ;;  %v1788_v19 = vsel %vm1278_vm2, %v1660_v44, 0.0 }
 0x2b9   : > { %v1496_v17 = vsel %vm1476_vm9, %v1463_v23, %v1125_v21  ;;  %v1502_v60 = vsel %vm1476_vm9, %v1469_v26, %v1137_v0 }
 0x2ba   : > { %v1529_v16 = vsel %vm1509_vm10, %v1496_v17, %v1221_v3  ;;  %v1891_v20 = vsel %vm1278_vm2, %v1859_v35, 0.0 }
 0x2bb   : > { %2094 = vmatmul.msk.f32.gmra.mxu2 %vm1542_vm11, %v1529_v16 }
 0x2be   : > { %1244 = vrot.lane.b32.xlu0 %v509_v52, %s2190_s28 }
 0x2bf   : > { %v1663_v46 = vpop.f32.mrf.mxu0  ;;  %v1223_v40 = vpop.permute.xlu2 %1222 }
 0x2c0   : > { %1757 = vst.msk [vmem:[%s3968_s18 + $0x8] sm:$0xff] %vm1278_vm2, %v1663_v46  ;;  %v1789_v3 = vsel %vm1278_vm2, %v1663_v46, 0.0  ;;  %v1860_v1 = vmul.f32 %v1663_v46, %v1663_v46  ;;  %v1005_v31 = vpop.permute.xlu1 %1004  ;;  %v1233_v22 = vpop.permute.xlu0 %1232 }
 0x2c1   : > { %v1790_v6 = vadd.f32 %v1789_v3, %v1788_v19  ;;  %v1535_v62 = vsel %vm1509_vm10, %v1502_v60, %v1233_v22  ;;  %v1451_v56 = vsel %vm1443_vm8, %v1418_v30, %v1005_v31 }
 0x2c2   : > { %v1892_v11 = vsel %vm1278_vm2, %v1860_v1, 0.0  ;;  %2100 = vmatmul.msk.f32.gmra.mxu3 %vm1542_vm11, %v1535_v62 }
 0x2c3   : > { %v1893_v58 = vadd.f32 %v1892_v11, %v1891_v20 }
 0x2c7   : > { %v1115_v38 = vpop.permute.xlu2 %1114 }
 0x2c8   : > { %v1113_v48 = vpop.permute.xlu1 %1112  ;;  %v1666_v13 = vpop.f32.mrf.mxu0 }
 0x2c9   : > { %v1490_v49 = vsel %vm1476_vm9, %v1457_v12, %v1113_v48  ;;  %1758 = vst.msk [vmem:[%s3968_s18 + $0x10] sm:$0xff] %vm1278_vm2, %v1666_v13  ;;  %v1791_v15 = vsel %vm1278_vm2, %v1666_v13, 0.0  ;;  %v1861_v33 = vmul.f32 %v1666_v13, %v1666_v13  ;;  %v1101_v42 = vpop.permute.xlu0 %1100 }
 0x2ca   : > { %v1792_v8 = vadd.f32 %v1791_v15, %v1790_v6  ;;  %v1523_v50 = vsel %vm1509_vm10, %v1490_v49, %v1209_v53  ;;  %v1484_v36 = vsel %vm1476_vm9, %v1451_v56, %v1101_v42 }
 0x2cb   : > { %v1894_v10 = vsel %vm1278_vm2, %v1861_v33, 0.0  ;;  %2088 = vmatmul.msk.f32.gmra.mxu1 %vm1542_vm11, %v1523_v50 }
 0x2cc   : > { %v1895_v5 = vadd.f32 %v1894_v10, %v1893_v58 }
 0x2cf   : > { %v4015_v39 = vpop.f32.mrf.mxu1  ;;  %v1211_v16 = vpop.permute.xlu2 %1210 }
 0x2d0   : > { %1764 = vst.msk [vmem:[%s3968_s18 + $0x40] sm:$0xff] %vm1278_vm2, %v4015_v39  ;;  %v1197_v4 = vpop.permute.xlu1 %1196 }
 0x2d1   : > { %v1043_v43 = vpop.permute.xlu0 %1042  ;;  %v1517_v44 = vsel %vm1509_vm10, %v1484_v36, %v1197_v4 }
 0x2d2   : > { %2082 = vmatmul.msk.f32.gmra.mxu0 %vm1542_vm11, %v1517_v44  ;;  %v1470_v35 = vsel %vm1443_vm8, %v3580_v32, %v1043_v43 }
 0x2d7   : > { %v1225_v62 = vpop.permute.xlu2 %1224 }
 0x2d8   : > { %v1139_v23 = vpop.permute.xlu1 %1138 }
 0x2d9   : > { %v1127_v0 = vpop.permute.xlu0 %1126  ;;  %v1503_v61 = vsel %vm1476_vm9, %v1470_v35, %v1139_v23 }
 0x2da   : > { %v1497_v21 = vsel %vm1476_vm9, %v1464_v57, %v1127_v0 }
 0x2db   : > { %v1530_v17 = vsel %vm1509_vm10, %v1497_v21, %v1223_v40 }
 0x2dc   : > { %2095 = vmatmul.msk.f32.gmra.mxu2 %vm1542_vm11, %v1530_v17 }
 0x2df   : > { %v1669_v52 = vpop.f32.mrf.mxu0  ;;  %v4029_v53 = vpop.f32.mrf.mxu1 }
 0x2e0   : > { %1759 = vst.msk [vmem:[%s3968_s18 + $0x18] sm:$0xff] %vm1278_vm2, %v1669_v52  ;;  %v1793_v26 = vsel %vm1278_vm2, %v1669_v52, 0.0  ;;  %v1862_v46 = vmul.f32 %v1669_v52, %v1669_v52  ;;  %v1019_v9 = vpop.permute.xlu1 %1018 }
 0x2e1   : > { %v1794_v19 = vadd.f32 %v1793_v26, %v1792_v8  ;;  %1765 = vst.msk [vmem:[%s3968_s18 + $0x48] sm:$0xff] %vm1278_vm2, %v4029_v53  ;;  %v1458_v60 = vsel %vm1443_vm8, %v3397_v29, %v1019_v9  ;;  %v1235_v3 = vpop.permute.xlu0 %1234  ;;  %v1117_v29 = vpop.permute.xlu2 %1116 }
 0x2e2   : > { %v1896_v1 = vsel %vm1278_vm2, %v1862_v46, 0.0  ;;  %v1536_v32 = vsel %vm1509_vm10, %v1503_v61, %v1235_v3  ;;  %v1491_v31 = vsel %vm1476_vm9, %v1458_v60, %v1115_v38 }
 0x2e3   : > { %v1897_v22 = vadd.f32 %v1896_v1, %v1895_v5  ;;  %2101 = vmatmul.msk.f32.gmra.mxu3 %vm1542_vm11, %v1536_v32  ;;  %v1524_v6 = vsel %vm1509_vm10, %v1491_v31, %v1211_v16 }
 0x2e4   : > { %2089 = vmatmul.msk.f32.gmra.mxu1 %vm1542_vm11, %v1524_v6 }
 0x2e8   : > { %v1045_v20 = vpop.permute.xlu1 %1044 }
 0x2e9   : > { %v1033_v11 = vpop.permute.xlu0 %1032  ;;  %v1471_v42 = vsel %vm1443_vm8, %v3442_v45, %v1045_v20  ;;  %v1213_v2 = vpop.permute.xlu2 %1212 }
 0x2ea   : > { %v1465_v12 = vsel %vm1443_vm8, %v3356_v24, %v1033_v11 }
 0x2ed   : > { %v4048_v58 = vpop.f32.mrf.mxu2 }
 0x2ee   : > { %1772 = vst.msk [vmem:[%s3968_s18 + $0x80] sm:$0xff] %vm1278_vm2, %v4048_v58 }
 0x2f0   : > { %v1141_v40 = vpop.permute.xlu1 %1140 }
 0x2f1   : > { %v1129_v48 = vpop.permute.xlu0 %1128  ;;  %v1504_v24 = vsel %vm1476_vm9, %v1471_v42, %v1141_v40  ;;  %v1227_v30 = vpop.permute.xlu2 %1226 }
 0x2f2   : > { %v1498_v13 = vsel %vm1476_vm9, %v1465_v12, %v1129_v48 }
 0x2f3   : > { %v1531_v49 = vsel %vm1509_vm10, %v1498_v13, %v1225_v62 }
 0x2f4   : > { %2096 = vmatmul.msk.f32.gmra.mxu2 %vm1542_vm11, %v1531_v49 }
 0x2f7   : > { %v1672_v15 = vpop.f32.mrf.mxu0  ;;  %v4058_v33 = vpop.f32.mrf.mxu1 }
 0x2f8   : > { %1760 = vst.msk [vmem:[%s3968_s18 + $0x20] sm:$0xff] %vm1278_vm2, %v1672_v15  ;;  %v1795_v37 = vsel %vm1278_vm2, %v1672_v15, 0.0  ;;  %v1863_v41 = vmul.f32 %v1672_v15, %v1672_v15  ;;  %v1021_v54 = vpop.permute.xlu1 %1020 }
 0x2f9   : > { %v1796_v8 = vadd.f32 %v1795_v37, %v1794_v19  ;;  %1766 = vst.msk [vmem:[%s3968_s18 + $0x50] sm:$0xff] %vm1278_vm2, %v4058_v33  ;;  %v1459_v50 = vsel %vm1443_vm8, %v3311_v25, %v1021_v54  ;;  %v1237_v47 = vpop.permute.xlu0 %1236  ;;  %v1049_v57 = vpop.permute.xlu2 %1048 }
 0x2fa   : > { %v1898_v45 = vsel %vm1278_vm2, %v1863_v41, 0.0  ;;  %v1537_v10 = vsel %vm1509_vm10, %v1504_v24, %v1237_v47  ;;  %v1492_v63 = vsel %vm1476_vm9, %v1459_v50, %v1117_v29  ;;  %v1473_v31 = vsel %vm1443_vm8, %v3611_v7, %v1049_v57 }
 0x2fb   : > { %v1899_v51 = vadd.f32 %v1898_v45, %v1897_v22  ;;  %2102 = vmatmul.msk.f32.gmra.mxu3 %vm1542_vm11, %v1537_v10  ;;  %v1525_v5 = vsel %vm1509_vm10, %v1492_v63, %v1213_v2  ;;  %v1867_v63 = vmul.f32 %v4015_v39, %v4015_v39 }
 0x2fc   : > { %2090 = vmatmul.msk.f32.gmra.mxu1 %vm1542_vm11, %v1525_v5 }
 0x300   : > { %v1047_v27 = vpop.permute.xlu1 %1046 }
 0x301   : > { %v1035_v28 = vpop.permute.xlu0 %1034  ;;  %v1472_v0 = vsel %vm1443_vm8, %v3614_v55, %v1047_v27  ;;  %v1229_v55 = vpop.permute.xlu2 %1228 }
 0x302   : > { %v1466_v4 = vsel %vm1443_vm8, %v3545_v34, %v1035_v28  ;;  %v1803_v28 = vsel %vm1278_vm2, %v4015_v39, 0.0  ;;  %v1807_v39 = vsel %vm1278_vm2, %v4058_v33, 0.0 }
 0x305   : > { %v4077_v25 = vpop.f32.mrf.mxu2 }
 0x306   : > { %1773 = vst.msk [vmem:[%s3968_s18 + $0x88] sm:$0xff] %vm1278_vm2, %v4077_v25 }
 0x308   : > { %v1143_v56 = vpop.permute.xlu1 %1142  ;;  %v4082_v36 = vpop.f32.mrf.mxu1 }
 0x309   : > { %1767 = vst.msk [vmem:[%s3968_s18 + $0x58] sm:$0xff] %vm1278_vm2, %v4082_v36  ;;  %v1131_v43 = vpop.permute.xlu0 %1130  ;;  %v1505_v16 = vsel %vm1476_vm9, %v1472_v0, %v1143_v56  ;;  %v1147_v20 = vpop.permute.xlu2 %1146 }
 0x30a   : > { %v1499_v44 = vsel %vm1476_vm9, %v1466_v4, %v1131_v43 }
 0x30b   : > { %v1532_v38 = vsel %vm1509_vm10, %v1499_v44, %v1227_v30  ;;  %v1868_v30 = vmul.f32 %v4029_v53, %v4029_v53  ;;  %v1906_v44 = vsel %vm1278_vm2, %v1867_v63, 0.0 }
 0x30c   : > { %2097 = vmatmul.msk.f32.gmra.mxu2 %vm1542_vm11, %v1532_v38  ;;  %v1805_v38 = vsel %vm1278_vm2, %v4029_v53, 0.0  ;;  %v1809_v53 = vsel %vm1278_vm2, %v4082_v36, 0.0 }
 0x30f   : > { %v1675_v23 = vpop.f32.mrf.mxu0 }
 0x310   : > { %1761 = vst.msk [vmem:[%s3968_s18 + $0x28] sm:$0xff] %vm1278_vm2, %v1675_v23  ;;  %v1797_v21 = vsel %vm1278_vm2, %v1675_v23, 0.0  ;;  %v1864_v34 = vmul.f32 %v1675_v23, %v1675_v23  ;;  %v1037_v17 = vpop.permute.xlu1 %1036  ;;  %v1869_v23 = vmul.f32 %v4058_v33, %v4058_v33 }
 0x311   : > { %v1798_v52 = vadd.f32 %v1797_v21, %v1796_v8  ;;  %v1239_v35 = vpop.permute.xlu0 %1238  ;;  %v1467_v19 = vsel %vm1443_vm8, %v3542_v14, %v1037_v17  ;;  %v1908_v21 = vsel %vm1278_vm2, %v1868_v30, 0.0 }
 0x312   : > { %v1900_v26 = vsel %vm1278_vm2, %v1864_v34, 0.0  ;;  %v1538_v46 = vsel %vm1509_vm10, %v1505_v16, %v1239_v35  ;;  %v1870_v34 = vmul.f32 %v4082_v36, %v4082_v36 }
 0x313   : > { %v1901_v9 = vadd.f32 %v1900_v26, %v1899_v51  ;;  %2103 = vmatmul.msk.f32.gmra.mxu3 %vm1542_vm11, %v1538_v46 }
 0x318   : > { %v1145_v61 = vpop.permute.xlu1 %1144 }
 0x319   : > { %v1133_v60 = vpop.permute.xlu0 %1132  ;;  %v1506_v22 = vsel %vm1476_vm9, %v1473_v31, %v1145_v61 }
 0x31a   : > { %v1500_v3 = vsel %vm1476_vm9, %v1467_v19, %v1133_v60 }
 0x31b   : > { %v1533_v1 = vsel %vm1509_vm10, %v1500_v3, %v1229_v55 }
 0x31c   : > { %2098 = vmatmul.msk.f32.gmra.mxu2 %vm1542_vm11, %v1533_v1 }
 0x31e   : > { %v4106_v32 = vpop.f32.mrf.mxu2 }
 0x31f   : > { %1774 = vst.msk [vmem:[%s3968_s18 + $0x90] sm:$0xff] %vm1278_vm2, %v4106_v32 }
 0x320   : > { %v1051_v14 = vpop.permute.xlu1 %1050 }
 0x321   : > { %v1241_v6 = vpop.permute.xlu0 %1240  ;;  %v1474_v29 = vsel %vm1443_vm8, %v3490_v18, %v1051_v14  ;;  %v1149_v18 = vpop.permute.xlu2 %1148 }
 0x322   : > { %v1539_v62 = vsel %vm1509_vm10, %v1506_v22, %v1241_v6  ;;  %v1507_v7 = vsel %vm1476_vm9, %v1474_v29, %v1147_v20 }
 0x323   : > { %2104 = vmatmul.msk.f32.gmra.mxu3 %vm1542_vm11, %v1539_v62 }
 0x325   : > { %v4116_v11 = vpop.f32.mrf.mxu3 }
 0x326   : > { %1780 = vst.msk [vmem:[%s3968_s18 + $0xc0] sm:$0xff] %vm1278_vm2, %v4116_v11 }
 0x328   : > { %v1696_v40 = vpop.f32.mrf.mxu1  ;;  %v1053_v13 = vpop.permute.xlu1 %1052 }
 0x329   : > { %1768 = vst.msk [vmem:[%s3968_s18 + $0x60] sm:$0xff] %vm1278_vm2, %v1696_v40  ;;  %v1243_v12 = vpop.permute.xlu0 %1242  ;;  %v1475_v49 = vsel %vm1443_vm8, %v3643_v59, %v1053_v13  ;;  %v1871_v35 = vmul.f32 %v1696_v40, %v1696_v40  ;;  %v1811_v33 = vsel %vm1278_vm2, %v1696_v40, 0.0  ;;  %v1875_v13 = vmul.f32 %v4048_v58, %v4048_v58 }
 0x32a   : > { %v1540_v48 = vsel %vm1509_vm10, %v1507_v7, %v1243_v12  ;;  %v1508_v41 = vsel %vm1476_vm9, %v1475_v49, %v1149_v18 }
 0x32b   : > { %2105 = vmatmul.msk.f32.gmra.mxu3 %vm1542_vm11, %v1540_v48  ;;  %v1914_v60 = vsel %vm1278_vm2, %v1871_v35, 0.0 }
 0x32f   : > { %v1678_v15 = vpop.f32.mrf.mxu0 }
 0x330   : > { %1762 = vst.msk [vmem:[%s3968_s18 + $0x30] sm:$0xff] %vm1278_vm2, %v1678_v15  ;;  %v1799_v42 = vsel %vm1278_vm2, %v1678_v15, 0.0  ;;  %v1865_v37 = vmul.f32 %v1678_v15, %v1678_v15 }
 0x331   : > { %v1800_v54 = vadd.f32 %v1799_v42, %v1798_v52  ;;  %v1245_v24 = vpop.permute.xlu0 %1244  ;;  %v1910_v52 = vsel %vm1278_vm2, %v1869_v23, 0.0 }
 0x332   : > { %v1902_v8 = vsel %vm1278_vm2, %v1865_v37, 0.0  ;;  %v1541_v50 = vsel %vm1509_vm10, %v1508_v41, %v1245_v24  ;;  %v1819_v37 = vsel %vm1278_vm2, %v4048_v58, 0.0  ;;  %v1876_v41 = vmul.f32 %v4077_v25, %v4077_v25 }
 0x333   : > { %v1903_v47 = vadd.f32 %v1902_v8, %v1901_v9  ;;  %2106 = vmatmul.msk.f32.gmra.mxu3 %vm1542_vm11, %v1541_v50  ;;  %v1912_v9 = vsel %vm1278_vm2, %v1870_v34, 0.0  ;;  %v1922_v50 = vsel %vm1278_vm2, %v1875_v13, 0.0 }
 0x334   : > { %v1924_v58 = vsel %vm1278_vm2, %v1876_v41, 0.0 }
 0x33e   : > { %v4137_v59 = vpop.f32.mrf.mxu2 }
 0x33f   : > { %1775 = vst.msk [vmem:[%s3968_s18 + $0x98] sm:$0xff] %vm1278_vm2, %v4137_v59 }
 0x345   : > { %v4142_v2 = vpop.f32.mrf.mxu3 }
 0x346   : > { %1781 = vst.msk [vmem:[%s3968_s18 + $0xc8] sm:$0xff] %vm1278_vm2, %v4142_v2 }
 0x348   : > { %v1699_v45 = vpop.f32.mrf.mxu1 }
 0x349   : > { %1769 = vst.msk [vmem:[%s3968_s18 + $0x68] sm:$0xff] %vm1278_vm2, %v1699_v45  ;;  %v1872_v61 = vmul.f32 %v1699_v45, %v1699_v45  ;;  %v1813_v3 = vsel %vm1278_vm2, %v1699_v45, 0.0  ;;  %v1877_v45 = vmul.f32 %v4106_v32, %v4106_v32 }
 0x34b   : > { %v1916_v31 = vsel %vm1278_vm2, %v1872_v61, 0.0  ;;  %v1926_v30 = vsel %vm1278_vm2, %v1877_v45, 0.0  ;;  %v1883_v61 = vmul.f32 %v4116_v11, %v4116_v11 }
 0x34f   : > { %v1681_v10 = vpop.f32.mrf.mxu0 }
 0x350   : > { %1763 = vst.msk [vmem:[%s3968_s18 + $0x38] sm:$0xff] %vm1278_vm2, %v1681_v10  ;;  %v1801_v51 = vsel %vm1278_vm2, %v1681_v10, 0.0  ;;  %v1866_v5 = vmul.f32 %v1681_v10, %v1681_v10 }
 0x351   : > { %v1802_v27 = vadd.f32 %v1801_v51, %v1800_v54 }
 0x352   : > { %v1904_v56 = vsel %vm1278_vm2, %v1866_v5, 0.0  ;;  %v1823_v5 = vsel %vm1278_vm2, %v4106_v32, 0.0 }
 0x353   : > { %v1804_v4 = vadd.f32 %v1803_v28, %v1802_v27  ;;  %v1905_v43 = vadd.f32 %v1904_v56, %v1903_v47  ;;  %v1821_v47 = vsel %vm1278_vm2, %v4077_v25, 0.0  ;;  %v1878_v27 = vmul.f32 %v4137_v59, %v4137_v59 }
 0x354   : > { %v1825_v56 = vsel %vm1278_vm2, %v4137_v59, 0.0 }
 0x355   : > { %v1806_v57 = vadd.f32 %v1805_v38, %v1804_v4  ;;  %v1907_v0 = vadd.f32 %v1906_v44, %v1905_v43  ;;  %v1928_v38 = vsel %vm1278_vm2, %v1878_v27, 0.0 }
 0x357   : > { %v1808_v17 = vadd.f32 %v1807_v39, %v1806_v57  ;;  %v1909_v16 = vadd.f32 %v1908_v21, %v1907_v0 }
 0x359   : > { %v1911_v26 = vadd.f32 %v1910_v52, %v1909_v16  ;;  %v1810_v46 = vadd.f32 %v1809_v53, %v1808_v17 }
 0x35b   : > { %v1812_v55 = vadd.f32 %v1811_v33, %v1810_v46  ;;  %v1913_v19 = vadd.f32 %v1912_v9, %v1911_v26 }
 0x35d   : > { %v1814_v1 = vadd.f32 %v1813_v3, %v1812_v55  ;;  %v1915_v36 = vadd.f32 %v1914_v60, %v1913_v19 }
 0x35f   : > { %v1720_v22 = vpop.f32.mrf.mxu2  ;;  %v1917_v14 = vadd.f32 %v1916_v31, %v1915_v36  ;;  %v1884_v36 = vmul.f32 %v4142_v2, %v4142_v2 }
 0x360   : > { %1776 = vst.msk [vmem:[%s3968_s18 + $0xa0] sm:$0xff] %vm1278_vm2, %v1720_v22  ;;  %v1879_v4 = vmul.f32 %v1720_v22, %v1720_v22  ;;  %v1827_v23 = vsel %vm1278_vm2, %v1720_v22, 0.0 }
 0x361   : > { %v1702_v6 = vpop.f32.mrf.mxu1 }
 0x362   : > { %1770 = vst.msk [vmem:[%s3968_s18 + $0x70] sm:$0xff] %vm1278_vm2, %v1702_v6  ;;  %v1873_v20 = vmul.f32 %v1702_v6, %v1702_v6  ;;  %v1815_v29 = vsel %vm1278_vm2, %v1702_v6, 0.0  ;;  %v1930_v0 = vsel %vm1278_vm2, %v1879_v4, 0.0  ;;  %v1938_v6 = vsel %vm1278_vm2, %v1883_v61, 0.0 }
 0x363   : > { %v1816_v12 = vadd.f32 %v1815_v29, %v1814_v1  ;;  %v1835_v1 = vsel %vm1278_vm2, %v4116_v11, 0.0  ;;  %v1940_v11 = vsel %vm1278_vm2, %v1884_v36, 0.0 }
 0x364   : > { %v1918_v7 = vsel %vm1278_vm2, %v1873_v20, 0.0  ;;  %v1837_v20 = vsel %vm1278_vm2, %v4142_v2, 0.0 }
 0x365   : > { %v1919_v15 = vadd.f32 %v1918_v7, %v1917_v14 }
 0x366   : > { %v4181_v62 = vpop.f32.mrf.mxu3 }
 0x367   : > { %1782 = vst.msk [vmem:[%s3968_s18 + $0xd0] sm:$0xff] %vm1278_vm2, %v4181_v62  ;;  %v1885_v29 = vmul.f32 %v4181_v62, %v4181_v62 }
 0x377   : > { %v1723_v40 = vpop.f32.mrf.mxu2 }
 0x378   : > { %1777 = vst.msk [vmem:[%s3968_s18 + $0xa8] sm:$0xff] %vm1278_vm2, %v1723_v40  ;;  %v1880_v59 = vmul.f32 %v1723_v40, %v1723_v40  ;;  %v1829_v16 = vsel %vm1278_vm2, %v1723_v40, 0.0 }
 0x379   : > { %v1705_v48 = vpop.f32.mrf.mxu1 }
 0x37a   : > { %1771 = vst.msk [vmem:[%s3968_s18 + $0x78] sm:$0xff] %vm1278_vm2, %v1705_v48  ;;  %v1817_v49 = vsel %vm1278_vm2, %v1705_v48, 0.0  ;;  %v1874_v18 = vmul.f32 %v1705_v48, %v1705_v48  ;;  %v1932_v35 = vsel %vm1278_vm2, %v1880_v59, 0.0 }
 0x37b   : > { %v1818_v42 = vadd.f32 %v1817_v49, %v1816_v12  ;;  %v1839_v12 = vsel %vm1278_vm2, %v4181_v62, 0.0 }
 0x37c   : > { %v1920_v54 = vsel %vm1278_vm2, %v1874_v18, 0.0 }
 0x37d   : > { %v1820_v24 = vadd.f32 %v1819_v37, %v1818_v42  ;;  %v1921_v8 = vadd.f32 %v1920_v54, %v1919_v15  ;;  %v1942_v15 = vsel %vm1278_vm2, %v1885_v29, 0.0 }
 0x37e   : > { %v1741_v10 = vpop.f32.mrf.mxu3 }
 0x37f   : > { %v1822_v63 = vadd.f32 %v1821_v47, %v1820_v24  ;;  %v1923_v51 = vadd.f32 %v1922_v50, %v1921_v8  ;;  %1783 = vst.msk [vmem:[%s3968_s18 + $0xd8] sm:$0xff] %vm1278_vm2, %v1741_v10  ;;  %v1886_v13 = vmul.f32 %v1741_v10, %v1741_v10  ;;  %v1841_v2 = vsel %vm1278_vm2, %v1741_v10, 0.0 }
 0x381   : > { %v1824_v28 = vadd.f32 %v1823_v5, %v1822_v63  ;;  %v1925_v25 = vadd.f32 %v1924_v58, %v1923_v51  ;;  %v1944_v41 = vsel %vm1278_vm2, %v1886_v13, 0.0 }
 0x383   : > { %v1927_v43 = vadd.f32 %v1926_v30, %v1925_v25  ;;  %v1826_v44 = vadd.f32 %v1825_v56, %v1824_v28 }
 0x385   : > { %v1828_v32 = vadd.f32 %v1827_v23, %v1826_v44  ;;  %v1929_v57 = vadd.f32 %v1928_v38, %v1927_v43 }
 0x387   : > { %v1931_v21 = vadd.f32 %v1930_v0, %v1929_v57  ;;  %v1830_v53 = vadd.f32 %v1829_v16, %v1828_v32 }
 0x389   : > { %v1933_v9 = vadd.f32 %v1932_v35, %v1931_v21 }
 0x38f   : > { %v1726_v39 = vpop.f32.mrf.mxu2 }
 0x390   : > { %1778 = vst.msk [vmem:[%s3968_s18 + $0xb0] sm:$0xff] %vm1278_vm2, %v1726_v39  ;;  %v1881_v17 = vmul.f32 %v1726_v39, %v1726_v39  ;;  %v1831_v52 = vsel %vm1278_vm2, %v1726_v39, 0.0 }
 0x391   : > { %v1832_v46 = vadd.f32 %v1831_v52, %v1830_v53 }
 0x392   : > { %v1934_v26 = vsel %vm1278_vm2, %v1881_v17, 0.0 }
 0x393   : > { %v1935_v60 = vadd.f32 %v1934_v26, %v1933_v9 }
 0x396   : > { %v1744_v34 = vpop.f32.mrf.mxu3 }
 0x397   : > { %1784 = vst.msk [vmem:[%s3968_s18 + $0xe0] sm:$0xff] %vm1278_vm2, %v1744_v34  ;;  %v1887_v54 = vmul.f32 %v1744_v34, %v1744_v34  ;;  %v1843_v8 = vsel %vm1278_vm2, %v1744_v34, 0.0 }
 0x399   : > { %v1946_v47 = vsel %vm1278_vm2, %v1887_v54, 0.0 }
 0x39f   : > { %v1729_v33 = vpop.f32.mrf.mxu2 }
 0x3a0   : > { %1779 = vst.msk [vmem:[%s3968_s18 + $0xb8] sm:$0xff] %vm1278_vm2, %v1729_v33  ;;  %v1833_v55 = vsel %vm1278_vm2, %v1729_v33, 0.0  ;;  %v1882_v19 = vmul.f32 %v1729_v33, %v1729_v33 }
 0x3a1   : > { %v1834_v3 = vadd.f32 %v1833_v55, %v1832_v46 }
 0x3a2   : > { %v1936_v31 = vsel %vm1278_vm2, %v1882_v19, 0.0 }
 0x3a3   : > { %v1836_v22 = vadd.f32 %v1835_v1, %v1834_v3  ;;  %v1937_v14 = vadd.f32 %v1936_v31, %v1935_v60 }
 0x3a5   : > { %v1838_v40 = vadd.f32 %v1837_v20, %v1836_v22  ;;  %v1939_v7 = vadd.f32 %v1938_v6, %v1937_v14 }
 0x3a6   : > { %v1747_v48 = vpop.f32.mrf.mxu3 }
 0x3a7   : > { %v1840_v49 = vadd.f32 %v1839_v12, %v1838_v40  ;;  %v1941_v18 = vadd.f32 %v1940_v11, %v1939_v7  ;;  %1785 = vst.msk [vmem:[%s3968_s18 + $0xe8] sm:$0xff] %vm1278_vm2, %v1747_v48  ;;  %v1888_v45 = vmul.f32 %v1747_v48, %v1747_v48  ;;  %v1845_v51 = vsel %vm1278_vm2, %v1747_v48, 0.0 }
 0x3a9   : > { %v1943_v42 = vadd.f32 %v1942_v15, %v1941_v18  ;;  %v1842_v37 = vadd.f32 %v1841_v2, %v1840_v49  ;;  %v1948_v5 = vsel %vm1278_vm2, %v1888_v45, 0.0 }
 0x3ab   : > { %v1945_v24 = vadd.f32 %v1944_v41, %v1943_v42  ;;  %v1844_v62 = vadd.f32 %v1843_v8, %v1842_v37 }
 0x3ad   : > { %v1947_v63 = vadd.f32 %v1946_v47, %v1945_v24  ;;  %v1846_v58 = vadd.f32 %v1845_v51, %v1844_v62 }
 0x3ae   : > { %v1750_v50 = vpop.f32.mrf.mxu3 }
 0x3af   : > { %1786 = vst.msk [vmem:[%s3968_s18 + $0xf0] sm:$0xff] %vm1278_vm2, %v1750_v50  ;;  %v1889_v10 = vmul.f32 %v1750_v50, %v1750_v50  ;;  %v1847_v27 = vsel %vm1278_vm2, %v1750_v50, 0.0  ;;  %v1949_v28 = vadd.f32 %v1948_v5, %v1947_v63 }
 0x3b0   : > { %v1848_v30 = vadd.f32 %v1847_v27, %v1846_v58 }
 0x3b1   : > { %v1950_v25 = vsel %vm1278_vm2, %v1889_v10, 0.0 }
 0x3b2   : > { %v1951_v44 = vadd.f32 %v1950_v25, %v1949_v28 }
 0x3b6   : > { %v1753_v56 = vpop.f32.mrf.mxu3 }
 0x3b7   : > { %1787 = vst.msk [vmem:[%s3968_s18 + $0xf8] sm:$0xff] %vm1278_vm2, %v1753_v56  ;;  %v1849_v4 = vsel %vm1278_vm2, %v1753_v56, 0.0  ;;  %v1890_v43 = vmul.f32 %v1753_v56, %v1753_v56 }
 0x3b8   : > { %v1850_v38 = vadd.f32 %v1849_v4, %v1848_v30 }
 0x3b9   : > { %v1952_v23 = vsel %vm1278_vm2, %v1890_v43, 0.0 }
 0x3ba   : > { %v1851_v32 = vrot.slane %v1850_v38, 4  ;;  %v1953_v57 = vadd.f32 %v1952_v23, %v1951_v44 }
 0x3bc   : > { %v1852_v0 = vadd.f32 %v1851_v32, %v1850_v38  ;;  %v1954_v21 = vrot.slane %v1953_v57, 4 }
 0x3be   : > { %v1853_v39 = vrot.slane %v1852_v0, 2  ;;  %v1955_v34 = vadd.f32 %v1954_v21, %v1953_v57 }
 0x3c0   : > { %v1854_v59 = vadd.f32 %v1853_v39, %v1852_v0  ;;  %v1956_v17 = vrot.slane %v1955_v34, 2 }
 0x3c2   : > { %v1855_v16 = vrot.slane %v1854_v59, 1  ;;  %v1957_v52 = vadd.f32 %v1956_v17, %v1955_v34 }
 0x3c4   : > { %v1856_v53 = vadd.f32 %v1855_v16, %v1854_v59  ;;  %v1958_v35 = vrot.slane %v1957_v52, 1 }
 0x3c6   : > { %1858 = vst.msk [vmem:[%s211_s21] sm:$0x1] %vm1857_vm12, %v1856_v53  ;;  %v1959_v26 = vadd.f32 %v1958_v35, %v1957_v52 }
 0x3c8   : > { %1960 = vst.msk [vmem:[%s214_s24] sm:$0x1] %vm1857_vm12, %v1959_v26 }
 0x3c9 PF: > { %s15_s15 = sadd.s32 1, %s2181_s15  }
 0x3ca   : > { %p12_p4 = scmp.ge.s32.totalorder %s15_s15, 4  }
 0x3cc   :  { %14 = sbr.rel (!%p12_p4) target bundleno = 1 (0x1), region = 82 }

// kernel: residual_block.4
= control target key start
LH: loop header
LB: loop body
LE: loop exit
PB: predicated region body
PF: predicated region fallthrough
CT: control target
= control target key end

     0   :  { %s2521_s21 = smov 0   ;;  %s4713_s0 = inlined_call_operand.vmem [shape: f32[2,18,18,4], index: 0, kind: input, shape index: {}]   ;;  %s4714_s1 = inlined_call_operand.vmem [shape: f32[1,4], index: 1, kind: input, shape index: {}]   ;;  %s4715_s2 = inlined_call_operand.vmem [shape: f32[1,4], index: 2, kind: input, shape index: {}]   ;;  %s4716_s3 = inlined_call_operand.vmem [shape: f32[36,4], index: 3, kind: input, shape index: {}]   ;;  %s4717_s4 = inlined_call_operand.vmem [shape: f32[2,256,4], index: 4, kind: output, shape index: {0}]   ;;  %s4718_s5 = inlined_call_operand.vmem [shape: f32[2,1,4], index: 5, kind: output, shape index: {1}]   ;;  %s4719_s6 = inlined_call_operand.vmem [shape: f32[2,1,4], index: 6, kind: output, shape index: {2}]  }
   0x1 LB: > { %s2378_s22 = sadd.s32 4294967295, %s2475_s21   ;;  %p2382_p0 = scmp.ge.s32.totalorder %s2475_s21, 1  ;;  %s2475_s21 = sphi %s2521_s21, %s17_s21  }
   0x2   : > { %p217_p1 = scmp.lt.s32.totalorder %s2475_s21, 3 }
   0x4   : > { %p218_p2 = pnand %p2382_p0, %p217_p1 }
   0x6   : > { %221 = sbr.rel (%p218_p2) target bundleno = 967 (0x3c7), region = 36 }
   0xb   : > { %p253_p3 = scmp.lt.s32.totalorder %s2378_s22, 1  ;;  %v493_v0 = vlaneseq  ;;  %v4720_v1 = vmov 0.0   ;;  %v2542_v5 = vld [vmem:[%s4714_s1] ss:$0 sm:$0xff]  ;;  %s2478_s26 = smov 4   ;;  %vm634_vm0 = vcmask 1046528  }
   0xc   : > { %v2530_v2 = vrot.slane %v4720_v1, 1  ;;  %v2556_v7 = vld [vmem:[%s4715_s2] ss:$0 sm:$0xff]  ;;  %vm715_vm3 = vcmask 1045504   ;;  %s2479_s8 = smov 8   ;;  %s2480_s9 = smov 12  }
   0xd   : > { %s5240_s22 = smov (!%p253_p3, %s2378_s22), 1  ;;  %v2534_v3 = vshrl.u32 %v493_v0, 7  ;;  %s2481_s14 = smov 16   ;;  %vm1590_vm4 = vcmask 31744   ;;  %vm1623_vm5 = vcmask 64512   ;;  %vm1656_vm6 = vcmask 97280  }
   0xe   : > { %4858 = vst [vmem:[#allocation2_spill] sm:$0xff] %v2530_v2  ;;  %v2455_v4 = vpack.i.bf16 %v2530_v2, %v2530_v2  ;;  %s2437_s23 = smul.u32 432, %s5240_s22  ;;  %s2482_s15 = smov 20   ;;  %vm1689_vm7 = vcmask 130048   ;;  %vm1722_vm8 = vcmask 162816   ;;  %vm1951_vm9 = vcmask 1043456  }
   0xf   : > { %v2546_v6 = vadd.s32 16, %v2534_v3  ;;  %vm497_vm1 = vcmp.ge.s32.totalorder %v2534_v3, 1  ;;  %s2483_s16 = smov 24   ;;  %s2484_s17 = smov 28   ;;  %vm1755_vm10 = vcmask 195584   ;;  %vm1788_vm11 = vcmask 228352  }
  0x10   : > { %2456 = vrot.lane.b32.xlu0 %v2455_v4, %s2478_s26  ;;  %s2551_s29 = scalar_lea.vmem %s4713_s0, %s2437_s23  ;;  %s2485_s18 = smov 32   ;;  %vm1821_vm12 = vcmask 261120   ;;  %vm1854_vm13 = vcmask 293888   ;;  %vm2169_vm14 = vcmask 24576  }
  0x11   : > { %v276_v8 = vld [vmem:[%s2551_s29 + $0x38] sm:$0xff]  ;;  %v277_v9 = vld [vmem:[%s2551_s29 + $0x40] sm:$0x3]  ;;  %v274_v13 = vld [vmem:[%s2551_s29 + $0x28] sm:$0x3]  ;;  %vm508_vm2 = vcmp.le.s32.totalorder %v2546_v6, 16  ;;  %s265_s13 = scalar_lea.vmem %s4718_s5, %s5240_s22 }
  0x12   : > { %v273_v10 = vld [vmem:[%s2551_s29 + $0x20] sm:$0xff]  ;;  %v334_v11 = vmul.f32 %v2542_v5, %v276_v8  ;;  %v335_v12 = vmul.f32 %v2542_v5, %v277_v9  ;;  %v272_v15 = vld [vmem:[%s2551_s29 + $0x18] sm:$0xff]  ;;  %v278_v16 = vld [vmem:[%s2551_s29 + $0x48] sm:$0xff]  ;;  %v332_v17 = vmul.f32 %v2542_v5, %v274_v13  ;;  %s2421_s7 = sshll.u32 %s5240_s22, 8 }
  0x13   : > { %v331_v14 = vmul.f32 %v2542_v5, %v273_v10  ;;  %v330_v18 = vmul.f32 %v2542_v5, %v272_v15  ;;  %v279_v19 = vld [vmem:[%s2551_s29 + $0x50] sm:$0xff]  ;;  %v336_v20 = vmul.f32 %v2542_v5, %v278_v16  ;;  %v280_v38 = vld [vmem:[%s2551_s29 + $0x58] sm:$0x3]  ;;  %v282_v43 = vld [vmem:[%s2551_s29 + $0x68] sm:$0xff]  ;;  %s4404_s10 = scalar_lea.vmem %s4717_s4, %s2421_s7 }
  0x14   : > { %v275_v21 = vld [vmem:[%s2551_s29 + $0x30] sm:$0xff]  ;;  %v392_v22 = vadd.f32 %v2556_v7, %v334_v11  ;;  %v393_v23 = vadd.f32 %v2556_v7, %v335_v12  ;;  %v337_v25 = vmul.f32 %v2542_v5, %v279_v19  ;;  %v390_v26 = vadd.f32 %v2556_v7, %v332_v17  ;;  %v281_v53 = vld [vmem:[%s2551_s29 + $0x60] sm:$0xff]  ;;  %v284_v58 = vld [vmem:[%s2551_s29 + $0x78] sm:$0xff] }
  0x15   : > { %v389_v24 = vadd.f32 %v2556_v7, %v331_v14  ;;  %v388_v27 = vadd.f32 %v2556_v7, %v330_v18  ;;  %v394_v28 = vadd.f32 %v2556_v7, %v336_v20  ;;  %v333_v29 = vmul.f32 %v2542_v5, %v275_v21  ;;  %v283_v48 = vld [vmem:[%s2551_s29 + $0x70] sm:$0x3]  ;;  %v285_v59 = vld [vmem:[%s2551_s29 + $0x80] sm:$0xff]  ;;  %v288_v15 = vld [vmem:[%s2551_s29 + $0x98] sm:$0xff] }
  0x16   : > { %v2582_v30 = vmax.f32 %v392_v22, 0.0  ;;  %v447_v31 = vmax.f32 %v393_v23, 0.0  ;;  %v395_v33 = vadd.f32 %v2556_v7, %v337_v25  ;;  %v444_v34 = vmax.f32 %v390_v26, 0.0  ;;  %v287_v0 = vld [vmem:[%s2551_s29 + $0x90] sm:$0xff]  ;;  %v306_v1 = vld [vmem:[%s2551_s29 + $0x128] sm:$0xff] }
  0x17   : > { %v2584_v32 = vmax.f32 %v389_v24, 0.0  ;;  %v442_v35 = vmax.f32 %v388_v27, 0.0  ;;  %v448_v36 = vmax.f32 %v394_v28, 0.0  ;;  %v391_v37 = vadd.f32 %v2556_v7, %v333_v29 }
  0x18   : > { %v2591_v39 = vsel %vm508_vm2, %v447_v31, 0.0  ;;  %v646_v40 = vrot.slane %v2582_v30, 1  ;;  %v2595_v42 = vmax.f32 %v395_v33, 0.0  ;;  %v2601_v45 = vsel %vm508_vm2, %v444_v34, 0.0 }
  0x19   : > { %4859 = vst [vmem:[#allocation3_spill] sm:$0xff] %v2584_v32  ;;  %v641_v41 = vrot.slane %v2584_v32, 1  ;;  %v648_v44 = vrot.slane %v2591_v39, 1  ;;  %v2605_v46 = vsel %vm497_vm1, %v442_v35, 0.0  ;;  %v2609_v47 = vsel %vm497_vm1, %v448_v36, 0.0 }
  0x1a   : > { %4860 = vst [vmem:[#allocation4_spill] sm:$0xff] %v2595_v42  ;;  %v643_v49 = vrot.slane %v2601_v45, 1  ;;  %v640_v50 = vrot.slane %v2605_v46, 1  ;;  %v650_v51 = vrot.slane %v2609_v47, 1  ;;  %v651_v52 = vrot.slane %v2595_v42, 1 }
  0x1b   : > { %4861 = vst [vmem:[#allocation5_spill] sm:$0xff] %v2605_v46  ;;  %v2618_v54 = vsel %vm634_vm0, %v646_v40, %v648_v44  ;;  %v445_v55 = vmax.f32 %v391_v37, 0.0  ;;  %v338_v56 = vmul.f32 %v2542_v5, %v280_v38  ;;  %v340_v57 = vmul.f32 %v2542_v5, %v282_v43  ;;  %v286_v38 = vld [vmem:[%s2551_s29 + $0x88] sm:$0x3]  ;;  %v292_v44 = vld [vmem:[%s2551_s29 + $0xb8] sm:$0x3] }
  0x1c   : > { %4862 = vst [vmem:[#allocation6_spill] sm:$0xff] %v2609_v47  ;;  %832 = vrot.lane.b32.xlu2 %v2618_v54, %s2478_s26  ;;  %v2627_v60 = vsel %vm634_vm0, %v641_v41, %v643_v49  ;;  %v2630_v61 = vsel %vm634_vm0, %v640_v50, %v641_v41  ;;  %v2633_v62 = vsel %vm634_vm0, %v650_v51, %v651_v52  ;;  %v291_v50 = vld [vmem:[%s2551_s29 + $0xb0] sm:$0xff] }
  0x1d   : > { %4863 = vst [vmem:[#allocation7_spill] sm:$0xff] %v2618_v54  ;;  %v341_v63 = vmul.f32 %v2542_v5, %v283_v48  ;;  %828 = vrot.lane.b32.xlu1 %v2627_v60, %s2478_s26  ;;  %826 = vrot.lane.b32.xlu0 %v2630_v61, %s2478_s26  ;;  %v2643_v4 = vsel %vm497_vm1, %v445_v55, 0.0  ;;  %v396_v8 = vadd.f32 %v2556_v7, %v338_v56  ;;  %v290_v56 = vld [vmem:[%s2551_s29 + $0xa8] sm:$0xff] }
  0x1e   : > { %4864 = vst [vmem:[#allocation8_spill] sm:$0xff] %v2627_v60  ;;  %v398_v9 = vadd.f32 %v2556_v7, %v340_v57  ;;  %v339_v10 = vmul.f32 %v2542_v5, %v281_v53  ;;  %v645_v11 = vrot.slane %v2643_v4, 1  ;;  %v342_v13 = vmul.f32 %v2542_v5, %v284_v58  ;;  %v293_v57 = vld [vmem:[%s2551_s29 + $0xc0] sm:$0xff]  ;;  %v294_v58 = vld [vmem:[%s2551_s29 + $0xc8] sm:$0xff] }
  0x1f   : > { %4865 = vst [vmem:[#allocation9_spill] sm:$0xff] %v2630_v61  ;;  %v399_v12 = vadd.f32 %v2556_v7, %v341_v63  ;;  %v343_v14 = vmul.f32 %v2542_v5, %v285_v59  ;;  %v450_v16 = vmax.f32 %v396_v8, 0.0  ;;  %v345_v19 = vmul.f32 %v2542_v5, %v287_v0 }
  0x20   : > { %4866 = vst [vmem:[#allocation10_spill] sm:$0xff] %v2633_v62  ;;  %v2653_v17 = vmax.f32 %v398_v9, 0.0  ;;  %v397_v18 = vadd.f32 %v2556_v7, %v339_v10  ;;  %v2658_v20 = vsel %vm634_vm0, %v645_v11, %v646_v40  ;;  %v400_v22 = vadd.f32 %v2556_v7, %v342_v13  ;;  %v289_v40 = vld [vmem:[%s2551_s29 + $0xa0] sm:$0x3] }
  0x21   : > { %4868 = vst [vmem:[#allocation12_spill] sm:$0xff] %v2658_v20  ;;  %v453_v21 = vmax.f32 %v399_v12, 0.0  ;;  %v401_v23 = vadd.f32 %v2556_v7, %v343_v14  ;;  %v2664_v24 = vsel %vm508_vm2, %v450_v16, 0.0  ;;  %v346_v27 = vmul.f32 %v2542_v5, %v288_v15 }
  0x22   : > { %4867 = vst [vmem:[#allocation11_spill] sm:$0xff] %v2653_v17  ;;  %v656_v25 = vrot.slane %v2653_v17, 1  ;;  %v451_v26 = vmax.f32 %v397_v18, 0.0  ;;  %v653_v28 = vrot.slane %v2664_v24, 1  ;;  %v454_v31 = vmax.f32 %v400_v22, 0.0 }
  0x23   : > { %v2671_v29 = vsel %vm508_vm2, %v453_v21, 0.0  ;;  %v2673_v33 = vmax.f32 %v401_v23, 0.0  ;;  %v403_v36 = vadd.f32 %v2556_v7, %v345_v19  ;;  %v404_v37 = vadd.f32 %v2556_v7, %v346_v27  ;;  %v296_v27 = vld [vmem:[%s2551_s29 + $0xd8] sm:$0xff] }
  0x24   : > { %v658_v34 = vrot.slane %v2671_v29, 1  ;;  %v2678_v35 = vsel %vm497_vm1, %v451_v26, 0.0  ;;  %834 = vrot.lane.b32.xlu2 %v2633_v62, %s2478_s26  ;;  %v2687_v41 = vsel %vm634_vm0, %v651_v52, %v653_v28  ;;  %v2691_v43 = vsel %vm497_vm1, %v454_v31, 0.0 }
  0x25   : > { %4869 = vst [vmem:[#allocation13_spill] sm:$0xff] %v2673_v33  ;;  %830 = vrot.lane.b32.xlu1 %v2658_v20, %s2478_s26  ;;  %836 = vrot.lane.b32.xlu0 %v2687_v41, %s2478_s26  ;;  %v655_v48 = vrot.slane %v2678_v35, 1  ;;  %v457_v49 = vmax.f32 %v403_v36, 0.0  ;;  %v660_v51 = vrot.slane %v2691_v43, 1  ;;  %v661_v52 = vrot.slane %v2673_v33, 1  ;;  %v4983_v3 = vld [vmem:[#allocation8_spill] sm:$0xff] }
  0x26   : > { %4870 = vst [vmem:[#allocation14_spill] sm:$0xff] %v2687_v41  ;;  %v344_v53 = vmul.f32 %v2542_v5, %v286_v38  ;;  %v347_v55 = vmul.f32 %v2542_v5, %v289_v40  ;;  %v2708_v59 = vsel %vm634_vm0, %v656_v25, %v658_v34  ;;  %v2710_v63 = vmax.f32 %v404_v37, 0.0  ;;  %v315_v41 = vld [vmem:[%s2551_s29 + $0x170] sm:$0xff] }
  0x27   : > { %4871 = vst [vmem:[#allocation15_spill] sm:$0xff] %v2691_v43  ;;  %v350_v0 = vmul.f32 %v2542_v5, %v292_v44  ;;  %v2715_v8 = vsel %vm497_vm1, %v457_v49, 0.0  ;;  %v349_v11 = vmul.f32 %v2542_v5, %v291_v50  ;;  %v348_v13 = vmul.f32 %v2542_v5, %v290_v56  ;;  %v297_v44 = vld [vmem:[%s2551_s29 + $0xe0] sm:$0xff]  ;;  %v295_v49 = vld [vmem:[%s2551_s29 + $0xd0] sm:$0x3] }
  0x28   : > { %4872 = vst [vmem:[#allocation16_spill] sm:$0xff] %v2708_v59  ;;  %v402_v9 = vadd.f32 %v2556_v7, %v344_v53  ;;  %v405_v10 = vadd.f32 %v2556_v7, %v347_v55  ;;  %v351_v14 = vmul.f32 %v2542_v5, %v293_v57  ;;  %v352_v15 = vmul.f32 %v2542_v5, %v294_v58  ;;  %v298_v53 = vld [vmem:[%s2551_s29 + $0xe8] sm:$0x3] }
  0x29   : > { %4873 = vst [vmem:[#allocation17_spill] sm:$0xff] %v2715_v8  ;;  %v408_v12 = vadd.f32 %v2556_v7, %v350_v0  ;;  %v2725_v16 = vsel %vm634_vm0, %v655_v48, %v656_v25  ;;  %v2728_v18 = vsel %vm634_vm0, %v660_v51, %v661_v52  ;;  %v666_v22 = vrot.slane %v2710_v63, 1 }
  0x2a   : > { %4874 = vst [vmem:[#allocation18_spill] sm:$0xff] %v2725_v16  ;;  %v456_v19 = vmax.f32 %v402_v9, 0.0  ;;  %v459_v21 = vmax.f32 %v405_v10, 0.0  ;;  %v406_v23 = vadd.f32 %v2556_v7, %v348_v13  ;;  %v409_v26 = vadd.f32 %v2556_v7, %v351_v14  ;;  %v301_v14 = vld [vmem:[%s2551_s29 + $0x100] sm:$0x3] }
  0x2b   : > { %4875 = vst [vmem:[#allocation19_spill] sm:$0xff] %v2728_v18  ;;  %v665_v25 = vrot.slane %v2715_v8, 1  ;;  %v407_v34 = vadd.f32 %v2556_v7, %v349_v11  ;;  %v462_v36 = vmax.f32 %v408_v12, 0.0  ;;  %v410_v37 = vadd.f32 %v2556_v7, %v352_v15 }
  0x2c   : > { %840 = vrot.lane.b32.xlu2 %v2708_v59, %s2478_s26  ;;  %v2739_v28 = vsel %vm508_vm2, %v456_v19, 0.0  ;;  %v2743_v31 = vsel %vm508_vm2, %v459_v21, 0.0  ;;  %v354_v48 = vmul.f32 %v2542_v5, %v296_v27  ;;  %v460_v50 = vmax.f32 %v406_v23, 0.0  ;;  %v302_v23 = vld [vmem:[%s2551_s29 + $0x108] sm:$0xff] }
  0x2d   : > { %838 = vrot.lane.b32.xlu1 %v2725_v16, %s2478_s26  ;;  %842 = vrot.lane.b32.xlu0 %v2728_v18, %s2478_s26  ;;  %v663_v38 = vrot.slane %v2739_v28, 1  ;;  %v668_v40 = vrot.slane %v2743_v31, 1  ;;  %v463_v51 = vmax.f32 %v409_v26, 0.0  ;;  %v2758_v55 = vsel %vm634_vm0, %v665_v25, %v666_v22  ;;  %v312_v18 = vld [vmem:[%s2551_s29 + $0x158] sm:$0xff] }
  0x2e   : > { %4876 = vst [vmem:[#allocation20_spill] sm:$0xff] %v2758_v55  ;;  %v2760_v56 = vmax.f32 %v407_v34, 0.0  ;;  %v2764_v57 = vsel %vm508_vm2, %v462_v36, 0.0  ;;  %v2766_v58 = vmax.f32 %v410_v37, 0.0  ;;  %v355_v0 = vmul.f32 %v2542_v5, %v297_v44  ;;  %v300_v44 = vld [vmem:[%s2551_s29 + $0xf8] sm:$0xff] }
  0x2f   : > { %v353_v9 = vmul.f32 %v2542_v5, %v295_v49  ;;  %v2771_v10 = vsel %vm634_vm0, %v661_v52, %v663_v38  ;;  %v2774_v11 = vsel %vm634_vm0, %v666_v22, %v668_v40  ;;  %v412_v12 = vadd.f32 %v2556_v7, %v354_v48  ;;  %v299_v22 = vld [vmem:[%s2551_s29 + $0xf0] sm:$0xff] }
  0x30   : > { %4877 = vst [vmem:[#allocation21_spill] sm:$0xff] %v2771_v10  ;;  %v356_v13 = vmul.f32 %v2542_v5, %v298_v53  ;;  %v2781_v15 = vsel %vm497_vm1, %v460_v50, 0.0  ;;  %v2785_v19 = vsel %vm497_vm1, %v463_v51, 0.0  ;;  %v671_v26 = vrot.slane %v2760_v56, 1  ;;  %v303_v51 = vld [vmem:[%s2551_s29 + $0x110] sm:$0xff] }
  0x31   : > { %4878 = vst [vmem:[#allocation22_spill] sm:$0xff] %v2774_v11  ;;  %v411_v52 = vadd.f32 %v2556_v7, %v353_v9  ;;  %v673_v27 = vrot.slane %v2764_v57, 1  ;;  %v413_v25 = vadd.f32 %v2556_v7, %v355_v0  ;;  %v359_v34 = vmul.f32 %v2542_v5, %v301_v14 }
  0x32   : > { %4879 = vst [vmem:[#allocation23_spill] sm:$0xff] %v2785_v19  ;;  %v414_v21 = vadd.f32 %v2556_v7, %v356_v13  ;;  %v670_v36 = vrot.slane %v2781_v15, 1  ;;  %v675_v37 = vrot.slane %v2785_v19, 1  ;;  %v676_v38 = vrot.slane %v2766_v58, 1 }
  0x33   : > { %v466_v40 = vmax.f32 %v412_v12, 0.0  ;;  %v465_v48 = vmax.f32 %v411_v52, 0.0  ;;  %v357_v50 = vmul.f32 %v2542_v5, %v299_v22  ;;  %v360_v53 = vmul.f32 %v2542_v5, %v302_v23 }
  0x34   : > { %846 = vrot.lane.b32.xlu2 %v2758_v55, %s2478_s26  ;;  %v468_v49 = vmax.f32 %v414_v21, 0.0  ;;  %v2809_v0 = vsel %vm634_vm0, %v671_v26, %v673_v27  ;;  %v2811_v9 = vmax.f32 %v413_v25, 0.0  ;;  %v358_v13 = vmul.f32 %v2542_v5, %v300_v44 }
  0x35   : > { %844 = vrot.lane.b32.xlu1 %v2771_v10, %s2478_s26  ;;  %848 = vrot.lane.b32.xlu0 %v2774_v11, %s2478_s26  ;;  %4880 = vst [vmem:[#allocation24_spill] sm:$0xff] %v2809_v0  ;;  %v417_v12 = vadd.f32 %v2556_v7, %v359_v34  ;;  %v2816_v14 = vsel %vm634_vm0, %v670_v36, %v671_v26  ;;  %v2823_v21 = vsel %vm497_vm1, %v466_v40, 0.0  ;;  %v2828_v23 = vsel %vm508_vm2, %v465_v48, 0.0  ;;  %v305_v34 = vld [vmem:[%s2551_s29 + $0x120] sm:$0xff]  ;;  %v304_v36 = vld [vmem:[%s2551_s29 + $0x118] sm:$0x3] }
  0x36   : > { %4881 = vst [vmem:[#allocation25_spill] sm:$0xff] %v2811_v9  ;;  %v2819_v52 = vsel %vm634_vm0, %v675_v37, %v676_v38  ;;  %v361_v22 = vmul.f32 %v2542_v5, %v303_v51  ;;  %v2832_v27 = vsel %vm508_vm2, %v468_v49, 0.0  ;;  %v415_v26 = vadd.f32 %v2556_v7, %v357_v50  ;;  %v307_v37 = vld [vmem:[%s2551_s29 + $0x130] sm:$0x3] }
  0x37   : > { %4882 = vst [vmem:[#allocation26_spill] sm:$0xff] %v2816_v14  ;;  %v418_v25 = vadd.f32 %v2556_v7, %v360_v53  ;;  %v680_v40 = vrot.slane %v2823_v21, 1  ;;  %v681_v44 = vrot.slane %v2811_v9, 1  ;;  %v416_v48 = vadd.f32 %v2556_v7, %v358_v13 }
  0x38   : > { %4883 = vst [vmem:[#allocation27_spill] sm:$0xff] %v2819_v52  ;;  %v471_v49 = vmax.f32 %v417_v12, 0.0  ;;  %v678_v50 = vrot.slane %v2828_v23, 1  ;;  %v683_v51 = vrot.slane %v2832_v27, 1  ;;  %v419_v53 = vadd.f32 %v2556_v7, %v361_v22 }
  0x39   : > { %4884 = vst [vmem:[#allocation28_spill] sm:$0xff] %v2823_v21  ;;  %v363_v2 = vmul.f32 %v2542_v5, %v305_v34  ;;  %v365_v11 = vmul.f32 %v2542_v5, %v307_v37  ;;  %v2856_v13 = vsel %vm634_vm0, %v680_v40, %v681_v44  ;;  %v2858_v12 = vmax.f32 %v416_v48, 0.0  ;;  %v310_v37 = vld [vmem:[%s2551_s29 + $0x148] sm:$0x3] }
  0x3a   : > { %4885 = vst [vmem:[#allocation29_spill] sm:$0xff] %v2856_v13  ;;  %v2862_v10 = vsel %vm508_vm2, %v471_v49, 0.0  ;;  %v364_v22 = vmul.f32 %v2542_v5, %v306_v1  ;;  %v2871_v34 = vmax.f32 %v419_v53, 0.0 }
  0x3b   : > { %4886 = vst [vmem:[#allocation30_spill] sm:$0xff] %v2858_v12 }
  0x3c   : > { %852 = vrot.lane.b32.xlu2 %v2809_v0, %s2478_s26  ;;  %v472_v0 = vmax.f32 %v418_v25, 0.0  ;;  %v2869_v25 = vsel %vm634_vm0, %v681_v44, %v683_v51  ;;  %v308_v44 = vld [vmem:[%s2551_s29 + $0x138] sm:$0xff]  ;;  %v691_v51 = vrot.slane %v2871_v34, 1 }
  0x3d   : > { %850 = vrot.lane.b32.xlu1 %v2816_v14, %s2478_s26  ;;  %854 = vrot.lane.b32.xlu0 %v2819_v52, %s2478_s26  ;;  %v469_v14 = vmax.f32 %v415_v26, 0.0  ;;  %v362_v52 = vmul.f32 %v2542_v5, %v304_v36  ;;  %v2866_v26 = vsel %vm634_vm0, %v676_v38, %v678_v50  ;;  %4888 = vst [vmem:[#allocation32_spill] sm:$0xff] %v2869_v25 }
  0x3e   : > { %4887 = vst [vmem:[#allocation31_spill] sm:$0xff] %v2866_v26  ;;  %v421_v36 = vadd.f32 %v2556_v7, %v363_v2  ;;  %v2881_v48 = vsel %vm497_vm1, %v472_v0, 0.0  ;;  %v423_v38 = vadd.f32 %v2556_v7, %v365_v11  ;;  %v311_v2 = vld [vmem:[%s2551_s29 + $0x150] sm:$0xff]  ;;  %v686_v0 = vrot.slane %v2858_v12, 1 }
  0x3f   : > { %v2877_v40 = vsel %vm497_vm1, %v469_v14, 0.0  ;;  %4889 = vst [vmem:[#allocation33_spill] sm:$0xff] %v2881_v48  ;;  %v420_v1 = vadd.f32 %v2556_v7, %v362_v52  ;;  %v688_v14 = vrot.slane %v2862_v10, 1  ;;  %v422_v52 = vadd.f32 %v2556_v7, %v364_v22 }
  0x40   : > { %v368_v11 = vmul.f32 %v2542_v5, %v310_v37  ;;  %v685_v49 = vrot.slane %v2877_v40, 1  ;;  %v690_v50 = vrot.slane %v2881_v48, 1  ;;  %v475_v53 = vmax.f32 %v421_v36, 0.0 }
  0x41   : > { %v477_v55 = vmax.f32 %v423_v38, 0.0  ;;  %v369_v16 = vmul.f32 %v2542_v5, %v311_v2  ;;  %v2905_v22 = vsel %vm634_vm0, %v686_v0, %v688_v14  ;;  %v2907_v37 = vmax.f32 %v422_v52, 0.0 }
  0x42   : > { %4890 = vst [vmem:[#allocation34_spill] sm:$0xff] %v2905_v22  ;;  %v426_v36 = vadd.f32 %v2556_v7, %v368_v11  ;;  %v2915_v38 = vsel %vm634_vm0, %v690_v50, %v691_v51  ;;  %v370_v2 = vmul.f32 %v2542_v5, %v312_v18  ;;  %v314_v11 = vld [vmem:[%s2551_s29 + $0x168] sm:$0xff]  ;;  %v316_v50 = vld [vmem:[%s2551_s29 + $0x178] sm:$0x3] }
  0x43   : > { %4891 = vst [vmem:[#allocation35_spill] sm:$0xff] %v2907_v37  ;;  %v427_v52 = vadd.f32 %v2556_v7, %v369_v16  ;;  %v372_v54 = vmul.f32 %v2542_v5, %v314_v11  ;;  %v374_v20 = vmul.f32 %v2542_v5, %v316_v50 }
  0x44   : > { %858 = vrot.lane.b32.xlu2 %v2856_v13, %s2478_s26  ;;  %v309_v13 = vld [vmem:[%s2551_s29 + $0x140] sm:$0xff]  ;;  %4893 = vst [vmem:[#allocation37_spill] sm:$0xff] %v2915_v38 }
  0x45   : > { %856 = vrot.lane.b32.xlu1 %v2866_v26, %s2478_s26  ;;  %860 = vrot.lane.b32.xlu0 %v2869_v25, %s2478_s26  ;;  %v474_v26 = vmax.f32 %v420_v1, 0.0  ;;  %v366_v25 = vmul.f32 %v2542_v5, %v308_v44  ;;  %v367_v59 = vmul.f32 %v2542_v5, %v309_v13  ;;  %v2912_v1 = vsel %vm634_vm0, %v685_v49, %v686_v0  ;;  %v313_v49 = vld [vmem:[%s2551_s29 + $0x160] sm:$0x3] }
  0x46   : > { %4892 = vst [vmem:[#allocation36_spill] sm:$0xff] %v2912_v1  ;;  %v2919_v44 = vsel %vm497_vm1, %v475_v53, 0.0  ;;  %v2928_v13 = vsel %vm508_vm2, %v477_v55, 0.0  ;;  %v696_v55 = vrot.slane %v2907_v37, 1  ;;  %v481_v62 = vmax.f32 %v427_v52, 0.0 }
  0x47   : > { %4894 = vst [vmem:[#allocation38_spill] sm:$0xff] %v2919_v44  ;;  %v2924_v14 = vsel %vm508_vm2, %v474_v26, 0.0  ;;  %v424_v0 = vadd.f32 %v2556_v7, %v366_v25  ;;  %v695_v18 = vrot.slane %v2919_v44, 1  ;;  %v425_v26 = vadd.f32 %v2556_v7, %v367_v59 }
  0x48   : > { %v480_v25 = vmax.f32 %v426_v36, 0.0  ;;  %v693_v16 = vrot.slane %v2924_v14, 1  ;;  %v698_v53 = vrot.slane %v2928_v13, 1  ;;  %v430_v11 = vadd.f32 %v2556_v7, %v372_v54 }
  0x49   : > { %v2952_v61 = vsel %vm634_vm0, %v695_v18, %v696_v55  ;;  %v2954_v59 = vmax.f32 %v425_v26, 0.0  ;;  %v2976_v50 = vsel %vm497_vm1, %v481_v62, 0.0 }
  0x4a   : > { %4895 = vst [vmem:[#allocation39_spill] sm:$0xff] %v2952_v61  ;;  %v2958_v36 = vsel %vm508_vm2, %v480_v25, 0.0  ;;  %v2962_v60 = vsel %vm634_vm0, %v691_v51, %v693_v16  ;;  %v432_v51 = vadd.f32 %v2556_v7, %v374_v20  ;;  %v484_v18 = vmax.f32 %v430_v11, 0.0 }
  0x4b   : > { %4896 = vst [vmem:[#allocation40_spill] sm:$0xff] %v2954_v59  ;;  %v701_v54 = vrot.slane %v2954_v59, 1 }
  0x4c   : > { %864 = vrot.lane.b32.xlu2 %v2905_v22, %s2478_s26  ;;  %v428_v22 = vadd.f32 %v2556_v7, %v370_v2  ;;  %v373_v2 = vmul.f32 %v2542_v5, %v315_v41  ;;  %4897 = vst [vmem:[#allocation41_spill] sm:$0xff] %v2962_v60  ;;  %v486_v26 = vmax.f32 %v432_v51, 0.0 }
  0x4d   : > { %862 = vrot.lane.b32.xlu1 %v2912_v1, %s2478_s26  ;;  %866 = vrot.lane.b32.xlu0 %v2915_v38, %s2478_s26  ;;  %v478_v1 = vmax.f32 %v424_v0, 0.0  ;;  %v371_v38 = vmul.f32 %v2542_v5, %v313_v49  ;;  %v2965_v0 = vsel %vm634_vm0, %v696_v55, %v698_v53  ;;  %4901 = vst [vmem:[#allocation45_spill] sm:$0xff] %v2976_v50 }
  0x4e   : > { %4898 = vst [vmem:[#allocation42_spill] sm:$0xff] %v2965_v0  ;;  %v2967_v52 = vmax.f32 %v428_v22, 0.0  ;;  %v703_v22 = vrot.slane %v2958_v36, 1  ;;  %v431_v62 = vadd.f32 %v2556_v7, %v373_v2  ;;  %v3005_v2 = vsel %vm497_vm1, %v484_v18, 0.0 }
  0x4f   : > { %v2972_v49 = vsel %vm497_vm1, %v478_v1, 0.0  ;;  %v429_v41 = vadd.f32 %v2556_v7, %v371_v38  ;;  %v705_v38 = vrot.slane %v2976_v50, 1  ;;  %4906 = vst [vmem:[#allocation50_spill] sm:$0xff] %v3005_v2  ;;  %v710_v51 = vrot.slane %v3005_v2, 1 }
  0x50   : > { %4899 = vst [vmem:[#allocation43_spill] sm:$0xff] %v2967_v52  ;;  %v700_v1 = vrot.slane %v2972_v49, 1  ;;  %v706_v20 = vrot.slane %v2967_v52, 1  ;;  %v2993_v25 = vsel %vm634_vm0, %v701_v54, %v703_v22  ;;  %v2995_v16 = vmax.f32 %v431_v62, 0.0 }
  0x51   : > { %4900 = vst [vmem:[#allocation44_spill] sm:$0xff] %v2972_v49  ;;  %v483_v55 = vmax.f32 %v429_v41, 0.0  ;;  %v3013_v41 = vsel %vm508_vm2, %v486_v26, 0.0 }
  0x52   : > { %4902 = vst [vmem:[#allocation46_spill] sm:$0xff] %v2993_v25  ;;  %v2998_v53 = vsel %vm634_vm0, %v700_v1, %v701_v54  ;;  %v711_v54 = vrot.slane %v2995_v16, 1  ;;  %v713_v62 = vrot.slane %v3013_v41, 1 }
  0x53   : > { %4903 = vst [vmem:[#allocation47_spill] sm:$0xff] %v2995_v16  ;;  %v3009_v11 = vsel %vm508_vm2, %v483_v55, 0.0  ;;  %v4910_v55 = vmov 0.0  }
  0x54   : > { %870 = vrot.lane.b32.xlu2 %v2952_v61, %s2478_s26  ;;  %4904 = vst [vmem:[#allocation48_spill] sm:$0xff] %v2998_v53  ;;  %v708_v22 = vrot.slane %v3009_v11, 1  ;;  %v3026_v1 = vsel %vm634_vm0, %v710_v51, %v711_v54  ;;  %v3032_v18 = vsel %vm634_vm0, %v711_v54, %v713_v62  ;;  %v3041_v26 = vrot.slane %v4910_v55, 2 }
  0x55   : > { %868 = vrot.lane.b32.xlu1 %v2962_v60, %s2478_s26  ;;  %872 = vrot.lane.b32.xlu0 %v2965_v0, %s2478_s26  ;;  %v3001_v0 = vsel %vm634_vm0, %v705_v38, %v706_v20  ;;  %4907 = vst [vmem:[#allocation51_spill] sm:$0xff] %v3026_v1  ;;  %v721_v51 = vrot.slane %v2605_v46, 2  ;;  %v724_v54 = vrot.slane %v2601_v45, 2  ;;  %v727_v45 = vrot.slane %v2582_v30, 2 }
  0x56   : > { %4905 = vst [vmem:[#allocation49_spill] sm:$0xff] %v3001_v0  ;;  %v3029_v38 = vsel %vm634_vm0, %v706_v20, %v708_v22  ;;  %v722_v20 = vrot.slane %v2584_v32, 2  ;;  %v2460_v22 = vpack.i.bf16 %v3041_v26, %v3041_v26  ;;  %v729_v55 = vrot.slane %v2591_v39, 2 }
  0x57   : > { %4908 = vst [vmem:[#allocation52_spill] sm:$0xff] %v3029_v38  ;;  %v736_v39 = vrot.slane %v2678_v35, 2 }
  0x58   : > { %4909 = vst [vmem:[#allocation53_spill] sm:$0xff] %v3032_v18  ;;  %v3049_v62 = vsel %vm715_vm3, %v721_v51, %v722_v20  ;;  %v731_v51 = vrot.slane %v2609_v47, 2 }
  0x59   : > { %4911 = vst [vmem:[#allocation54_spill] sm:$0xff] %v3041_v26  ;;  %v726_v26 = vrot.slane %v2643_v4, 2 }
  0x5a   : > { %4912 = vst [vmem:[#allocation55_spill] sm:$0xff] %v3049_v62 }
  0x5c   : > { %876 = vrot.lane.b32.xlu2 %v2993_v25, %s2478_s26 }
  0x5d   : > { %874 = vrot.lane.b32.xlu1 %v2998_v53, %s2478_s26  ;;  %878 = vrot.lane.b32.xlu0 %v3001_v0, %s2478_s26 }
  0x64   : > { %882 = vrot.lane.b32.xlu2 %v3026_v1, %s2478_s26 }
  0x65   : > { %880 = vrot.lane.b32.xlu1 %v3029_v38, %s2478_s26  ;;  %884 = vrot.lane.b32.xlu0 %v3032_v18, %s2478_s26  ;;  %v3052_v38 = vsel %vm715_vm3, %v722_v20, %v724_v54  ;;  %v732_v20 = vrot.slane %v2595_v42, 2  ;;  %v3065_v54 = vsel %vm715_vm3, %v727_v45, %v729_v55  ;;  %v737_v55 = vrot.slane %v2653_v17, 2 }
  0x66   : > { %4913 = vst [vmem:[#allocation56_spill] sm:$0xff] %v3052_v38 }
  0x67   : > { %4914 = vst [vmem:[#allocation57_spill] sm:$0xff] %v3065_v54 }
  0x6c   : > { %922 = vrot.lane.b32.xlu2 %v3049_v62, %s2479_s8  ;;  %v3068_v62 = vsel %vm715_vm3, %v726_v26, %v727_v45  ;;  %v734_v26 = vrot.slane %v2664_v24, 2  ;;  %v739_v45 = vrot.slane %v2671_v29, 2  ;;  %v742_v24 = vrot.slane %v2673_v33, 2 }
  0x6d   : > { %2461 = vrot.lane.b32.xlu1 %v2460_v22, %s2479_s8  ;;  %924 = vrot.lane.b32.xlu0 %v3052_v38, %s2479_s8  ;;  %4915 = vst [vmem:[#allocation58_spill] sm:$0xff] %v3068_v62  ;;  %v3071_v22 = vsel %vm715_vm3, %v731_v51, %v732_v20  ;;  %v3086_v51 = vsel %vm715_vm3, %v736_v39, %v737_v55  ;;  %v744_v29 = vrot.slane %v2739_v28, 2 }
  0x6e   : > { %4917 = vst [vmem:[#allocation60_spill] sm:$0xff] %v3086_v51 }
  0x74   : > { %928 = vrot.lane.b32.xlu2 %v3065_v54, %s2479_s8  ;;  %v3089_v54 = vsel %vm715_vm3, %v732_v20, %v734_v26  ;;  %v741_v20 = vrot.slane %v2691_v43, 2  ;;  %v747_v26 = vrot.slane %v2710_v63, 2 }
  0x75   : > { %926 = vrot.lane.b32.xlu1 %v3068_v62, %s2479_s8  ;;  %930 = vrot.lane.b32.xlu0 %v3071_v22, %s2479_s8  ;;  %v3092_v62 = vsel %vm715_vm3, %v737_v55, %v739_v45  ;;  %v746_v55 = vrot.slane %v2715_v8, 2  ;;  %v3108_v45 = vsel %vm715_vm3, %v742_v24, %v744_v29  ;;  %v751_v29 = vrot.slane %v2781_v15, 2 }
  0x76   : > { %v3081_v38 = vpop.permute.xlu2 %832  ;;  %4918 = vst [vmem:[#allocation61_spill] sm:$0xff] %v3092_v62 }
  0x77   : > { %4916 = vst [vmem:[#allocation59_spill] sm:$0xff] %v3081_v38  ;;  %v3111_v38 = vsel %vm715_vm3, %v741_v20, %v742_v24  ;;  %v749_v20 = vrot.slane %v2743_v31, 2  ;;  %v757_v31 = vrot.slane %v2766_v58, 2 }
  0x78   : > { %4920 = vst [vmem:[#allocation63_spill] sm:$0xff] %v3108_v45 }
  0x79   : > { %4921 = vst [vmem:[#allocation64_spill] sm:$0xff] %v3111_v38 }
  0x7c   : > { %934 = vrot.lane.b32.xlu2 %v3086_v51, %s2479_s8 }
  0x7d   : > { %932 = vrot.lane.b32.xlu1 %v3089_v54, %s2479_s8  ;;  %936 = vrot.lane.b32.xlu0 %v3092_v62, %s2479_s8  ;;  %v3114_v62 = vsel %vm715_vm3, %v746_v55, %v747_v26  ;;  %v754_v55 = vrot.slane %v2764_v57, 2  ;;  %v759_v57 = vrot.slane %v2828_v23, 2 }
  0x7e   : > { %v3102_v39 = vpop.permute.xlu2 %834  ;;  %4922 = vst [vmem:[#allocation65_spill] sm:$0xff] %v3114_v62 }
  0x7f   : > { %4919 = vst [vmem:[#allocation62_spill] sm:$0xff] %v3102_v39  ;;  %v752_v39 = vrot.slane %v2760_v56, 2 }
  0x82   : > { %v3122_v28 = vpop.permute.xlu0 %2456 }
  0x83   : > { %4923 = vst [vmem:[#allocation66_spill] sm:$0xff] %v3122_v28  ;;  %v3157_v28 = vsel %vm715_vm3, %v757_v31, %v759_v57  ;;  %v767_v57 = vrot.slane %v2858_v12, 2 }
  0x84   : > { %940 = vrot.lane.b32.xlu2 %v3108_v45, %s2479_s8  ;;  %v3131_v45 = vsel %vm715_vm3, %v751_v29, %v752_v39  ;;  %4929 = vst [vmem:[#allocation72_spill] sm:$0xff] %v3157_v28 }
  0x85   : > { %938 = vrot.lane.b32.xlu1 %v3111_v38, %s2479_s8  ;;  %942 = vrot.lane.b32.xlu0 %v3114_v62, %s2479_s8  ;;  %v3134_v38 = vsel %vm715_vm3, %v747_v26, %v749_v20  ;;  %v3137_v62 = vsel %vm715_vm3, %v752_v39, %v754_v55  ;;  %v756_v26 = vrot.slane %v2785_v19, 2  ;;  %v761_v39 = vrot.slane %v2823_v21, 2 }
  0x86   : > { %v3126_v24 = vpop.permute.xlu2 %840  ;;  %4925 = vst [vmem:[#allocation68_spill] sm:$0xff] %v3137_v62  ;;  %v762_v20 = vrot.slane %v2811_v9, 2 }
  0x87   : > { %4924 = vst [vmem:[#allocation67_spill] sm:$0xff] %v3126_v24 }
  0x88   : > { %v3163_v23 = vsel %vm715_vm3, %v761_v39, %v762_v20 }
  0x89   : > { %4931 = vst [vmem:[#allocation74_spill] sm:$0xff] %v3163_v23 }
  0x8c   : > { %946 = vrot.lane.b32.xlu2 %v3131_v45, %s2479_s8 }
  0x8d   : > { %944 = vrot.lane.b32.xlu1 %v3134_v38, %s2479_s8  ;;  %948 = vrot.lane.b32.xlu0 %v3137_v62, %s2479_s8  ;;  %v3160_v62 = vsel %vm715_vm3, %v756_v26, %v757_v31  ;;  %v764_v31 = vrot.slane %v2832_v27, 2  ;;  %v769_v26 = vrot.slane %v2862_v10, 2  ;;  %v772_v10 = vrot.slane %v2871_v34, 2 }
  0x8e   : > { %v3147_v29 = vpop.permute.xlu2 %846  ;;  %4930 = vst [vmem:[#allocation73_spill] sm:$0xff] %v3160_v62  ;;  %v774_v27 = vrot.slane %v2924_v14, 2 }
  0x8f   : > { %4926 = vst [vmem:[#allocation69_spill] sm:$0xff] %v3147_v29  ;;  %v3152_v55 = vpop.permute.xlu1 %828  ;;  %v3154_v24 = vpop.permute.xlu0 %826  ;;  %v766_v29 = vrot.slane %v2877_v40, 2 }
  0x90   : > { %4927 = vst [vmem:[#allocation70_spill] sm:$0xff] %v3152_v55 }
  0x91   : > { %4928 = vst [vmem:[#allocation71_spill] sm:$0xff] %v3154_v24 }
  0x94   : > { %952 = vrot.lane.b32.xlu2 %v3157_v28, %s2479_s8  ;;  %v3182_v28 = vsel %vm715_vm3, %v766_v29, %v767_v57 }
  0x95   : > { %950 = vrot.lane.b32.xlu1 %v3160_v62, %s2479_s8  ;;  %954 = vrot.lane.b32.xlu0 %v3163_v23, %s2479_s8  ;;  %v3185_v62 = vsel %vm715_vm3, %v762_v20, %v764_v31  ;;  %v3188_v23 = vsel %vm715_vm3, %v767_v57, %v769_v26  ;;  %v771_v20 = vrot.slane %v2881_v48, 2  ;;  %v776_v57 = vrot.slane %v2919_v44, 2 }
  0x96   : > { %v3173_v55 = vpop.permute.xlu2 %852  ;;  %4935 = vst [vmem:[#allocation78_spill] sm:$0xff] %v3185_v62  ;;  %v777_v31 = vrot.slane %v2907_v37, 2 }
  0x97   : > { %4932 = vst [vmem:[#allocation75_spill] sm:$0xff] %v3173_v55  ;;  %v3177_v39 = vpop.permute.xlu1 %830  ;;  %v3179_v24 = vpop.permute.xlu0 %836  ;;  %v3211_v55 = vsel %vm715_vm3, %v771_v20, %v772_v10  ;;  %v784_v20 = vrot.slane %v2958_v36, 2  ;;  %v789_v36 = vrot.slane %v3009_v11, 2 }
  0x98   : > { %4933 = vst [vmem:[#allocation76_spill] sm:$0xff] %v3177_v39  ;;  %v3208_v39 = vsel %vm715_vm3, %v772_v10, %v774_v27  ;;  %v3214_v14 = vsel %vm715_vm3, %v776_v57, %v777_v31  ;;  %v782_v27 = vrot.slane %v2954_v59, 2  ;;  %v779_v10 = vrot.slane %v2928_v13, 2 }
  0x99   : > { %4934 = vst [vmem:[#allocation77_spill] sm:$0xff] %v3179_v24  ;;  %v787_v13 = vrot.slane %v2967_v52, 2 }
  0x9a   : > { %4936 = vst [vmem:[#allocation79_spill] sm:$0xff] %v3188_v23 }
  0x9b   : > { %4940 = vst [vmem:[#allocation83_spill] sm:$0xff] %v3208_v39 }
  0x9c   : > { %958 = vrot.lane.b32.xlu2 %v3182_v28, %s2479_s8  ;;  %4941 = vst [vmem:[#allocation84_spill] sm:$0xff] %v3211_v55 }
  0x9d   : > { %956 = vrot.lane.b32.xlu1 %v3185_v62, %s2479_s8  ;;  %960 = vrot.lane.b32.xlu0 %v3188_v23, %s2479_s8  ;;  %4942 = vst [vmem:[#allocation85_spill] sm:$0xff] %v3214_v14  ;;  %v3236_v23 = vsel %vm715_vm3, %v777_v31, %v779_v10  ;;  %v786_v31 = vrot.slane %v2976_v50, 2  ;;  %v792_v10 = vrot.slane %v2995_v16, 2 }
  0x9e   : > { %v3198_v29 = vpop.permute.xlu2 %858  ;;  %4947 = vst [vmem:[#allocation90_spill] sm:$0xff] %v3236_v23 }
  0x9f   : > { %4937 = vst [vmem:[#allocation80_spill] sm:$0xff] %v3198_v29  ;;  %v3203_v26 = vpop.permute.xlu1 %838  ;;  %v3205_v24 = vpop.permute.xlu0 %842 }
  0xa0   : > { %4938 = vst [vmem:[#allocation81_spill] sm:$0xff] %v3203_v26 }
  0xa1   : > { %4939 = vst [vmem:[#allocation82_spill] sm:$0xff] %v3205_v24  ;;  %v781_v24 = vrot.slane %v2972_v49, 2 }
  0xa4   : > { %964 = vrot.lane.b32.xlu2 %v3208_v39, %s2479_s8  ;;  %v3233_v39 = vsel %vm715_vm3, %v781_v24, %v782_v27 }
  0xa5   : > { %962 = vrot.lane.b32.xlu1 %v3211_v55, %s2479_s8  ;;  %966 = vrot.lane.b32.xlu0 %v3214_v14, %s2479_s8  ;;  %4946 = vst [vmem:[#allocation89_spill] sm:$0xff] %v3233_v39  ;;  %v3239_v14 = vsel %vm715_vm3, %v782_v27, %v784_v20  ;;  %v791_v27 = vrot.slane %v3005_v2, 2 }
  0xa6   : > { %v3224_v26 = vpop.permute.xlu2 %864  ;;  %4948 = vst [vmem:[#allocation91_spill] sm:$0xff] %v3239_v14 }
  0xa7   : > { %4943 = vst [vmem:[#allocation86_spill] sm:$0xff] %v3224_v26  ;;  %v3228_v57 = vpop.permute.xlu1 %844  ;;  %v3230_v29 = vpop.permute.xlu0 %848  ;;  %v3259_v26 = vsel %vm715_vm3, %v787_v13, %v789_v36  ;;  %v3265_v11 = vsel %vm715_vm3, %v791_v27, %v792_v10  ;;  %v794_v36 = vrot.slane %v3013_v41, 2 }
  0xa8   : > { %4944 = vst [vmem:[#allocation87_spill] sm:$0xff] %v3228_v57 }
  0xa9   : > { %4945 = vst [vmem:[#allocation88_spill] sm:$0xff] %v3230_v29  ;;  %v3262_v29 = vsel %vm715_vm3, %v786_v31, %v787_v13  ;;  %v3281_v31 = vsel %vm715_vm3, %v792_v10, %v794_v36 }
  0xaa   : > { %4951 = vst [vmem:[#allocation94_spill] sm:$0xff] %v3259_v26 }
  0xab   : > { %4954 = vst [vmem:[#allocation97_spill] sm:$0xff] %v3281_v31 }
  0xac   : > { %970 = vrot.lane.b32.xlu2 %v3233_v39, %s2479_s8 }
  0xad   : > { %968 = vrot.lane.b32.xlu1 %v3236_v23, %s2479_s8  ;;  %972 = vrot.lane.b32.xlu0 %v3239_v14, %s2479_s8 }
  0xae   : > { %v3249_v24 = vpop.permute.xlu2 %870 }
  0xaf   : > { %4949 = vst [vmem:[#allocation92_spill] sm:$0xff] %v3249_v24  ;;  %v3254_v20 = vpop.permute.xlu1 %850  ;;  %v3256_v57 = vpop.permute.xlu0 %854 }
  0xb0   : > { %4950 = vst [vmem:[#allocation93_spill] sm:$0xff] %v3256_v57 }
  0xb4   : > { %976 = vrot.lane.b32.xlu2 %v3259_v26, %s2479_s8 }
  0xb5   : > { %974 = vrot.lane.b32.xlu1 %v3262_v29, %s2479_s8  ;;  %978 = vrot.lane.b32.xlu0 %v3265_v11, %s2479_s8 }
  0xb6   : > { %v3273_v24 = vpop.permute.xlu2 %876 }
  0xb7   : > { %4952 = vst [vmem:[#allocation95_spill] sm:$0xff] %v3273_v24  ;;  %v3276_v57 = vpop.permute.xlu1 %856  ;;  %v3278_v13 = vpop.permute.xlu0 %860 }
  0xb8   : > { %4953 = vst [vmem:[#allocation96_spill] sm:$0xff] %v3278_v13  ;;  %v317_v13 = vld [vmem:[%s2551_s29 + $0x180] sm:$0xff] }
  0xbc   : > { %1014 = vrot.lane.b32.xlu2 %v2605_v46, %s2480_s9 }
  0xbd   : > { %980 = vrot.lane.b32.xlu1 %v3281_v31, %s2479_s8  ;;  %1016 = vrot.lane.b32.xlu0 %v2584_v32, %s2480_s9 }
  0xbe   : > { %v3289_v27 = vpop.permute.xlu2 %882 }
  0xbf   : > { %4955 = vst [vmem:[#allocation98_spill] sm:$0xff] %v3289_v27  ;;  %v3291_v41 = vpop.permute.xlu1 %862  ;;  %v3293_v24 = vpop.permute.xlu0 %866 }
  0xc0   : > { %4956 = vst [vmem:[#allocation99_spill] sm:$0xff] %v3293_v24 }
  0xc4   : > { %1020 = vrot.lane.b32.xlu2 %v2582_v30, %s2480_s9 }
  0xc5   : > { %1018 = vrot.lane.b32.xlu1 %v2643_v4, %s2480_s9  ;;  %1022 = vrot.lane.b32.xlu0 %v2609_v47, %s2480_s9 }
  0xc6   : > { %v3301_v10 = vpop.permute.xlu2 %922 }
  0xc7   : > { %4957 = vst [vmem:[#allocation100_spill] sm:$0xff] %v3301_v10  ;;  %v3303_v36 = vpop.permute.xlu1 %868  ;;  %v3305_v32 = vpop.permute.xlu0 %872 }
  0xc8   : > { %4958 = vst [vmem:[#allocation101_spill] sm:$0xff] %v3305_v32 }
  0xcc   : > { %1026 = vrot.lane.b32.xlu2 %v2678_v35, %s2480_s9 }
  0xcd   : > { %1024 = vrot.lane.b32.xlu1 %v2595_v42, %s2480_s9  ;;  %1028 = vrot.lane.b32.xlu0 %v2653_v17, %s2480_s9 }
  0xce   : > { %v3313_v46 = vpop.permute.xlu2 %928 }
  0xcf   : > { %4959 = vst [vmem:[#allocation102_spill] sm:$0xff] %v3313_v46  ;;  %v3315_v27 = vpop.permute.xlu1 %874  ;;  %v3317_v24 = vpop.permute.xlu0 %878 }
  0xd0   : > { %4960 = vst [vmem:[#allocation103_spill] sm:$0xff] %v3315_v27 }
  0xd1   : > { %4961 = vst [vmem:[#allocation104_spill] sm:$0xff] %v3317_v24 }
  0xd4   : > { %1032 = vrot.lane.b32.xlu2 %v2673_v33, %s2480_s9 }
  0xd5   : > { %1030 = vrot.lane.b32.xlu1 %v2691_v43, %s2480_s9  ;;  %1034 = vrot.lane.b32.xlu0 %v2715_v8, %s2480_s9 }
  0xd6   : > { %v3325_v10 = vpop.permute.xlu2 %934 }
  0xd7   : > { %4962 = vst [vmem:[#allocation105_spill] sm:$0xff] %v3325_v10  ;;  %v3327_v32 = vpop.permute.xlu1 %880  ;;  %v3329_v17 = vpop.permute.xlu0 %884 }
  0xd8   : > { %4963 = vst [vmem:[#allocation106_spill] sm:$0xff] %v3327_v32  ;;  %v3398_v32 = vld [vmem:[%s4714_s1] ss:$0 sm:$0xff] }
  0xd9   : > { %4964 = vst [vmem:[#allocation107_spill] sm:$0xff] %v3329_v17 }
  0xdc   : > { %1038 = vrot.lane.b32.xlu2 %v2781_v15, %s2480_s9 }
  0xdd   : > { %1036 = vrot.lane.b32.xlu1 %v2710_v63, %s2480_s9  ;;  %1040 = vrot.lane.b32.xlu0 %v2760_v56, %s2480_s9 }
  0xde   : > { %v3337_v46 = vpop.permute.xlu2 %940 }
  0xdf   : > { %4965 = vst [vmem:[#allocation108_spill] sm:$0xff] %v3337_v46  ;;  %v3339_v33 = vpop.permute.xlu1 %2461  ;;  %v3341_v43 = vpop.permute.xlu0 %924 }
  0xe0   : > { %4966 = vst [vmem:[#allocation109_spill] sm:$0xff] %v3339_v33 }
  0xe1   : > { %4967 = vst [vmem:[#allocation110_spill] sm:$0xff] %v3341_v43 }
  0xe4   : > { %1044 = vrot.lane.b32.xlu2 %v2766_v58, %s2480_s9 }
  0xe5   : > { %1042 = vrot.lane.b32.xlu1 %v2785_v19, %s2480_s9  ;;  %1046 = vrot.lane.b32.xlu0 %v2823_v21, %s2480_s9 }
  0xe6   : > { %v3349_v10 = vpop.permute.xlu2 %946 }
  0xe7   : > { %v3351_v17 = vpop.permute.xlu1 %926  ;;  %v3353_v24 = vpop.permute.xlu0 %930 }
  0xe8   : > { %4968 = vst [vmem:[#allocation111_spill] sm:$0xff] %v3351_v17 }
  0xe9   : > { %4969 = vst [vmem:[#allocation112_spill] sm:$0xff] %v3353_v24 }
  0xec   : > { %1050 = vrot.lane.b32.xlu2 %v2877_v40, %s2480_s9 }
  0xed   : > { %1048 = vrot.lane.b32.xlu1 %v2811_v9, %s2480_s9  ;;  %1052 = vrot.lane.b32.xlu0 %v2858_v12, %s2480_s9 }
  0xee   : > { %v3361_v46 = vpop.permute.xlu2 %952 }
  0xef   : > { %v3363_v43 = vpop.permute.xlu1 %932  ;;  %v3365_v33 = vpop.permute.xlu0 %936 }
  0xf0   : > { %4970 = vst [vmem:[#allocation113_spill] sm:$0xff] %v3363_v43  ;;  %v375_v43 = vmul.f32 %v2542_v5, %v317_v13 }
  0xf1   : > { %4971 = vst [vmem:[#allocation114_spill] sm:$0xff] %v3365_v33 }
  0xf4   : > { %1056 = vrot.lane.b32.xlu2 %v2871_v34, %s2480_s9 }
  0xf5   : > { %1054 = vrot.lane.b32.xlu1 %v2881_v48, %s2480_s9  ;;  %1058 = vrot.lane.b32.xlu0 %v2919_v44, %s2480_s9  ;;  %v318_v48 = vld [vmem:[%s2551_s29 + $0x188] sm:$0xff] }
  0xf6   : > { %v3373_v24 = vpop.permute.xlu2 %958 }
  0xf7   : > { %v3375_v17 = vpop.permute.xlu1 %938  ;;  %v3377_v9 = vpop.permute.xlu0 %942 }
  0xf8   : > { %4972 = vst [vmem:[#allocation115_spill] sm:$0xff] %v3375_v17 }
  0xf9   : > { %4973 = vst [vmem:[#allocation116_spill] sm:$0xff] %v3377_v9  ;;  %v433_v9 = vadd.f32 %v2556_v7, %v375_v43  ;;  %v3410_v7 = vld [vmem:[%s4715_s2] ss:$0 sm:$0xff] }
  0xfb   : > { %v487_v5 = vmax.f32 %v433_v9, 0.0 }
  0xfc   : > { %1062 = vrot.lane.b32.xlu2 %v2972_v49, %s2480_s9 }
  0xfd   : > { %1060 = vrot.lane.b32.xlu1 %v2907_v37, %s2480_s9  ;;  %1064 = vrot.lane.b32.xlu0 %v2954_v59, %s2480_s9  ;;  %v376_v37 = vmul.f32 %v3398_v32, %v318_v48 }
  0xfe   : > { %v3387_v33 = vpop.permute.xlu2 %964 }
  0xff   : > { %v3390_v44 = vpop.permute.xlu1 %944  ;;  %v3392_v17 = vpop.permute.xlu0 %948  ;;  %v434_v43 = vadd.f32 %v3410_v7, %v376_v37 }
 0x100   : > { %4974 = vst [vmem:[#allocation117_spill] sm:$0xff] %v3392_v17 }
 0x104   : > { %1068 = vrot.lane.b32.xlu2 %v2967_v52, %s2480_s9  ;;  %v3423_v52 = vmax.f32 %v434_v43, 0.0  ;;  %v4985_v43 = vld [vmem:[#allocation12_spill] sm:$0xff] }
 0x105   : > { %1066 = vrot.lane.b32.xlu1 %v2976_v50, %s2480_s9  ;;  %1070 = vrot.lane.b32.xlu0 %v3005_v2, %s2480_s9  ;;  %v3421_v50 = vsel %vm497_vm1, %v487_v5, 0.0  ;;  %v4984_v5 = vld [vmem:[#allocation9_spill] sm:$0xff] }
 0x106   : > { %v3413_v13 = vpop.permute.xlu2 %970  ;;  %4978 = vst [vmem:[#allocation121_spill] sm:$0xff] %v3421_v50 }
 0x107   : > { %4975 = vst [vmem:[#allocation118_spill] sm:$0xff] %v3413_v13  ;;  %v3415_v48 = vpop.permute.xlu1 %950  ;;  %v3417_v59 = vpop.permute.xlu0 %954 }
 0x108   : > { %4976 = vst [vmem:[#allocation119_spill] sm:$0xff] %v3415_v48 }
 0x109   : > { %4977 = vst [vmem:[#allocation120_spill] sm:$0xff] %v3417_v59 }
 0x10a   : > { %4979 = vst [vmem:[#allocation122_spill] sm:$0xff] %v3423_v52 }
 0x10c   : > { %1074 = vrot.lane.b32.xlu2 %v3421_v50, %s2480_s9 }
 0x10d   : > { %1072 = vrot.lane.b32.xlu1 %v2995_v16, %s2480_s9  ;;  %1076 = vrot.lane.b32.xlu0 %v3423_v52, %s2480_s9 }
 0x10e   : > { %v3431_v9 = vpop.permute.xlu2 %976 }
 0x10f   : > { %4980 = vst [vmem:[#allocation123_spill] sm:$0xff] %v3431_v9  ;;  %v3433_v37 = vpop.permute.xlu1 %956  ;;  %v3435_v2 = vpop.permute.xlu0 %960 }
 0x110   : > { %4981 = vst [vmem:[#allocation124_spill] sm:$0xff] %v3433_v37  ;;  %v4989_v37 = vld [vmem:[#allocation10_spill] sm:$0xff] }
 0x111   : > { %4982 = vst [vmem:[#allocation125_spill] sm:$0xff] %v3435_v2  ;;  %v4990_v2 = vld [vmem:[#allocation7_spill] sm:$0xff] }
 0x114   : > { %1112 = vrot.lane.b32.xlu2 %v4983_v3, %s2481_s14  ;;  %v4991_v3 = vld [vmem:[#allocation14_spill] sm:$0xff] }
 0x115   : > { %1110 = vrot.lane.b32.xlu1 %v4984_v5, %s2481_s14  ;;  %1114 = vrot.lane.b32.xlu0 %v4985_v43, %s2481_s14 }
 0x116   : > { %v3443_v16 = vpop.permute.xlu2 %1014 }
 0x117   : > { %4986 = vst [vmem:[#allocation8_spill] sm:$0xff] %v3443_v16  ;;  %v3445_v59 = vpop.permute.xlu1 %962  ;;  %v3447_v48 = vpop.permute.xlu0 %966  ;;  %v4995_v16 = vld [vmem:[#allocation16_spill] sm:$0xff] }
 0x118   : > { %4987 = vst [vmem:[#allocation9_spill] sm:$0xff] %v3445_v59  ;;  %v4997_v59 = vld [vmem:[#allocation19_spill] sm:$0xff] }
 0x119   : > { %4988 = vst [vmem:[#allocation12_spill] sm:$0xff] %v3447_v48  ;;  %v4996_v48 = vld [vmem:[#allocation18_spill] sm:$0xff] }
 0x11c   : > { %1118 = vrot.lane.b32.xlu2 %v4989_v37, %s2481_s14 }
 0x11d   : > { %1116 = vrot.lane.b32.xlu1 %v4990_v2, %s2481_s14  ;;  %1120 = vrot.lane.b32.xlu0 %v4991_v3, %s2481_s14 }
 0x11e   : > { %v3455_v9 = vpop.permute.xlu2 %1020 }
 0x11f   : > { %4992 = vst [vmem:[#allocation10_spill] sm:$0xff] %v3455_v9  ;;  %v3457_v5 = vpop.permute.xlu1 %968  ;;  %v3459_v13 = vpop.permute.xlu0 %972  ;;  %v5001_v9 = vld [vmem:[#allocation20_spill] sm:$0xff] }
 0x120   : > { %4993 = vst [vmem:[#allocation7_spill] sm:$0xff] %v3457_v5  ;;  %v5003_v5 = vld [vmem:[#allocation22_spill] sm:$0xff] }
 0x121   : > { %4994 = vst [vmem:[#allocation14_spill] sm:$0xff] %v3459_v13  ;;  %v5002_v13 = vld [vmem:[#allocation21_spill] sm:$0xff] }
 0x124   : > { %1124 = vrot.lane.b32.xlu2 %v4995_v16, %s2481_s14 }
 0x125   : > { %1122 = vrot.lane.b32.xlu1 %v4996_v48, %s2481_s14  ;;  %1126 = vrot.lane.b32.xlu0 %v4997_v59, %s2481_s14 }
 0x126   : > { %v3467_v19 = vpop.permute.xlu2 %1026 }
 0x127   : > { %4998 = vst [vmem:[#allocation126_spill] sm:$0xff] %v3467_v19  ;;  %v3469_v21 = vpop.permute.xlu1 %974  ;;  %v3471_v49 = vpop.permute.xlu0 %978  ;;  %v5007_v19 = vld [vmem:[#allocation24_spill] sm:$0xff] }
 0x128   : > { %4999 = vst [vmem:[#allocation127_spill] sm:$0xff] %v3469_v21  ;;  %v5009_v21 = vld [vmem:[#allocation27_spill] sm:$0xff] }
 0x129   : > { %5000 = vst [vmem:[#allocation128_spill] sm:$0xff] %v3471_v49  ;;  %v5008_v49 = vld [vmem:[#allocation26_spill] sm:$0xff] }
 0x12c   : > { %1130 = vrot.lane.b32.xlu2 %v5001_v9, %s2481_s14 }
 0x12d   : > { %1128 = vrot.lane.b32.xlu1 %v5002_v13, %s2481_s14  ;;  %1132 = vrot.lane.b32.xlu0 %v5003_v5, %s2481_s14 }
 0x12e   : > { %v3479_v16 = vpop.permute.xlu2 %1032 }
 0x12f   : > { %5004 = vst [vmem:[#allocation20_spill] sm:$0xff] %v3479_v16  ;;  %v3481_v27 = vpop.permute.xlu1 %980  ;;  %v3483_v59 = vpop.permute.xlu0 %1016  ;;  %v5013_v16 = vld [vmem:[#allocation29_spill] sm:$0xff] }
 0x130   : > { %5005 = vst [vmem:[#allocation22_spill] sm:$0xff] %v3481_v27  ;;  %v5015_v27 = vld [vmem:[#allocation32_spill] sm:$0xff] }
 0x131   : > { %5006 = vst [vmem:[#allocation129_spill] sm:$0xff] %v3483_v59  ;;  %v5014_v59 = vld [vmem:[#allocation31_spill] sm:$0xff] }
 0x134   : > { %1136 = vrot.lane.b32.xlu2 %v5007_v19, %s2481_s14 }
 0x135   : > { %1134 = vrot.lane.b32.xlu1 %v5008_v49, %s2481_s14  ;;  %1138 = vrot.lane.b32.xlu0 %v5009_v21, %s2481_s14 }
 0x136   : > { %v3491_v13 = vpop.permute.xlu2 %1038 }
 0x137   : > { %5010 = vst [vmem:[#allocation26_spill] sm:$0xff] %v3491_v13  ;;  %v3493_v12 = vpop.permute.xlu1 %1018  ;;  %v3495_v48 = vpop.permute.xlu0 %1022  ;;  %v5019_v13 = vld [vmem:[#allocation34_spill] sm:$0xff] }
 0x138   : > { %5011 = vst [vmem:[#allocation130_spill] sm:$0xff] %v3493_v12 }
 0x139   : > { %5012 = vst [vmem:[#allocation131_spill] sm:$0xff] %v3495_v48  ;;  %v5020_v48 = vld [vmem:[#allocation36_spill] sm:$0xff] }
 0x13c   : > { %1142 = vrot.lane.b32.xlu2 %v5013_v16, %s2481_s14  ;;  %v5021_v16 = vld [vmem:[#allocation37_spill] sm:$0xff] }
 0x13d   : > { %1140 = vrot.lane.b32.xlu1 %v5014_v59, %s2481_s14  ;;  %1144 = vrot.lane.b32.xlu0 %v5015_v27, %s2481_s14 }
 0x13e   : > { %v3503_v19 = vpop.permute.xlu2 %1044 }
 0x13f   : > { %5016 = vst [vmem:[#allocation132_spill] sm:$0xff] %v3503_v19  ;;  %v3505_v17 = vpop.permute.xlu1 %1024  ;;  %v3507_v21 = vpop.permute.xlu0 %1028  ;;  %v319_v19 = vld [vmem:[%s2551_s29 + $0x190] sm:$0x3] }
 0x140   : > { %5017 = vst [vmem:[#allocation133_spill] sm:$0xff] %v3505_v17 }
 0x141   : > { %5018 = vst [vmem:[#allocation134_spill] sm:$0xff] %v3507_v21  ;;  %v5025_v21 = vld [vmem:[#allocation42_spill] sm:$0xff] }
 0x144   : > { %1148 = vrot.lane.b32.xlu2 %v5019_v13, %s2481_s14 }
 0x145   : > { %1146 = vrot.lane.b32.xlu1 %v5020_v48, %s2481_s14  ;;  %1150 = vrot.lane.b32.xlu0 %v5021_v16, %s2481_s14  ;;  %v377_v16 = vmul.f32 %v3398_v32, %v319_v19 }
 0x146   : > { %v3515_v12 = vpop.permute.xlu2 %1050 }
 0x147   : > { %5022 = vst [vmem:[#allocation36_spill] sm:$0xff] %v3515_v12  ;;  %v3517_v59 = vpop.permute.xlu1 %1030  ;;  %v3519_v27 = vpop.permute.xlu0 %1034 }
 0x148   : > { %5023 = vst [vmem:[#allocation135_spill] sm:$0xff] %v3517_v59 }
 0x149   : > { %5024 = vst [vmem:[#allocation136_spill] sm:$0xff] %v3519_v27  ;;  %v435_v27 = vadd.f32 %v3410_v7, %v377_v16  ;;  %v5030_v16 = vld [vmem:[#allocation52_spill] sm:$0xff]  ;;  %v800_v7 = vrot.slane %v3423_v52, 1 }
 0x14c   : > { %1154 = vrot.lane.b32.xlu2 %v2952_v61, %s2481_s14  ;;  %v489_v61 = vmax.f32 %v435_v27, 0.0 }
 0x14d   : > { %1152 = vrot.lane.b32.xlu1 %v2962_v60, %s2481_s14  ;;  %1156 = vrot.lane.b32.xlu0 %v5025_v21, %s2481_s14 }
 0x14e   : > { %v3528_v17 = vpop.permute.xlu2 %1056  ;;  %v3550_v19 = vsel %vm508_vm2, %v489_v61, 0.0 }
 0x14f   : > { %5026 = vst [vmem:[#allocation137_spill] sm:$0xff] %v3528_v17  ;;  %v3531_v13 = vpop.permute.xlu1 %1036  ;;  %v3533_v12 = vpop.permute.xlu0 %1040  ;;  %v802_v27 = vrot.slane %v3550_v19, 1 }
 0x150   : > { %5027 = vst [vmem:[#allocation138_spill] sm:$0xff] %v3531_v13 }
 0x151   : > { %v3568_v13 = vsel %vm634_vm0, %v800_v7, %v802_v27  ;;  %v5038_v27 = vld [vmem:[#allocation58_spill] sm:$0xff] }
 0x152   : > { %5033 = vst [vmem:[#allocation143_spill] sm:$0xff] %v3568_v13 }
 0x154   : > { %1160 = vrot.lane.b32.xlu2 %v2993_v25, %s2481_s14 }
 0x155   : > { %1158 = vrot.lane.b32.xlu1 %v2998_v53, %s2481_s14  ;;  %1162 = vrot.lane.b32.xlu0 %v3001_v0, %s2481_s14  ;;  %v799_v53 = vrot.slane %v3421_v50, 1 }
 0x156   : > { %v3542_v21 = vpop.permute.xlu2 %1062 }
 0x157   : > { %5028 = vst [vmem:[#allocation139_spill] sm:$0xff] %v3542_v21  ;;  %v3544_v59 = vpop.permute.xlu1 %1042  ;;  %v3546_v32 = vpop.permute.xlu0 %1046 }
 0x158   : > { %5029 = vst [vmem:[#allocation140_spill] sm:$0xff] %v3546_v32 }
 0x15c   : > { %1166 = vrot.lane.b32.xlu2 %v3026_v1, %s2481_s14  ;;  %v3571_v1 = vsel %vm634_vm0, %v799_v53, %v800_v7  ;;  %v5039_v53 = vld [vmem:[#allocation56_spill] sm:$0xff]  ;;  %v5040_v7 = vld [vmem:[#allocation57_spill] sm:$0xff] }
 0x15d   : > { %1164 = vrot.lane.b32.xlu1 %v5030_v16, %s2481_s14  ;;  %1168 = vrot.lane.b32.xlu0 %v3032_v18, %s2481_s14  ;;  %5034 = vst [vmem:[#allocation144_spill] sm:$0xff] %v3571_v1  ;;  %v5035_v18 = vld [vmem:[#allocation55_spill] sm:$0xff] }
 0x15e   : > { %v3560_v25 = vpop.permute.xlu2 %1068 }
 0x15f   : > { %5031 = vst [vmem:[#allocation141_spill] sm:$0xff] %v3560_v25  ;;  %v3563_v6 = vpop.permute.xlu1 %1048  ;;  %v3565_v61 = vpop.permute.xlu0 %1052 }
 0x160   : > { %5032 = vst [vmem:[#allocation142_spill] sm:$0xff] %v3565_v61 }
 0x164   : > { %1172 = vrot.lane.b32.xlu2 %v3568_v13, %s2481_s14 }
 0x165   : > { %1170 = vrot.lane.b32.xlu1 %v3571_v1, %s2481_s14  ;;  %1206 = vrot.lane.b32.xlu0 %v5035_v18, %s2482_s15 }
 0x166   : > { %v3579_v60 = vpop.permute.xlu2 %1074 }
 0x167   : > { %5036 = vst [vmem:[#allocation55_spill] sm:$0xff] %v3579_v60  ;;  %v3581_v16 = vpop.permute.xlu1 %1054  ;;  %v3583_v0 = vpop.permute.xlu0 %1058 }
 0x168   : > { %5037 = vst [vmem:[#allocation145_spill] sm:$0xff] %v3583_v0  ;;  %v5047_v0 = vld [vmem:[#allocation63_spill] sm:$0xff] }
 0x16c   : > { %1210 = vrot.lane.b32.xlu2 %v5038_v27, %s2482_s15 }
 0x16d   : > { %1208 = vrot.lane.b32.xlu1 %v5039_v53, %s2482_s15  ;;  %1212 = vrot.lane.b32.xlu0 %v5040_v7, %s2482_s15 }
 0x16e   : > { %v3591_v13 = vpop.permute.xlu2 %1112 }
 0x16f   : > { %5041 = vst [vmem:[#allocation58_spill] sm:$0xff] %v3591_v13  ;;  %v3593_v1 = vpop.permute.xlu1 %1060  ;;  %v3595_v18 = vpop.permute.xlu0 %1064  ;;  %v5045_v13 = vld [vmem:[#allocation64_spill] sm:$0xff] }
 0x170   : > { %5042 = vst [vmem:[#allocation56_spill] sm:$0xff] %v3595_v18  ;;  %v5046_v18 = vld [vmem:[#allocation61_spill] sm:$0xff] }
 0x174   : > { %1216 = vrot.lane.b32.xlu2 %v3089_v54, %s2482_s15 }
 0x175   : > { %1214 = vrot.lane.b32.xlu1 %v3071_v22, %s2482_s15  ;;  %1218 = vrot.lane.b32.xlu0 %v3086_v51, %s2482_s15 }
 0x176   : > { %v3603_v60 = vpop.permute.xlu2 %1118 }
 0x177   : > { %5043 = vst [vmem:[#allocation57_spill] sm:$0xff] %v3603_v60  ;;  %v3605_v53 = vpop.permute.xlu1 %1066  ;;  %v3607_v25 = vpop.permute.xlu0 %1070  ;;  %v5051_v60 = vld [vmem:[#allocation65_spill] sm:$0xff] }
 0x178   : > { %5044 = vst [vmem:[#allocation146_spill] sm:$0xff] %v3607_v25 }
 0x17c   : > { %1222 = vrot.lane.b32.xlu2 %v5045_v13, %s2482_s15 }
 0x17d   : > { %1220 = vrot.lane.b32.xlu1 %v5046_v18, %s2482_s15  ;;  %1224 = vrot.lane.b32.xlu0 %v5047_v0, %s2482_s15  ;;  %v5057_v18 = vld [vmem:[#allocation72_spill] sm:$0xff] }
 0x17e   : > { %v3615_v21 = vpop.permute.xlu2 %1124 }
 0x17f   : > { %5048 = vst [vmem:[#allocation147_spill] sm:$0xff] %v3615_v21  ;;  %v3617_v61 = vpop.permute.xlu1 %1072  ;;  %v3619_v17 = vpop.permute.xlu0 %1076  ;;  %v5055_v21 = vld [vmem:[#allocation73_spill] sm:$0xff] }
 0x180   : > { %5049 = vst [vmem:[#allocation148_spill] sm:$0xff] %v3617_v61 }
 0x181   : > { %5050 = vst [vmem:[#allocation149_spill] sm:$0xff] %v3619_v17  ;;  %v5056_v17 = vld [vmem:[#allocation68_spill] sm:$0xff] }
 0x184   : > { %1228 = vrot.lane.b32.xlu2 %v3134_v38, %s2482_s15 }
 0x185   : > { %1226 = vrot.lane.b32.xlu1 %v5051_v60, %s2482_s15  ;;  %1230 = vrot.lane.b32.xlu0 %v3131_v45, %s2482_s15 }
 0x186   : > { %v3627_v13 = vpop.permute.xlu2 %1130 }
 0x187   : > { %5052 = vst [vmem:[#allocation65_spill] sm:$0xff] %v3627_v13  ;;  %v3629_v25 = vpop.permute.xlu1 %1110  ;;  %v3631_v0 = vpop.permute.xlu0 %1114  ;;  %v5060_v13 = vld [vmem:[#allocation74_spill] sm:$0xff] }
 0x188   : > { %5053 = vst [vmem:[#allocation150_spill] sm:$0xff] %v3629_v25 }
 0x189   : > { %5054 = vst [vmem:[#allocation151_spill] sm:$0xff] %v3631_v0 }
 0x18c   : > { %1234 = vrot.lane.b32.xlu2 %v5055_v21, %s2482_s15 }
 0x18d   : > { %1232 = vrot.lane.b32.xlu1 %v5056_v17, %s2482_s15  ;;  %1236 = vrot.lane.b32.xlu0 %v5057_v18, %s2482_s15 }
 0x18e   : > { %v3639_v61 = vpop.permute.xlu2 %1136 }
 0x18f   : > { %v3641_v32 = vpop.permute.xlu1 %1116  ;;  %v3643_v51 = vpop.permute.xlu0 %1120 }
 0x190   : > { %5058 = vst [vmem:[#allocation68_spill] sm:$0xff] %v3641_v32 }
 0x191   : > { %5059 = vst [vmem:[#allocation152_spill] sm:$0xff] %v3643_v51  ;;  %v5063_v51 = vld [vmem:[#allocation79_spill] sm:$0xff] }
 0x194   : > { %1240 = vrot.lane.b32.xlu2 %v3185_v62, %s2482_s15  ;;  %v5064_v62 = vld [vmem:[#allocation83_spill] sm:$0xff] }
 0x195   : > { %1238 = vrot.lane.b32.xlu1 %v5060_v13, %s2482_s15  ;;  %1242 = vrot.lane.b32.xlu0 %v3182_v28, %s2482_s15 }
 0x196   : > { %v3651_v0 = vpop.permute.xlu2 %1142 }
 0x197   : > { %v3653_v21 = vpop.permute.xlu1 %1122  ;;  %v3655_v18 = vpop.permute.xlu0 %1126 }
 0x198   : > { %5061 = vst [vmem:[#allocation153_spill] sm:$0xff] %v3653_v21  ;;  %v5067_v21 = vld [vmem:[#allocation85_spill] sm:$0xff] }
 0x199   : > { %5062 = vst [vmem:[#allocation154_spill] sm:$0xff] %v3655_v18 }
 0x19c   : > { %1246 = vrot.lane.b32.xlu2 %v3211_v55, %s2482_s15 }
 0x19d   : > { %1244 = vrot.lane.b32.xlu1 %v5063_v51, %s2482_s15  ;;  %1248 = vrot.lane.b32.xlu0 %v5064_v62, %s2482_s15 }
 0x19e   : > { %v3663_v32 = vpop.permute.xlu2 %1148 }
 0x19f   : > { %v3665_v13 = vpop.permute.xlu1 %1128  ;;  %v3667_v25 = vpop.permute.xlu0 %1132 }
 0x1a0   : > { %5065 = vst [vmem:[#allocation79_spill] sm:$0xff] %v3665_v13 }
 0x1a1   : > { %5066 = vst [vmem:[#allocation155_spill] sm:$0xff] %v3667_v25  ;;  %v804_v25 = vrot.slane %v3421_v50, 2 }
 0x1a4   : > { %1252 = vrot.lane.b32.xlu2 %v3236_v23, %s2482_s15 }
 0x1a5   : > { %1250 = vrot.lane.b32.xlu1 %v5067_v21, %s2482_s15  ;;  %1254 = vrot.lane.b32.xlu0 %v3233_v39, %s2482_s15  ;;  %v805_v39 = vrot.slane %v3423_v52, 2  ;;  %v807_v52 = vrot.slane %v3550_v19, 2 }
 0x1a6   : > { %v3675_v18 = vpop.permute.xlu2 %1154 }
 0x1a7   : > { %v3677_v55 = vpop.permute.xlu1 %1134  ;;  %v1139_v62 = vpop.permute.xlu0 %1138 }
 0x1a8   : > { %5068 = vst [vmem:[#allocation156_spill] sm:$0xff] %v3677_v55  ;;  %v3694_v55 = vsel %vm715_vm3, %v804_v25, %v805_v39  ;;  %v3710_v25 = vsel %vm715_vm3, %v805_v39, %v807_v52 }
 0x1a9   : > { %5069 = vst [vmem:[#allocation157_spill] sm:$0xff] %v3694_v55 }
 0x1aa   : > { %5070 = vst [vmem:[#allocation158_spill] sm:$0xff] %v3710_v25 }
 0x1ac   : > { %1258 = vrot.lane.b32.xlu2 %v3262_v29, %s2482_s15 }
 0x1ad   : > { %1256 = vrot.lane.b32.xlu1 %v3239_v14, %s2482_s15  ;;  %1260 = vrot.lane.b32.xlu0 %v3259_v26, %s2482_s15 }
 0x1ae   : > { %v3686_v23 = vpop.permute.xlu2 %1160 }
 0x1af   : > { %v3689_v21 = vpop.permute.xlu1 %1140  ;;  %v3691_v13 = vpop.permute.xlu0 %1144 }
 0x1b4   : > { %1264 = vrot.lane.b32.xlu2 %v3281_v31, %s2482_s15 }
 0x1b5   : > { %1262 = vrot.lane.b32.xlu1 %v3265_v11, %s2482_s15  ;;  %1266 = vrot.lane.b32.xlu0 %v3694_v55, %s2482_s15 }
 0x1b6   : > { %v3702_v14 = vpop.permute.xlu2 %1166 }
 0x1b7   : > { %v3705_v50 = vpop.permute.xlu1 %1146  ;;  %v3707_v26 = vpop.permute.xlu0 %1150 }
 0x1bc   : > { %1302 = vrot.lane.b32.xlu2 %v2643_v4, %s2483_s16 }
 0x1bd   : > { %1268 = vrot.lane.b32.xlu1 %v3710_v25, %s2482_s15  ;;  %1398 = vrot.lane.b32.xlu0 %v4985_v43, %s2484_s17 }
 0x1be   : > { %v3718_v55 = vpop.permute.xlu2 %1172 }
 0x1bf   : > { %v3720_v19 = vpop.permute.xlu1 %1152  ;;  %v3722_v31 = vpop.permute.xlu0 %1156 }
 0x1c4   : > { %1304 = vrot.lane.b32.xlu2 %v2582_v30, %s2483_s16 }
 0x1c5   : > { %1494 = vrot.lane.b32.xlu1 %v5038_v27, %s2485_s18  ;;  %1400 = vrot.lane.b32.xlu0 %v4990_v2, %s2484_s17 }
 0x1c6   : > { %v3730_v52 = vpop.permute.xlu2 %1210 }
 0x1c7   : > { %v3732_v39 = vpop.permute.xlu1 %1158  ;;  %v3734_v43 = vpop.permute.xlu0 %1162 }
 0x1cc   : > { %1306 = vrot.lane.b32.xlu2 %v2609_v47, %s2483_s16 }
 0x1cd   : > { %1496 = vrot.lane.b32.xlu1 %v5040_v7, %s2485_s18  ;;  %1318 = vrot.lane.b32.xlu0 %v2715_v8, %s2483_s16 }
 0x1ce   : > { %v3742_v25 = vpop.permute.xlu2 %1216 }
 0x1cf   : > { %5071 = vst [vmem:[#allocation159_spill] sm:$0xff] %v3742_v25  ;;  %v3744_v27 = vpop.permute.xlu1 %1164  ;;  %v3746_v2 = vpop.permute.xlu0 %1168  ;;  %v1605_v25 = vsel %vm1590_vm4, %v2781_v15, %v3254_v20 }
 0x1d4   : > { %1414 = vrot.lane.b32.xlu2 %v5001_v9, %s2484_s17 }
 0x1d5   : > { %1402 = vrot.lane.b32.xlu1 %v4989_v37, %s2484_s17  ;;  %1498 = vrot.lane.b32.xlu0 %v3071_v22, %s2485_s18 }
 0x1d6   : > { %v3754_v47 = vpop.permute.xlu2 %1222 }
 0x1d7   : > { %v3756_v7 = vpop.permute.xlu1 %1170  ;;  %v3758_v8 = vpop.permute.xlu0 %1206 }
 0x1dc   : > { %1308 = vrot.lane.b32.xlu2 %v2595_v42, %s2483_s16  ;;  %v1638_v42 = vsel %vm1623_vm5, %v1605_v25, %v3349_v10 }
 0x1dd   : > { %1510 = vrot.lane.b32.xlu1 %v5051_v60, %s2485_s18  ;;  %1320 = vrot.lane.b32.xlu0 %v2710_v63, %s2483_s16  ;;  %v1671_v60 = vsel %vm1656_vm6, %v1638_v42, %v3544_v59  ;;  %v1608_v42 = vsel %vm1590_vm4, %v2766_v58, %v3276_v57 }
 0x1de   : > { %v3766_v9 = vpop.permute.xlu2 %1228  ;;  %v1704_v20 = vsel %vm1689_vm7, %v1671_v60, %v1139_v62  ;;  %v1641_v59 = vsel %vm1623_vm5, %v1608_v42, %v3361_v46 }
 0x1df   : > { %5072 = vst [vmem:[#allocation160_spill] sm:$0xff] %v3766_v9  ;;  %v3768_v37 = vpop.permute.xlu1 %1208  ;;  %v3770_v22 = vpop.permute.xlu0 %1212  ;;  %v1674_v62 = vsel %vm1656_vm6, %v1641_v59, %v3563_v6 }
 0x1e4   : > { %1416 = vrot.lane.b32.xlu2 %v5003_v5, %s2484_s17 }
 0x1e5   : > { %1404 = vrot.lane.b32.xlu1 %v4991_v3, %s2484_s17  ;;  %1334 = vrot.lane.b32.xlu0 %v2877_v40, %s2483_s16  ;;  %v1707_v3 = vsel %vm1689_vm7, %v1674_v62, %v3691_v13  ;;  %v5075_v62 = vld [vmem:[#allocation117_spill] sm:$0xff] }
 0x1e6   : > { %v1235_v9 = vpop.permute.xlu2 %1234 }
 0x1e7   : > { %v3787_v10 = vsel %vm1722_vm8, %v1704_v20, %v1235_v9  ;;  %v3789_v25 = vpop.permute.xlu1 %1214  ;;  %v3791_v5 = vpop.permute.xlu0 %1218  ;;  %v5073_v20 = vld [vmem:[#allocation75_spill] sm:$0xff] }
 0x1ec   : > { %1512 = vrot.lane.b32.xlu2 %v3134_v38, %s2485_s18  ;;  %v1611_v38 = vsel %vm1590_vm4, %v2877_v40, %v3291_v41 }
 0x1ed   : > { %1500 = vrot.lane.b32.xlu1 %v3089_v54, %s2485_s18  ;;  %1430 = vrot.lane.b32.xlu0 %v5020_v48, %s2484_s17  ;;  %v1644_v54 = vsel %vm1623_vm5, %v1611_v38, %v3373_v24  ;;  %v5078_v38 = vld [vmem:[#allocation132_spill] sm:$0xff] }
 0x1ee   : > { %v1241_v9 = vpop.permute.xlu2 %1240  ;;  %v1677_v13 = vsel %vm1656_vm6, %v1644_v54, %v3581_v16  ;;  %v1614_v16 = vsel %vm1590_vm4, %v2871_v34, %v3303_v36 }
 0x1ef   : > { %v3809_v57 = vsel %vm1722_vm8, %v1707_v3, %v1241_v9  ;;  %v3811_v46 = vpop.permute.xlu1 %1220  ;;  %v3813_v60 = vpop.permute.xlu0 %1224  ;;  %v1710_v48 = vsel %vm1689_vm7, %v1677_v13, %v3707_v26  ;;  %v1647_v42 = vsel %vm1623_vm5, %v1614_v16, %v3387_v33  ;;  %v5076_v9 = vld [vmem:[#allocation18_spill] sm:$0xff] }
 0x1f0   : > { %v1680_v3 = vsel %vm1656_vm6, %v1647_v42, %v3593_v1 }
 0x1f4   : > { %1310 = vrot.lane.b32.xlu2 %v2678_v35, %s2483_s16 }
 0x1f5   : > { %1526 = vrot.lane.b32.xlu1 %v3182_v28, %s2485_s18  ;;  %1322 = vrot.lane.b32.xlu0 %v2781_v15, %s2483_s16  ;;  %v1606_v28 = vsel %vm1590_vm4, %v2760_v56, %v5073_v20  ;;  %v5074_v15 = vld [vmem:[#allocation88_spill] sm:$0xff] }
 0x1f6   : > { %v1247_v6 = vpop.permute.xlu2 %1246  ;;  %v1604_v26 = vsel %vm1590_vm4, %v2710_v63, %v5074_v15  ;;  %v1639_v36 = vsel %vm1623_vm5, %v1606_v28, %v5075_v62  ;;  %v5077_v63 = vld [vmem:[#allocation30_spill] sm:$0xff]  ;;  %v5080_v28 = vld [vmem:[#allocation103_spill] sm:$0xff] }
 0x1f7   : > { %v3831_v40 = vsel %vm1722_vm8, %v1710_v48, %v1247_v6  ;;  %v3833_v24 = vpop.permute.xlu1 %1226  ;;  %v3835_v41 = vpop.permute.xlu0 %1230  ;;  %v1637_v59 = vsel %vm1623_vm5, %v1604_v26, %v3390_v44  ;;  %v1672_v33 = vsel %vm1656_vm6, %v1639_v36, %v5078_v38  ;;  %v1713_v44 = vsel %vm1689_vm7, %v1680_v3, %v3722_v31  ;;  %v5081_v31 = vld [vmem:[#allocation44_spill] sm:$0xff]  ;;  %v5086_v36 = vld [vmem:[#allocation118_spill] sm:$0xff] }
 0x1f8   : > { %v1705_v1 = vsel %vm1689_vm7, %v1672_v33, %v3689_v21  ;;  %v1617_v15 = vsel %vm1590_vm4, %v5081_v31, %v5080_v28  ;;  %v5082_v26 = vld [vmem:[#allocation80_spill] sm:$0xff]  ;;  %v5084_v21 = vld [vmem:[#allocation93_spill] sm:$0xff] }
 0x1f9   : > { %v1650_v3 = vsel %vm1623_vm5, %v1617_v15, %v5086_v36  ;;  %v5088_v33 = vld [vmem:[#allocation120_spill] sm:$0xff] }
 0x1fc   : > { %1418 = vrot.lane.b32.xlu2 %v5008_v49, %s2484_s17  ;;  %v1670_v49 = vsel %vm1656_vm6, %v1637_v59, %v3533_v12  ;;  %v5085_v59 = vld [vmem:[#allocation23_spill] sm:$0xff] }
 0x1fd   : > { %1406 = vrot.lane.b32.xlu1 %v5076_v9, %s2484_s17  ;;  %1336 = vrot.lane.b32.xlu0 %v5077_v63, %s2483_s16  ;;  %v1703_v13 = vsel %vm1689_vm7, %v1670_v49, %v3639_v61  ;;  %v5083_v61 = vld [vmem:[#allocation28_spill] sm:$0xff]  ;;  %v1607_v62 = vsel %vm1590_vm4, %v5085_v59, %v5084_v21  ;;  %v5087_v9 = vld [vmem:[#allocation119_spill] sm:$0xff] }
 0x1fe   : > { %v1253_v54 = vpop.permute.xlu2 %1252  ;;  %v1609_v42 = vsel %vm1590_vm4, %v5083_v61, %v5082_v26  ;;  %v1640_v38 = vsel %vm1623_vm5, %v1607_v62, %v5087_v9  ;;  %v5093_v9 = vld [vmem:[#allocation106_spill] sm:$0xff] }
 0x1ff   : > { %v3871_v48 = vsel %vm1722_vm8, %v1713_v44, %v1253_v54  ;;  %v1233_v6 = vpop.permute.xlu1 %1232  ;;  %v1237_v16 = vpop.permute.xlu0 %1236  ;;  %v1642_v49 = vsel %vm1623_vm5, %v1609_v42, %v5088_v33  ;;  %v1683_v44 = vsel %vm1656_vm6, %v1650_v3, %v3605_v53  ;;  %v5089_v54 = vld [vmem:[#allocation60_spill] sm:$0xff]  ;;  %v5095_v33 = vld [vmem:[#allocation86_spill] sm:$0xff] }
 0x200   : > { %5079 = vst [vmem:[#allocation75_spill] sm:$0xff] %v3871_v48  ;;  %v3874_v20 = vsel %vm1722_vm8, %v1703_v13, %v1233_v6  ;;  %v3877_v12 = vsel %vm1722_vm8, %v1705_v1, %v1237_v16  ;;  %v5090_v13 = vld [vmem:[#allocation34_spill] sm:$0xff]  ;;  %v5091_v1 = vld [vmem:[#allocation36_spill] sm:$0xff]  ;;  %v1716_v28 = vsel %vm1689_vm7, %v1683_v44, %v3734_v43  ;;  %v5094_v43 = vld [vmem:[#allocation43_spill] sm:$0xff] }
 0x201   : > { %v1675_v6 = vsel %vm1656_vm6, %v1642_v49, %v5091_v1  ;;  %v5092_v16 = vld [vmem:[#allocation140_spill] sm:$0xff]  ;;  %v5097_v49 = vld [vmem:[#allocation25_spill] sm:$0xff]  ;;  %v5099_v1 = vld [vmem:[#allocation11_spill] sm:$0xff] }
 0x202   : > { %v1708_v53 = vsel %vm1689_vm7, %v1675_v6, %v3705_v50  ;;  %v5096_v50 = vld [vmem:[#allocation96_spill] sm:$0xff]  ;;  %v5145_v48 = vld [vmem:[#allocation150_spill] sm:$0xff] }
 0x203   : > { %v1610_v44 = vsel %vm1590_vm4, %v5097_v49, %v5096_v50  ;;  %v5100_v6 = vld [vmem:[#allocation124_spill] sm:$0xff] }
 0x204   : > { %1514 = vrot.lane.b32.xlu2 %v3131_v45, %s2485_s18  ;;  %v1673_v45 = vsel %vm1656_vm6, %v1640_v38, %v5092_v16  ;;  %v1620_v38 = vsel %vm1590_vm4, %v5094_v43, %v5093_v9  ;;  %v1643_v16 = vsel %vm1623_vm5, %v1610_v44, %v5100_v6  ;;  %v585_v44 = vld [vmem:[%s4716_s3 + $0x20] sm:$0xf] }
 0x205   : > { %1502 = vrot.lane.b32.xlu1 %v5089_v54, %s2485_s18  ;;  %1432 = vrot.lane.b32.xlu0 %v5090_v13, %s2484_s17  ;;  %v1706_v26 = vsel %vm1689_vm7, %v1673_v45, %v3651_v0  ;;  %v1612_v0 = vsel %vm1590_vm4, %v5077_v63, %v5095_v33  ;;  %v5098_v54 = vld [vmem:[#allocation123_spill] sm:$0xff]  ;;  %v5101_v45 = vld [vmem:[#allocation125_spill] sm:$0xff]  ;;  %v5107_v6 = vld [vmem:[#allocation38_spill] sm:$0xff] }
 0x206   : > { %v1259_v15 = vpop.permute.xlu2 %1258  ;;  %v1653_v13 = vsel %vm1623_vm5, %v1620_v38, %v5098_v54  ;;  %v5103_v63 = vld [vmem:[#allocation137_spill] sm:$0xff]  ;;  %2386 = vmatpush.msk.msra.mxu0 %vm1951_vm9, %v585_v44  ;;  %2422 = vmatpush.msk.msra.mxu1 %vm1951_vm9, %v585_v44 }
 0x207   : > { %v3913_v42 = vsel %vm1722_vm8, %v1716_v28, %v1259_v15  ;;  %v1239_v21 = vpop.permute.xlu1 %1238  ;;  %v1243_v62 = vpop.permute.xlu0 %1242  ;;  %v1645_v28 = vsel %vm1623_vm5, %v1612_v0, %v5101_v45  ;;  %v5102_v15 = vld [vmem:[#allocation148_spill] sm:$0xff]  ;;  %2423 = vmatpush.msk.msra.mxu2 %vm1951_vm9, %v585_v44  ;;  %2424 = vmatpush.msk.msra.mxu3 %vm1951_vm9, %v585_v44  ;;  %v5108_v45 = vld [vmem:[#allocation99_spill] sm:$0xff] }
 0x208   : > { %v3916_v36 = vsel %vm1722_vm8, %v1706_v26, %v1239_v21  ;;  %v3919_v3 = vsel %vm1722_vm8, %v1708_v53, %v1243_v62  ;;  %v1686_v26 = vsel %vm1656_vm6, %v1653_v13, %v5102_v15  ;;  %v1678_v53 = vsel %vm1656_vm6, %v1645_v28, %v5103_v63  ;;  %v5104_v21 = vld [vmem:[#allocation142_spill] sm:$0xff]  ;;  %v5106_v13 = vld [vmem:[#allocation92_spill] sm:$0xff]  ;;  %v5109_v28 = vld [vmem:[#allocation33_spill] sm:$0xff] }
 0x209   : > { %v1676_v62 = vsel %vm1656_vm6, %v1643_v16, %v5104_v21  ;;  %v1719_v9 = vsel %vm1689_vm7, %v1686_v26, %v3746_v2  ;;  %v1711_v0 = vsel %vm1689_vm7, %v1678_v53, %v3720_v19  ;;  %v583_v19 = vld [vmem:[%s4716_s3 + $0x10] sm:$0xff]  ;;  %v1615_v16 = vsel %vm1590_vm4, %v5107_v6, %v5106_v13  ;;  %v5111_v63 = vld [vmem:[#allocation9_spill] sm:$0xff] }
 0x20a   : > { %v1709_v33 = vsel %vm1689_vm7, %v1676_v62, %v3663_v32  ;;  %v584_v32 = vld [vmem:[%s4716_s3 + $0x18] sm:$0xff]  ;;  %v1613_v15 = vsel %vm1590_vm4, %v5109_v28, %v5108_v45  ;;  %v5110_v26 = vld [vmem:[#allocation24_spill] sm:$0xff] }
 0x20b   : > { %1967 = vmatpush.msra.mxu0 %v584_v32  ;;  %2425 = vmatpush.msra.mxu1 %v584_v32  ;;  %v1646_v53 = vsel %vm1623_vm5, %v1613_v15, %v5111_v63  ;;  %v5112_v21 = vld [vmem:[#allocation12_spill] sm:$0xff] }
 0x20c   : > { %1312 = vrot.lane.b32.xlu2 %v5099_v1, %s2483_s16  ;;  %2426 = vmatpush.msra.mxu2 %v584_v32  ;;  %v1648_v62 = vsel %vm1623_vm5, %v1615_v16, %v5112_v21  ;;  %v5119_v21 = vld [vmem:[#allocation35_spill] sm:$0xff] }
 0x20d   : > { %1528 = vrot.lane.b32.xlu1 %v5063_v51, %s2485_s18  ;;  %1324 = vrot.lane.b32.xlu0 %v2760_v56, %s2483_s16 }
 0x20e   : > { %v1265_v38 = vpop.permute.xlu2 %1264  ;;  %2427 = vmatpush.msra.mxu3 %v584_v32  ;;  %1968 = vmatpush.msra.mxu0 %v583_v19 }
 0x20f   : > { %v3955_v51 = vsel %vm1722_vm8, %v1719_v9, %v1265_v38  ;;  %v1245_v56 = vpop.permute.xlu1 %1244  ;;  %v1249_v50 = vpop.permute.xlu0 %1248  ;;  %v5113_v9 = vld [vmem:[#allocation16_spill] sm:$0xff]  ;;  %v582_v38 = vld [vmem:[%s4716_s3 + $0x8] sm:$0xff]  ;;  %2428 = vmatpush.msra.mxu1 %v583_v19  ;;  %2429 = vmatpush.msra.mxu2 %v583_v19 }
 0x210   : > { %5105 = vst [vmem:[#allocation88_spill] sm:$0xff] %v3955_v51  ;;  %v3961_v54 = vsel %vm1722_vm8, %v1709_v33, %v1245_v56  ;;  %v3964_v2 = vsel %vm1722_vm8, %v1711_v0, %v1249_v50  ;;  %v5114_v33 = vld [vmem:[#allocation139_spill] sm:$0xff]  ;;  %v5115_v56 = vld [vmem:[#allocation145_spill] sm:$0xff]  ;;  %1969 = vmatpush.msra.mxu0 %v582_v38  ;;  %2430 = vmatpush.msra.mxu3 %v583_v19 }
 0x211   : > { %v1681_v0 = vsel %vm1656_vm6, %v1648_v62, %v5114_v33  ;;  %v1679_v50 = vsel %vm1656_vm6, %v1646_v53, %v5115_v56  ;;  %2431 = vmatpush.msra.mxu1 %v582_v38  ;;  %2432 = vmatpush.msra.mxu2 %v582_v38  ;;  %v5118_v53 = vld [vmem:[#allocation101_spill] sm:$0xff] }
 0x212   : > { %v1712_v32 = vsel %vm1689_vm7, %v1679_v50, %v3675_v18  ;;  %v1714_v13 = vsel %vm1689_vm7, %v1681_v0, %v3732_v39  ;;  %2433 = vmatpush.msra.mxu3 %v582_v38  ;;  %v5116_v18 = vld [vmem:[#allocation95_spill] sm:$0xff]  ;;  %v5117_v39 = vld [vmem:[#allocation40_spill] sm:$0xff]  ;;  %v1616_v19 = vsel %vm1590_vm4, %v5119_v21, %v5118_v53  ;;  %v5120_v62 = vld [vmem:[#allocation61_spill] sm:$0xff] }
 0x213   : > { %v1618_v63 = vsel %vm1590_vm4, %v5117_v39, %v5116_v18  ;;  %v5122_v0 = vld [vmem:[#allocation14_spill] sm:$0xff]  ;;  %v5123_v56 = vld [vmem:[#allocation45_spill] sm:$0xff] }
 0x214   : > { %1420 = vrot.lane.b32.xlu2 %v5110_v26, %s2484_s17  ;;  %v1651_v38 = vsel %vm1623_vm5, %v1618_v63, %v5122_v0  ;;  %v5124_v50 = vld [vmem:[#allocation141_spill] sm:$0xff]  ;;  %v5128_v0 = vld [vmem:[#allocation104_spill] sm:$0xff] }
 0x215   : > { %1408 = vrot.lane.b32.xlu1 %v5113_v9, %s2484_s17  ;;  %1338 = vrot.lane.b32.xlu0 %v5109_v28, %s2483_s16  ;;  %v581_v28 = vld [vmem:[%s4716_s3] sm:$0xff]  ;;  %v5121_v9 = vld [vmem:[#allocation7_spill] sm:$0xff] }
 0x216   : > { %v3995_v44 = vpop.permute.xlu2 %1302  ;;  %1970 = vmatpush.msra.mxu0 %v581_v28  ;;  %2434 = vmatpush.msra.mxu1 %v581_v28  ;;  %v1649_v33 = vsel %vm1623_vm5, %v1616_v19, %v5121_v9  ;;  %v5127_v9 = vld [vmem:[#allocation50_spill] sm:$0xff] }
 0x217   : > { %v1251_v16 = vpop.permute.xlu1 %1250  ;;  %v1255_v45 = vpop.permute.xlu0 %1254  ;;  %2435 = vmatpush.msra.mxu2 %v581_v28  ;;  %2436 = vmatpush.msra.mxu3 %v581_v28 }
 0x218   : > { %v4005_v15 = vsel %vm1722_vm8, %v1712_v32, %v1251_v16  ;;  %v4008_v26 = vsel %vm1722_vm8, %v1714_v13, %v1255_v45  ;;  %v1684_v32 = vsel %vm1656_vm6, %v1651_v38, %v5124_v50  ;;  %v5125_v13 = vld [vmem:[#allocation56_spill] sm:$0xff]  ;;  %v1619_v38 = vsel %vm1590_vm4, %v5123_v56, %v5128_v0 }
 0x219   : > { %v1682_v16 = vsel %vm1656_vm6, %v1649_v33, %v5125_v13  ;;  %v1717_v18 = vsel %vm1689_vm7, %v1684_v32, %v3744_v27  ;;  %v5130_v27 = vld [vmem:[#allocation127_spill] sm:$0xff]  ;;  %v5131_v32 = vld [vmem:[#allocation128_spill] sm:$0xff] }
 0x21a   : > { %v1715_v28 = vsel %vm1689_vm7, %v1682_v16, %v3686_v23  ;;  %v5129_v23 = vld [vmem:[#allocation49_spill] sm:$0xff]  ;;  %v1652_v50 = vsel %vm1623_vm5, %v1619_v38, %v5130_v27 }
 0x21b   : > { %v5132_v16 = vld [vmem:[#allocation37_spill] sm:$0xff] }
 0x21c   : > { %1504 = vrot.lane.b32.xlu2 %v5120_v62, %s2485_s18  ;;  %v5126_v62 = vld [vmem:[#allocation98_spill] sm:$0xff] }
 0x21d   : > { %1350 = vrot.lane.b32.xlu1 %v5123_v56, %s2483_s16  ;;  %1516 = vrot.lane.b32.xlu0 %v5056_v17, %s2485_s18  ;;  %v1621_v33 = vsel %vm1590_vm4, %v5127_v9, %v5126_v62 }
 0x21e   : > { %v4030_v45 = vpop.permute.xlu2 %1304  ;;  %v1654_v13 = vsel %vm1623_vm5, %v1621_v33, %v5131_v32 }
 0x21f   : > { %v1257_v63 = vpop.permute.xlu1 %1256  ;;  %v1261_v53 = vpop.permute.xlu0 %1260 }
 0x220   : > { %v4037_v19 = vsel %vm1722_vm8, %v1715_v28, %v1257_v63  ;;  %v4040_v17 = vsel %vm1722_vm8, %v1717_v18, %v1261_v53  ;;  %v5133_v28 = vld [vmem:[#allocation84_spill] sm:$0xff]  ;;  %v5134_v18 = vld [vmem:[#allocation55_spill] sm:$0xff]  ;;  %v5135_v53 = vld [vmem:[#allocation146_spill] sm:$0xff] }
 0x221   : > { %v1687_v63 = vsel %vm1656_vm6, %v1654_v13, %v5134_v18  ;;  %v1685_v56 = vsel %vm1656_vm6, %v1652_v50, %v5135_v53  ;;  %v5137_v13 = vld [vmem:[#allocation107_spill] sm:$0xff]  ;;  %v5140_v18 = vld [vmem:[#allocation66_spill] sm:$0xff] }
 0x222   : > { %v1718_v0 = vsel %vm1689_vm7, %v1685_v56, %v3702_v14  ;;  %v1720_v33 = vsel %vm1689_vm7, %v1687_v63, %v3756_v7  ;;  %v2458_v14 = vunpack.i.l.bf16 %v5140_v18  ;;  %v5141_v53 = vld [vmem:[#allocation22_spill] sm:$0xff]  ;;  %v5142_v63 = vld [vmem:[#allocation109_spill] sm:$0xff] }
 0x223   : > { %v2463_v56 = vunpack.i.l.bf16 %v5142_v63 }
 0x224   : > { %1446 = vrot.lane.b32.xlu2 %v5129_v23, %s2484_s17 }
 0x225   : > { %1434 = vrot.lane.b32.xlu1 %v5132_v16, %s2484_s17  ;;  %1530 = vrot.lane.b32.xlu0 %v5133_v28, %s2485_s18  ;;  %v5138_v16 = vld [vmem:[#allocation47_spill] sm:$0xff] }
 0x226   : > { %v4062_v62 = vpop.permute.xlu2 %1306  ;;  %v1622_v50 = vsel %vm1590_vm4, %v5138_v16, %v5137_v13  ;;  %v5139_v28 = vld [vmem:[#allocation15_spill] sm:$0xff] }
 0x227   : > { %v1263_v38 = vpop.permute.xlu1 %1262  ;;  %v1267_v23 = vpop.permute.xlu0 %1266  ;;  %v1655_v7 = vsel %vm1623_vm5, %v1622_v50, %v5141_v53 }
 0x228   : > { %v4069_v27 = vsel %vm1722_vm8, %v1718_v0, %v1263_v38  ;;  %v4072_v32 = vsel %vm1722_vm8, %v1720_v33, %v1267_v23  ;;  %v5143_v0 = vld [vmem:[#allocation149_spill] sm:$0xff] }
 0x229   : > { %5136 = vst [vmem:[#allocation117_spill] sm:$0xff] %v4072_v32  ;;  %v1688_v33 = vsel %vm1656_vm6, %v1655_v7, %v5143_v0  ;;  %v5146_v0 = vld [vmem:[#allocation27_spill] sm:$0xff] }
 0x22a   : > { %v1721_v23 = vsel %vm1689_vm7, %v1688_v33, %v3718_v55  ;;  %v2459_v55 = vunpack.i.h.bf16 %v5140_v18 }
 0x22c   : > { %1314 = vrot.lane.b32.xlu2 %v5139_v28, %s2483_s16 }
 0x22d   : > { %1542 = vrot.lane.b32.xlu1 %v3262_v29, %s2485_s18  ;;  %1326 = vrot.lane.b32.xlu0 %v5085_v59, %s2483_s16  ;;  %v1591_v29 = vsel %vm1590_vm4, 0.0, %v2458_v14  ;;  %v5144_v59 = vld [vmem:[#allocation8_spill] sm:$0xff]  ;;  %v5147_v14 = vld [vmem:[#allocation19_spill] sm:$0xff] }
 0x22e   : > { %v4089_v38 = vpop.permute.xlu2 %1414  ;;  %v1624_v53 = vsel %vm1623_vm5, %v1591_v29, %v2463_v56  ;;  %v2464_v56 = vunpack.i.h.bf16 %v5142_v63  ;;  %v1592_v29 = vsel %vm1590_vm4, 0.0, %v2459_v55 }
 0x22f   : > { %v1269_v13 = vpop.permute.xlu1 %1268  ;;  %v1399_v32 = vpop.permute.xlu0 %1398  ;;  %v1657_v51 = vsel %vm1656_vm6, %v1624_v53, %v5144_v59  ;;  %v5148_v53 = vld [vmem:[#allocation129_spill] sm:$0xff]  ;;  %v5149_v59 = vld [vmem:[#allocation58_spill] sm:$0xff] }
 0x230   : > { %v4094_v50 = vsel %vm1722_vm8, %v1721_v23, %v1269_v13  ;;  %v1690_v7 = vsel %vm1689_vm7, %v1657_v51, %v5145_v48 }
 0x231   : > { %v1723_v33 = vsel %vm1722_vm8, %v1690_v7, %v3758_v8  ;;  %v5150_v7 = vld [vmem:[#allocation64_spill] sm:$0xff] }
 0x232   : > { %v1756_v48 = vsel %vm1755_vm10, %v1723_v33, %v3995_v44 }
 0x233   : > { %v1789_v18 = vsel %vm1788_vm11, %v1756_v48, %v1399_v32 }
 0x234   : > { %1422 = vrot.lane.b32.xlu2 %v5146_v0, %s2484_s17  ;;  %v5151_v0 = vld [vmem:[#allocation73_spill] sm:$0xff] }
 0x235   : > { %1410 = vrot.lane.b32.xlu1 %v5147_v14, %s2484_s17  ;;  %1340 = vrot.lane.b32.xlu0 %v2871_v34, %s2483_s16  ;;  %v1625_v34 = vsel %vm1623_vm5, %v1592_v29, %v2464_v56 }
 0x236   : > { %v4114_v51 = vpop.permute.xlu2 %1308  ;;  %v1658_v63 = vsel %vm1656_vm6, %v1625_v34, %v5148_v53  ;;  %v5155_v34 = vld [vmem:[#allocation130_spill] sm:$0xff] }
 0x237   : > { %v1495_v23 = vpop.permute.xlu1 %1494  ;;  %v1401_v13 = vpop.permute.xlu0 %1400  ;;  %v1691_v44 = vsel %vm1689_vm7, %v1658_v63, %v5149_v59  ;;  %v5158_v59 = vld [vmem:[#allocation41_spill] sm:$0xff] }
 0x238   : > { %v1822_v8 = vsel %vm1821_vm12, %v1789_v18, %v1495_v23  ;;  %v1724_v32 = vsel %vm1722_vm8, %v1691_v44, %v3768_v37  ;;  %v5152_v23 = vld [vmem:[#allocation71_spill] sm:$0xff]  ;;  %v5153_v37 = vld [vmem:[#allocation5_spill] sm:$0xff] }
 0x239   : > { %2387 = vmatmul.msk.f32.vlgmr.msra.gmra.mxu0 %vm1854_vm13, %v1822_v8  ;;  %v1757_v55 = vsel %vm1755_vm10, %v1724_v32, %v4030_v45  ;;  %v1593_v8 = vsel %vm1590_vm4, %v5153_v37, %v5152_v23  ;;  %v5156_v45 = vld [vmem:[#allocation52_spill] sm:$0xff]  ;;  %v5159_v44 = vld [vmem:[#allocation83_spill] sm:$0xff]  ;;  %v5161_v23 = vld [vmem:[#allocation105_spill] sm:$0xff] }
 0x23a   : > { %v1790_v14 = vsel %vm1788_vm11, %v1757_v55, %v1401_v13  ;;  %v5157_v13 = vld [vmem:[#allocation151_spill] sm:$0xff] }
 0x23c   : > { %1506 = vrot.lane.b32.xlu2 %v5150_v7, %s2485_s18 }
 0x23d   : > { %1352 = vrot.lane.b32.xlu1 %v5094_v43, %s2483_s16  ;;  %1518 = vrot.lane.b32.xlu0 %v5151_v0, %s2485_s18  ;;  %v5154_v43 = vld [vmem:[#allocation100_spill] sm:$0xff]  ;;  %v5160_v0 = vld [vmem:[#allocation81_spill] sm:$0xff] }
 0x23e   : > { %v1417_v33 = vpop.permute.xlu2 %1416  ;;  %v1626_v29 = vsel %vm1623_vm5, %v1593_v8, %v5154_v43  ;;  %v1599_v55 = vsel %vm1590_vm4, %v2678_v35, %v5160_v0  ;;  %v5162_v43 = vld [vmem:[#allocation135_spill] sm:$0xff] }
 0x23f   : > { %v1497_v56 = vpop.permute.xlu1 %1496  ;;  %v1319_v48 = vpop.permute.xlu0 %1318  ;;  %v1659_v53 = vsel %vm1656_vm6, %v1626_v29, %v5155_v34  ;;  %v1632_v37 = vsel %vm1623_vm5, %v1599_v55, %v5161_v23  ;;  %v5163_v34 = vld [vmem:[#allocation154_spill] sm:$0xff] }
 0x240   : > { %v1823_v18 = vsel %vm1821_vm12, %v1790_v14, %v1497_v56  ;;  %v1692_v63 = vsel %vm1689_vm7, %v1659_v53, %v5157_v13  ;;  %v1665_v29 = vsel %vm1656_vm6, %v1632_v37, %v5162_v43  ;;  %v5165_v13 = vld [vmem:[#allocation67_spill] sm:$0xff]  ;;  %v5171_v43 = vld [vmem:[#allocation21_spill] sm:$0xff] }
 0x241   : > { %2388 = vmatmul.msk.f32.gmra.mxu0 %vm1854_vm13, %v1823_v18  ;;  %v1725_v7 = vsel %vm1722_vm8, %v1692_v63, %v3730_v52  ;;  %v1698_v53 = vsel %vm1689_vm7, %v1665_v29, %v5163_v34  ;;  %v1600_v63 = vsel %vm1590_vm4, %v5099_v1, %v5165_v13  ;;  %v5169_v1 = vld [vmem:[#allocation79_spill] sm:$0xff]  ;;  %v5174_v13 = vld [vmem:[#allocation110_spill] sm:$0xff] }
 0x242   : > { %v1758_v14 = vsel %vm1755_vm10, %v1725_v7, %v4062_v62  ;;  %v1731_v35 = vsel %vm1722_vm8, %v1698_v53, %v3754_v47  ;;  %v5168_v47 = vld [vmem:[#allocation20_spill] sm:$0xff]  ;;  %v5172_v53 = vld [vmem:[#allocation70_spill] sm:$0xff] }
 0x243   : > { %v1764_v62 = vsel %vm1755_vm10, %v1731_v35, %v1319_v48  ;;  %v5173_v35 = vld [vmem:[#allocation3_spill] sm:$0xff] }
 0x244   : > { %1448 = vrot.lane.b32.xlu2 %v5156_v45, %s2484_s17  ;;  %v5164_v45 = vld [vmem:[#allocation13_spill] sm:$0xff] }
 0x245   : > { %1436 = vrot.lane.b32.xlu1 %v5158_v59, %s2484_s17  ;;  %1532 = vrot.lane.b32.xlu0 %v5159_v44, %s2485_s18  ;;  %v5166_v59 = vld [vmem:[#allocation94_spill] sm:$0xff] }
 0x246   : > { %v1513_v32 = vpop.permute.xlu2 %1512  ;;  %v5167_v44 = vld [vmem:[#allocation114_spill] sm:$0xff] }
 0x247   : > { %v1403_v56 = vpop.permute.xlu1 %1402  ;;  %v1499_v18 = vpop.permute.xlu0 %1498  ;;  %v1633_v7 = vsel %vm1623_vm5, %v1600_v63, %v5167_v44 }
 0x248   : > { %v1791_v8 = vsel %vm1788_vm11, %v1758_v14, %v1403_v56  ;;  %v1666_v48 = vsel %vm1656_vm6, %v1633_v7, %v5168_v47  ;;  %v1797_v56 = vsel %vm1788_vm11, %v1764_v62, %v4089_v38  ;;  %v1594_v62 = vsel %vm1590_vm4, %v5173_v35, %v5172_v53  ;;  %v5177_v7 = vld [vmem:[#allocation63_spill] sm:$0xff]  ;;  %v5178_v47 = vld [vmem:[#allocation72_spill] sm:$0xff] }
 0x249   : > { %v1824_v52 = vsel %vm1821_vm12, %v1791_v8, %v1499_v18  ;;  %v1699_v18 = vsel %vm1689_vm7, %v1666_v48, %v5169_v1  ;;  %v5170_v8 = vld [vmem:[#allocation31_spill] sm:$0xff]  ;;  %v1627_v63 = vsel %vm1623_vm5, %v1594_v62, %v5174_v13 }
 0x24a   : > { %2389 = vmatmul.msk.f32.gmra.mxu0 %vm1854_vm13, %v1824_v52 }
 0x24c   : > { %1316 = vrot.lane.b32.xlu2 %v5164_v45, %s2483_s16 }
 0x24d   : > { %1544 = vrot.lane.b32.xlu1 %v5166_v59, %s2485_s18  ;;  %1328 = vrot.lane.b32.xlu0 %v2766_v58, %s2483_s16  ;;  %v1732_v58 = vsel %vm1722_vm8, %v1699_v18, %v3813_v60  ;;  %v5175_v59 = vld [vmem:[#allocation10_spill] sm:$0xff] }
 0x24e   : > { %v4183_v0 = vpop.permute.xlu2 %1310  ;;  %v1660_v44 = vsel %vm1656_vm6, %v1627_v63, %v5175_v59 }
 0x24f   : > { %v1511_v55 = vpop.permute.xlu1 %1510  ;;  %v1321_v14 = vpop.permute.xlu0 %1320 }
 0x250   : > { %v1830_v23 = vsel %vm1821_vm12, %v1797_v56, %v1511_v55  ;;  %v1765_v37 = vsel %vm1755_vm10, %v1732_v58, %v1321_v14 }
 0x251   : > { %2395 = vmatmul.msk.f32.vlgmr.msra.gmra.mxu1 %vm1854_vm13, %v1830_v23  ;;  %v1798_v38 = vsel %vm1788_vm11, %v1765_v37, %v1417_v33  ;;  %v5179_v23 = vld [vmem:[#allocation82_spill] sm:$0xff]  ;;  %v5181_v37 = vld [vmem:[#allocation51_spill] sm:$0xff] }
 0x252   : > { %v1831_v60 = vsel %vm1821_vm12, %v1798_v38, %v1513_v32  ;;  %v5184_v38 = vld [vmem:[#allocation85_spill] sm:$0xff] }
 0x254   : > { %1424 = vrot.lane.b32.xlu2 %v5170_v8, %s2484_s17 }
 0x255   : > { %1412 = vrot.lane.b32.xlu1 %v5171_v43, %s2484_s17  ;;  %1342 = vrot.lane.b32.xlu0 %v5107_v6, %s2483_s16  ;;  %v5176_v6 = vld [vmem:[#allocation68_spill] sm:$0xff]  ;;  %v5183_v43 = vld [vmem:[#allocation39_spill] sm:$0xff] }
 0x256   : > { %v1419_v29 = vpop.permute.xlu2 %1418  ;;  %v1693_v33 = vsel %vm1689_vm7, %v1660_v44, %v5176_v6 }
 0x257   : > { %v1405_v52 = vpop.permute.xlu1 %1404  ;;  %v1335_v34 = vpop.permute.xlu0 %1334  ;;  %v1726_v32 = vsel %vm1722_vm8, %v1693_v33, %v3770_v22  ;;  %v1601_v22 = vsel %vm1590_vm4, %v5139_v28, %v5179_v23 }
 0x258   : > { %v1759_v48 = vsel %vm1755_vm10, %v1726_v32, %v4114_v51  ;;  %v5182_v51 = vld [vmem:[#allocation136_spill] sm:$0xff]  ;;  %v1772_v28 = vsel %vm1755_vm10, %v3916_v36, %v1335_v34 }
 0x259   : > { %2396 = vmatmul.msk.f32.gmra.mxu1 %vm1854_vm13, %v1831_v60  ;;  %v1792_v14 = vsel %vm1788_vm11, %v1759_v48, %v1405_v52  ;;  %v5185_v52 = vld [vmem:[#allocation65_spill] sm:$0xff]  ;;  %v5187_v32 = vld [vmem:[#allocation76_spill] sm:$0xff] }
 0x25c   : > { %1508 = vrot.lane.b32.xlu2 %v5177_v7, %s2485_s18 }
 0x25d   : > { %1354 = vrot.lane.b32.xlu1 %v5127_v9, %s2483_s16  ;;  %1520 = vrot.lane.b32.xlu0 %v5178_v47, %s2485_s18  ;;  %v5180_v9 = vld [vmem:[#allocation115_spill] sm:$0xff] }
 0x25e   : > { %v1515_v55 = vpop.permute.xlu2 %1514  ;;  %v1634_v58 = vsel %vm1623_vm5, %v1601_v22, %v5180_v9  ;;  %v5188_v47 = vld [vmem:[#allocation111_spill] sm:$0xff] }
 0x25f   : > { %v1501_v56 = vpop.permute.xlu1 %1500  ;;  %v1431_v1 = vpop.permute.xlu0 %1430  ;;  %v1667_v8 = vsel %vm1656_vm6, %v1634_v58, %v5182_v51 }
 0x260   : > { %v1825_v18 = vsel %vm1821_vm12, %v1792_v14, %v1501_v56  ;;  %v1700_v60 = vsel %vm1689_vm7, %v1667_v8, %v5185_v52  ;;  %v1805_v62 = vsel %vm1788_vm11, %v1772_v28, %v1431_v1  ;;  %v5195_v52 = vld [vmem:[#allocation59_spill] sm:$0xff]  ;;  %v5196_v28 = vld [vmem:[#allocation102_spill] sm:$0xff] }
 0x261   : > { %2390 = vmatmul.msk.f32.gmra.mxu0 %vm1854_vm13, %v1825_v18  ;;  %v1733_v35 = vsel %vm1722_vm8, %v1700_v60, %v3833_v24  ;;  %v5186_v24 = vld [vmem:[#allocation29_spill] sm:$0xff]  ;;  %v1596_v60 = vsel %vm1590_vm4, %v2582_v30, %v5195_v52 }
 0x264   : > { %1450 = vrot.lane.b32.xlu2 %v5181_v37, %s2484_s17 }
 0x265   : > { %1438 = vrot.lane.b32.xlu1 %v5183_v43, %s2484_s17  ;;  %1534 = vrot.lane.b32.xlu0 %v5184_v38, %s2485_s18 }
 0x266   : > { %v1313_v53 = vpop.permute.xlu2 %1312 }
 0x267   : > { %v1527_v13 = vpop.permute.xlu1 %1526  ;;  %v1323_v63 = vpop.permute.xlu0 %1322 }
 0x268   : > { %v1766_v59 = vsel %vm1755_vm10, %v1733_v35, %v1323_v63  ;;  %v1838_v44 = vsel %vm1821_vm12, %v1805_v62, %v1527_v13  ;;  %v1629_v35 = vsel %vm1623_vm5, %v1596_v60, %v5196_v28  ;;  %v5197_v62 = vld [vmem:[#allocation133_spill] sm:$0xff]  ;;  %v5213_v28 = vld [vmem:[#allocation122_spill] sm:$0xff] }
 0x269   : > { %2403 = vmatmul.msk.f32.vlgmr.msra.gmra.mxu2 %vm1854_vm13, %v1838_v44  ;;  %v1799_v6 = vsel %vm1788_vm11, %v1766_v59, %v1419_v29  ;;  %v1595_v29 = vsel %vm1590_vm4, %v2643_v4, %v5187_v32  ;;  %v5191_v4 = vld [vmem:[#allocation74_spill] sm:$0xff]  ;;  %v1662_v13 = vsel %vm1656_vm6, %v1629_v35, %v5197_v62  ;;  %v5199_v59 = vld [vmem:[#allocation97_spill] sm:$0xff]  ;;  %v5200_v44 = vld [vmem:[#allocation32_spill] sm:$0xff] }
 0x26a   : > { %v1832_v33 = vsel %vm1821_vm12, %v1799_v6, %v1515_v55  ;;  %v1628_v48 = vsel %vm1623_vm5, %v1595_v29, %v5188_v47  ;;  %v5189_v55 = vld [vmem:[#allocation131_spill] sm:$0xff]  ;;  %v5203_v29 = vld [vmem:[#allocation108_spill] sm:$0xff]  ;;  %v5212_v60 = vld [vmem:[#allocation157_spill] sm:$0xff] }
 0x26b   : > { %2397 = vmatmul.msk.f32.gmra.mxu1 %vm1854_vm13, %v1832_v33  ;;  %v1661_v14 = vsel %vm1656_vm6, %v1628_v48, %v5189_v55  ;;  %v5201_v6 = vld [vmem:[#allocation159_spill] sm:$0xff]  ;;  %v5204_v55 = vld [vmem:[#allocation138_spill] sm:$0xff] }
 0x26c   : > { %1330 = vrot.lane.b32.xlu2 %v5083_v61, %s2483_s16  ;;  %v5190_v61 = vld [vmem:[#allocation57_spill] sm:$0xff] }
 0x26d   : > { %1546 = vrot.lane.b32.xlu1 %v3265_v11, %s2485_s18  ;;  %1426 = vrot.lane.b32.xlu0 %v5186_v24, %s2484_s17  ;;  %v1694_v56 = vsel %vm1689_vm7, %v1661_v14, %v5190_v61  ;;  %v5202_v24 = vld [vmem:[#allocation87_spill] sm:$0xff] }
 0x26e   : > { %v1421_v36 = vpop.permute.xlu2 %1420  ;;  %v1727_v11 = vsel %vm1722_vm8, %v1694_v56, %v3789_v25  ;;  %v5192_v25 = vld [vmem:[#allocation53_spill] sm:$0xff]  ;;  %v5205_v56 = vld [vmem:[#allocation155_spill] sm:$0xff] }
 0x26f   : > { %v1407_v34 = vpop.permute.xlu1 %1406  ;;  %v1337_v7 = vpop.permute.xlu0 %1336  ;;  %v1760_v1 = vsel %vm1755_vm10, %v1727_v11, %v4183_v0 }
 0x270   : > { %v1793_v23 = vsel %vm1788_vm11, %v1760_v1, %v1407_v34  ;;  %v1773_v0 = vsel %vm1755_vm10, %v3809_v57, %v1337_v7  ;;  %v5198_v57 = vld [vmem:[#allocation152_spill] sm:$0xff]  ;;  %v1602_v34 = vsel %vm1590_vm4, %v5164_v45, %v5202_v24  ;;  %v5207_v1 = vld [vmem:[#allocation121_spill] sm:$0xff]  ;;  %v5218_v24 = vld [vmem:[#allocation143_spill] sm:$0xff] }
 0x271   : > { %v1695_v63 = vsel %vm1689_vm7, %v1662_v13, %v5198_v57  ;;  %v1635_v47 = vsel %vm1623_vm5, %v1602_v34, %v5203_v29  ;;  %v5206_v45 = vld [vmem:[#allocation160_spill] sm:$0xff]  ;;  %v5219_v34 = vld [vmem:[#allocation153_spill] sm:$0xff] }
 0x272   : > { %v1728_v30 = vsel %vm1722_vm8, %v1695_v63, %v5201_v6  ;;  %v1668_v14 = vsel %vm1656_vm6, %v1635_v47, %v5204_v55  ;;  %v5214_v63 = vld [vmem:[#allocation62_spill] sm:$0xff]  ;;  %v5222_v29 = vld [vmem:[#allocation69_spill] sm:$0xff] }
 0x273   : > { %v1761_v7 = vsel %vm1755_vm10, %v1728_v30, %v1313_v53  ;;  %v1701_v11 = vsel %vm1689_vm7, %v1668_v14, %v5205_v56  ;;  %v5217_v6 = vld [vmem:[#allocation126_spill] sm:$0xff]  ;;  %v5223_v47 = vld [vmem:[#allocation17_spill] sm:$0xff]  ;;  %v5224_v56 = vld [vmem:[#allocation116_spill] sm:$0xff] }
 0x274   : > { %1356 = vrot.lane.b32.xlu2 %v5138_v16, %s2483_s16  ;;  %v5194_v16 = vld [vmem:[#allocation90_spill] sm:$0xff]  ;;  %v1734_v53 = vsel %vm1722_vm8, %v1701_v11, %v5206_v45 }
 0x275   : > { %1344 = vrot.lane.b32.xlu1 %v5119_v21, %s2483_s16  ;;  %1522 = vrot.lane.b32.xlu0 %v5191_v4, %s2485_s18  ;;  %v5193_v21 = vld [vmem:[#allocation42_spill] sm:$0xff] }
 0x276   : > { %v1505_v18 = vpop.permute.xlu2 %1504 }
 0x277   : > { %v1503_v22 = vpop.permute.xlu1 %1502  ;;  %v1433_v9 = vpop.permute.xlu0 %1432 }
 0x278   : > { %v1826_v58 = vsel %vm1821_vm12, %v1793_v23, %v1503_v22  ;;  %v1806_v51 = vsel %vm1788_vm11, %v1773_v0, %v1433_v9  ;;  %v5208_v23 = vld [vmem:[#allocation78_spill] sm:$0xff] }
 0x279   : > { %2391 = vmatmul.msk.f32.gmra.mxu0 %vm1854_vm13, %v1826_v58 }
 0x27c   : > { %1452 = vrot.lane.b32.xlu2 %v5192_v25, %s2484_s17 }
 0x27d   : > { %1440 = vrot.lane.b32.xlu1 %v5193_v21, %s2484_s17  ;;  %1536 = vrot.lane.b32.xlu0 %v5194_v16, %s2485_s18  ;;  %v5209_v21 = vld [vmem:[#allocation144_spill] sm:$0xff] }
 0x27e   : > { %v1447_v37 = vpop.permute.xlu2 %1446  ;;  %v5210_v16 = vld [vmem:[#allocation48_spill] sm:$0xff] }
 0x27f   : > { %v1529_v8 = vpop.permute.xlu1 %1528  ;;  %v1325_v43 = vpop.permute.xlu0 %1324 }
 0x280   : > { %v1839_v38 = vsel %vm1821_vm12, %v1806_v51, %v1529_v8  ;;  %v1767_v4 = vsel %vm1755_vm10, %v1734_v53, %v1325_v43 }
 0x281   : > { %2404 = vmatmul.msk.f32.gmra.mxu2 %vm1854_vm13, %v1839_v38  ;;  %v1800_v58 = vsel %vm1788_vm11, %v1767_v4, %v1421_v36  ;;  %v5225_v4 = vld [vmem:[#allocation26_spill] sm:$0xff] }
 0x284   : > { %1332 = vrot.lane.b32.xlu2 %v5097_v49, %s2483_s16 }
 0x285   : > { %1548 = vrot.lane.b32.xlu1 %v5199_v59, %s2485_s18  ;;  %1428 = vrot.lane.b32.xlu0 %v5200_v44, %s2484_s17 }
 0x286   : > { %v1315_v33 = vpop.permute.xlu2 %1314 }
 0x287   : > { %v1409_v49 = vpop.permute.xlu1 %1408  ;;  %v1339_v32 = vpop.permute.xlu0 %1338 }
 0x288   : > { %v1794_v48 = vsel %vm1788_vm11, %v1761_v7, %v1409_v49  ;;  %v1774_v51 = vsel %vm1755_vm10, %v3919_v3, %v1339_v32  ;;  %v5220_v7 = vld [vmem:[#allocation46_spill] sm:$0xff]  ;;  %v5221_v49 = vld [vmem:[#allocation91_spill] sm:$0xff] }
 0x289   : > { %v1827_v61 = vsel %vm1821_vm12, %v1794_v48, %v1505_v18  ;;  %v1603_v48 = vsel %vm1590_vm4, %v5223_v47, %v5222_v29  ;;  %v5234_v29 = vld [vmem:[#allocation134_spill] sm:$0xff]  ;;  %v5235_v47 = vld [vmem:[#allocation147_spill] sm:$0xff] }
 0x28a   : > { %2392 = vmatmul.msk.f32.gmra.mxu0 %vm1854_vm13, %v1827_v61  ;;  %v1636_v11 = vsel %vm1623_vm5, %v1603_v48, %v5224_v56 }
 0x28c   : > { %1358 = vrot.lane.b32.xlu2 %v5207_v1, %s2483_s16  ;;  %v1669_v1 = vsel %vm1656_vm6, %v1636_v11, %v5225_v4 }
 0x28d   : > { %1346 = vrot.lane.b32.xlu1 %v5081_v31, %s2483_s16  ;;  %1524 = vrot.lane.b32.xlu0 %v5208_v23, %s2485_s18  ;;  %v5211_v31 = vld [vmem:[#allocation89_spill] sm:$0xff]  ;;  %v5226_v23 = vld [vmem:[#allocation156_spill] sm:$0xff] }
 0x28e   : > { %v1423_v18 = vpop.permute.xlu2 %1422 }
 0x28f   : > { %v1351_v22 = vpop.permute.xlu1 %1350  ;;  %v1517_v9 = vpop.permute.xlu0 %1516 }
 0x290   : > { %v1833_v25 = vsel %vm1821_vm12, %v1800_v58, %v1517_v9  ;;  %v1780_v52 = vsel %vm1755_vm10, %v4008_v26, %v1351_v22  ;;  %v5215_v26 = vld [vmem:[#allocation6_spill] sm:$0xff]  ;;  %v1702_v22 = vsel %vm1689_vm7, %v1669_v1, %v5226_v23  ;;  %v5227_v58 = vmov 0.0  }
 0x291   : > { %2398 = vmatmul.msk.f32.gmra.mxu1 %vm1854_vm13, %v1833_v25  ;;  %v1813_v13 = vsel %vm1788_vm11, %v1780_v52, %v1447_v37  ;;  %v1597_v59 = vsel %vm1590_vm4, %v5215_v26, %v5214_v63  ;;  %v5228_v25 = vld [vmem:[#allocation158_spill] sm:$0xff] }
 0x294   : > { %1454 = vrot.lane.b32.xlu2 %v5209_v21, %s2484_s17  ;;  %v5229_v21 = vld [vmem:[#allocation2_spill] sm:$0xff] }
 0x295   : > { %1442 = vrot.lane.b32.xlu1 %v5210_v16, %s2484_s17  ;;  %1538 = vrot.lane.b32.xlu0 %v5211_v31, %s2485_s18 }
 0x296   : > { %v1507_v0 = vpop.permute.xlu2 %1506 }
 0x297   : > { %v1435_v8 = vpop.permute.xlu1 %1434  ;;  %v1531_v43 = vpop.permute.xlu0 %1530 }
 0x298   : > { %v1807_v36 = vsel %vm1788_vm11, %v1774_v51, %v1435_v8  ;;  %v5230_v8 = vld [vmem:[#allocation54_spill] sm:$0xff] }
 0x299   : > { %v1840_v38 = vsel %vm1821_vm12, %v1807_v36, %v1531_v43 }
 0x29a   : > { %2405 = vmatmul.msk.f32.gmra.mxu2 %vm1854_vm13, %v1840_v38 }
 0x29c   : > { %1348 = vrot.lane.b32.xlu2 %v5117_v39, %s2483_s16  ;;  %v5216_v39 = vld [vmem:[#allocation112_spill] sm:$0xff] }
 0x29d   : > { %1550 = vrot.lane.b32.xlu1 %v5212_v60, %s2485_s18  ;;  %1360 = vrot.lane.b32.xlu0 %v5213_v28, %s2483_s16  ;;  %v1630_v44 = vsel %vm1623_vm5, %v1597_v59, %v5216_v39 }
 0x29e   : > { %v1449_v3 = vpop.permute.xlu2 %1448  ;;  %v1663_v30 = vsel %vm1656_vm6, %v1630_v44, %v5217_v6 }
 0x29f   : > { %v1543_v35 = vpop.permute.xlu1 %1542  ;;  %v1327_v62 = vpop.permute.xlu0 %1326  ;;  %v1696_v37 = vsel %vm1689_vm7, %v1663_v30, %v5219_v34  ;;  %v5232_v34 = vld [vmem:[#allocation4_spill] sm:$0xff] }
 0x2a0   : > { %v1846_v57 = vsel %vm1821_vm12, %v1813_v13, %v1543_v35  ;;  %v1729_v32 = vsel %vm1722_vm8, %v1696_v37, %v3791_v5 }
 0x2a1   : > { %2411 = vmatmul.msk.f32.vlgmr.msra.gmra.mxu3 %vm1854_vm13, %v1846_v57  ;;  %v1762_v55 = vsel %vm1755_vm10, %v1729_v32, %v1315_v33  ;;  %v1735_v33 = vsel %vm1722_vm8, %v1702_v22, %v3835_v41 }
 0x2a2   : > { %v1768_v9 = vsel %vm1755_vm10, %v1735_v33, %v1327_v62 }
 0x2a4   : > { %1456 = vrot.lane.b32.xlu2 %v5218_v24, %s2484_s17  ;;  %v5231_v24 = vld [vmem:[#allocation77_spill] sm:$0xff] }
 0x2a5   : > { %1444 = vrot.lane.b32.xlu1 %v5220_v7, %s2484_s17  ;;  %1540 = vrot.lane.b32.xlu0 %v5221_v49, %s2485_s18  ;;  %v1598_v37 = vsel %vm1590_vm4, %v5232_v34, %v5231_v24  ;;  %v5233_v49 = vld [vmem:[#allocation113_spill] sm:$0xff] }
 0x2a6   : > { %v1317_v45 = vpop.permute.xlu2 %1316  ;;  %v1631_v32 = vsel %vm1623_vm5, %v1598_v37, %v5233_v49 }
 0x2a7   : > { %v1411_v14 = vpop.permute.xlu1 %1410  ;;  %v1341_v61 = vpop.permute.xlu0 %1340 }
 0x2a8   : > { %v1795_v53 = vsel %vm1788_vm11, %v1762_v55, %v1411_v14  ;;  %v1775_v43 = vsel %vm1755_vm10, %v3961_v54, %v1341_v61 }
 0x2a9   : > { %v1828_v5 = vsel %vm1821_vm12, %v1795_v53, %v1507_v0  ;;  %v1801_v0 = vsel %vm1788_vm11, %v1768_v9, %v1423_v18 }
 0x2aa   : > { %2393 = vmatmul.msk.f32.gmra.mxu0 %vm1854_vm13, %v1828_v5 }
 0x2ac   : > { %1362 = vrot.lane.b32.xlu2 %v5227_v58, %s2483_s16 }
 0x2ad   : > { %1552 = vrot.lane.b32.xlu1 %v5228_v25, %s2485_s18  ;;  %1458 = vrot.lane.b32.xlu0 %v5229_v21, %s2484_s17 }
 0x2ae   : > { %v1425_v41 = vpop.permute.xlu2 %1424 }
 0x2af   : > { %v1353_v16 = vpop.permute.xlu1 %1352  ;;  %v1519_v31 = vpop.permute.xlu0 %1518 }
 0x2b0   : > { %v1834_v51 = vsel %vm1821_vm12, %v1801_v0, %v1519_v31  ;;  %v1781_v28 = vsel %vm1755_vm10, %v4037_v19, %v1353_v16 }
 0x2b1   : > { %2399 = vmatmul.msk.f32.gmra.mxu1 %vm1854_vm13, %v1834_v51  ;;  %v1814_v39 = vsel %vm1788_vm11, %v1781_v28, %v1449_v3  ;;  %v1664_v3 = vsel %vm1656_vm6, %v1631_v32, %v5234_v29 }
 0x2b2   : > { %v1697_v48 = vsel %vm1689_vm7, %v1664_v3, %v5235_v47 }
 0x2b3   : > { %v1730_v55 = vsel %vm1722_vm8, %v1697_v48, %v3811_v46 }
 0x2b4   : > { %1364 = vrot.lane.b32.xlu2 %v5227_v58, %s2483_s16  ;;  %v1763_v61 = vsel %vm1755_vm10, %v1730_v55, %v1317_v45  ;;  %s268_s16 = scalar_lea.vmem %s4719_s6, %s5240_s22 }
 0x2b5   : > { %1554 = vrot.lane.b32.xlu1 %v5230_v8, %s2485_s18  ;;  %1460 = vrot.lane.b32.xlu0 %v5229_v21, %s2484_s17 }
 0x2b6   : > { %v1972_v18 = vpop.f32.mrf.mxu0  ;;  %v1509_v35 = vpop.permute.xlu2 %1508 }
 0x2b7   : > { %2068 = vst.msk [vmem:[%s4404_s10] sm:$0xff] %vm1590_vm4, %v1972_v18  ;;  %v1437_v36 = vpop.permute.xlu1 %1436  ;;  %v1533_v38 = vpop.permute.xlu0 %1532  ;;  %v2171_v62 = vmul.f32 %v1972_v18, %v1972_v18  ;;  %v2100_v54 = vsel %vm1590_vm4, %v1972_v18, 0.0 }
 0x2b8   : > { %v1808_v52 = vsel %vm1788_vm11, %v1775_v43, %v1437_v36 }
 0x2b9   : > { %v1841_v60 = vsel %vm1821_vm12, %v1808_v52, %v1533_v38  ;;  %v2203_v6 = vsel %vm1590_vm4, %v2171_v62, 0.0 }
 0x2ba   : > { %2406 = vmatmul.msk.f32.gmra.mxu2 %vm1854_vm13, %v1841_v60 }
 0x2bd   : > { %1556 = vrot.lane.b32.xlu1 %v5230_v8, %s2485_s18 }
 0x2be   : > { %v1975_v13 = vpop.f32.mrf.mxu0  ;;  %v1451_v14 = vpop.permute.xlu2 %1450 }
 0x2bf   : > { %2069 = vst.msk [vmem:[%s4404_s10 + $0x8] sm:$0xff] %vm1590_vm4, %v1975_v13  ;;  %v2101_v57 = vsel %vm1590_vm4, %v1975_v13, 0.0  ;;  %v2172_v63 = vmul.f32 %v1975_v13, %v1975_v13  ;;  %v1545_v26 = vpop.permute.xlu1 %1544  ;;  %v1329_v59 = vpop.permute.xlu0 %1328 }
 0x2c0   : > { %v2102_v44 = vadd.f32 %v2101_v57, %v2100_v54  ;;  %v1847_v19 = vsel %vm1821_vm12, %v1814_v39, %v1545_v26  ;;  %v1769_v45 = vsel %vm1755_vm10, %v3874_v20, %v1329_v59 }
 0x2c1   : > { %v2204_v30 = vsel %vm1590_vm4, %v2172_v63, 0.0  ;;  %2412 = vmatmul.msk.f32.gmra.mxu3 %vm1854_vm13, %v1847_v19  ;;  %v1802_v21 = vsel %vm1788_vm11, %v1769_v45, %v1425_v41 }
 0x2c2   : > { %v2205_v7 = vadd.f32 %v2204_v30, %v2203_v6 }
 0x2c6   : > { %v1331_v16 = vpop.permute.xlu2 %1330 }
 0x2c7   : > { %v1413_v56 = vpop.permute.xlu1 %1412  ;;  %v1978_v11 = vpop.f32.mrf.mxu0  ;;  %v1770_v63 = vsel %vm1755_vm10, %v3787_v10, %v1331_v16 }
 0x2c8   : > { %v1796_v53 = vsel %vm1788_vm11, %v1763_v61, %v1413_v56  ;;  %2070 = vst.msk [vmem:[%s4404_s10 + $0x10] sm:$0xff] %vm1590_vm4, %v1978_v11  ;;  %v2103_v4 = vsel %vm1590_vm4, %v1978_v11, 0.0  ;;  %v2173_v1 = vmul.f32 %v1978_v11, %v1978_v11  ;;  %v1343_v5 = vpop.permute.xlu0 %1342 }
 0x2c9   : > { %v2104_v23 = vadd.f32 %v2103_v4, %v2102_v44  ;;  %v1829_v22 = vsel %vm1821_vm12, %v1796_v53, %v1509_v35  ;;  %v1776_v20 = vsel %vm1755_vm10, %v3831_v40, %v1343_v5 }
 0x2ca   : > { %v2206_v46 = vsel %vm1590_vm4, %v2173_v1, 0.0  ;;  %2394 = vmatmul.msk.f32.gmra.mxu0 %vm1854_vm13, %v1829_v22 }
 0x2cb   : > { %v2207_v33 = vadd.f32 %v2206_v46, %v2205_v7 }
 0x2ce   : > { %v4451_v9 = vpop.f32.mrf.mxu1  ;;  %v1357_v41 = vpop.permute.xlu2 %1356 }
 0x2cf   : > { %2076 = vst.msk [vmem:[%s4404_s10 + $0x40] sm:$0xff] %vm1590_vm4, %v4451_v9  ;;  %v1355_v58 = vpop.permute.xlu1 %1354  ;;  %v1783_v49 = vsel %vm1755_vm10, %v4040_v17, %v1357_v41 }
 0x2d0   : > { %v1521_v25 = vpop.permute.xlu0 %1520  ;;  %v1782_v36 = vsel %vm1755_vm10, %v3913_v42, %v1355_v58 }
 0x2d1   : > { %v1835_v31 = vsel %vm1821_vm12, %v1802_v21, %v1521_v25  ;;  %v1815_v28 = vsel %vm1788_vm11, %v1782_v36, %v1451_v14 }
 0x2d2   : > { %2400 = vmatmul.msk.f32.gmra.mxu1 %vm1854_vm13, %v1835_v31 }
 0x2d6   : > { %v4459_v0 = vpop.f32.mrf.mxu1  ;;  %v1453_v57 = vpop.permute.xlu2 %1452 }
 0x2d7   : > { %2077 = vst.msk [vmem:[%s4404_s10 + $0x48] sm:$0xff] %vm1590_vm4, %v4459_v0  ;;  %v1439_v51 = vpop.permute.xlu1 %1438  ;;  %v1816_v29 = vsel %vm1788_vm11, %v1783_v49, %v1453_v57 }
 0x2d8   : > { %v1809_v8 = vsel %vm1788_vm11, %v1776_v20, %v1439_v51  ;;  %v1535_v18 = vpop.permute.xlu0 %1534 }
 0x2d9   : > { %v1842_v43 = vsel %vm1821_vm12, %v1809_v8, %v1535_v18 }
 0x2da   : > { %2407 = vmatmul.msk.f32.gmra.mxu2 %vm1854_vm13, %v1842_v43 }
 0x2de   : > { %v1981_v38 = vpop.f32.mrf.mxu0  ;;  %v1333_v10 = vpop.permute.xlu2 %1332 }
 0x2df   : > { %2071 = vst.msk [vmem:[%s4404_s10 + $0x18] sm:$0xff] %vm1590_vm4, %v1981_v38  ;;  %v2105_v40 = vsel %vm1590_vm4, %v1981_v38, 0.0  ;;  %v2174_v52 = vmul.f32 %v1981_v38, %v1981_v38  ;;  %v1547_v60 = vpop.permute.xlu1 %1546  ;;  %v1771_v11 = vsel %vm1755_vm10, %v3877_v12, %v1333_v10  ;;  %v5238_v10 = vld [vmem:[#allocation117_spill] sm:$0xff] }
 0x2e0   : > { %v2106_v35 = vadd.f32 %v2105_v40, %v2104_v23  ;;  %v1427_v62 = vpop.permute.xlu0 %1426  ;;  %v1848_v13 = vsel %vm1821_vm12, %v1815_v28, %v1547_v60  ;;  %v5236_v40 = vld [vmem:[#allocation75_spill] sm:$0xff] }
 0x2e1   : > { %v2208_v54 = vsel %vm1590_vm4, %v2174_v52, 0.0  ;;  %2413 = vmatmul.msk.f32.gmra.mxu3 %vm1854_vm13, %v1848_v13  ;;  %v1803_v59 = vsel %vm1788_vm11, %v1770_v63, %v1427_v62  ;;  %v5237_v13 = vld [vmem:[#allocation88_spill] sm:$0xff] }
 0x2e2   : > { %v2209_v42 = vadd.f32 %v2208_v54, %v2207_v33 }
 0x2e6   : > { %v1359_v61 = vpop.permute.xlu2 %1358 }
 0x2e7   : > { %v1345_v26 = vpop.permute.xlu1 %1344  ;;  %v1784_v8 = vsel %vm1755_vm10, %v4069_v27, %v1359_v61 }
 0x2e8   : > { %v1523_v39 = vpop.permute.xlu0 %1522  ;;  %v4481_v44 = vpop.f32.mrf.mxu1  ;;  %v1777_v30 = vsel %vm1755_vm10, %v3964_v2, %v1345_v26 }
 0x2e9   : > { %2078 = vst.msk [vmem:[%s4404_s10 + $0x50] sm:$0xff] %vm1590_vm4, %v4481_v44  ;;  %v1836_v19 = vsel %vm1821_vm12, %v1803_v59, %v1523_v39 }
 0x2ea   : > { %2401 = vmatmul.msk.f32.gmra.mxu1 %vm1854_vm13, %v1836_v19 }
 0x2ec   : > { %v4488_v6 = vpop.f32.mrf.mxu2 }
 0x2ed   : > { %2084 = vst.msk [vmem:[%s4404_s10 + $0x80] sm:$0xff] %vm1590_vm4, %v4488_v6 }
 0x2ee   : > { %v1455_v23 = vpop.permute.xlu2 %1454 }
 0x2ef   : > { %v1441_v24 = vpop.permute.xlu1 %1440  ;;  %v1817_v43 = vsel %vm1788_vm11, %v1784_v8, %v1455_v23 }
 0x2f0   : > { %v1810_v34 = vsel %vm1788_vm11, %v1777_v30, %v1441_v24  ;;  %v1537_v37 = vpop.permute.xlu0 %1536 }
 0x2f1   : > { %v1843_v7 = vsel %vm1821_vm12, %v1810_v34, %v1537_v37 }
 0x2f2   : > { %2408 = vmatmul.msk.f32.gmra.mxu2 %vm1854_vm13, %v1843_v7 }
 0x2f6   : > { %v1984_v32 = vpop.f32.mrf.mxu0 }
 0x2f7   : > { %2072 = vst.msk [vmem:[%s4404_s10 + $0x20] sm:$0xff] %vm1590_vm4, %v1984_v32  ;;  %v2107_v3 = vsel %vm1590_vm4, %v1984_v32, 0.0  ;;  %v2175_v47 = vmul.f32 %v1984_v32, %v1984_v32  ;;  %v1549_v2 = vpop.permute.xlu1 %1548 }
 0x2f8   : > { %v2108_v48 = vadd.f32 %v2107_v3, %v2106_v35  ;;  %v1429_v55 = vpop.permute.xlu0 %1428  ;;  %v1849_v14 = vsel %vm1821_vm12, %v1816_v29, %v1549_v2 }
 0x2f9   : > { %v2210_v56 = vsel %vm1590_vm4, %v2175_v47, 0.0  ;;  %2414 = vmatmul.msk.f32.gmra.mxu3 %vm1854_vm13, %v1849_v14  ;;  %v1804_v4 = vsel %vm1788_vm11, %v1771_v11, %v1429_v55 }
 0x2fa   : > { %v2211_v17 = vadd.f32 %v2210_v56, %v2209_v42 }
 0x2ff   : > { %v1347_v53 = vpop.permute.xlu1 %1346 }
 0x300   : > { %v1525_v1 = vpop.permute.xlu0 %1524  ;;  %v1778_v46 = vsel %vm1755_vm10, %v4005_v15, %v1347_v53  ;;  %v1349_v15 = vpop.permute.xlu2 %1348 }
 0x301   : > { %v1837_v5 = vsel %vm1821_vm12, %v1804_v4, %v1525_v1  ;;  %v1779_v52 = vsel %vm1755_vm10, %v5236_v40, %v1349_v15  ;;  %v2179_v4 = vmul.f32 %v4451_v9, %v4451_v9 }
 0x302   : > { %2402 = vmatmul.msk.f32.gmra.mxu1 %vm1854_vm13, %v1837_v5 }
 0x304   : > { %v4512_v22 = vpop.f32.mrf.mxu2 }
 0x305   : > { %2085 = vst.msk [vmem:[%s4404_s10 + $0x88] sm:$0xff] %vm1590_vm4, %v4512_v22 }
 0x307   : > { %v1443_v33 = vpop.permute.xlu1 %1442  ;;  %v1987_v12 = vpop.f32.mrf.mxu0 }
 0x308   : > { %v1811_v45 = vsel %vm1788_vm11, %v1778_v46, %v1443_v33  ;;  %2073 = vst.msk [vmem:[%s4404_s10 + $0x28] sm:$0xff] %vm1590_vm4, %v1987_v12  ;;  %v2109_v58 = vsel %vm1590_vm4, %v1987_v12, 0.0  ;;  %v2176_v25 = vmul.f32 %v1987_v12, %v1987_v12  ;;  %v1539_v21 = vpop.permute.xlu0 %1538  ;;  %v1457_v60 = vpop.permute.xlu2 %1456  ;;  %v2115_v46 = vsel %vm1590_vm4, %v4451_v9, 0.0 }
 0x309   : > { %v2110_v16 = vadd.f32 %v2109_v58, %v2108_v48  ;;  %v1844_v31 = vsel %vm1821_vm12, %v1811_v45, %v1539_v21  ;;  %v2180_v33 = vmul.f32 %v4459_v0, %v4459_v0  ;;  %v2117_v21 = vsel %vm1590_vm4, %v4459_v0, 0.0 }
 0x30a   : > { %v2212_v20 = vsel %vm1590_vm4, %v2176_v25, 0.0  ;;  %2409 = vmatmul.msk.f32.gmra.mxu2 %vm1854_vm13, %v1844_v31  ;;  %v2218_v25 = vsel %vm1590_vm4, %v2179_v4, 0.0 }
 0x30b   : > { %v2213_v51 = vadd.f32 %v2212_v20, %v2211_v17  ;;  %v2220_v9 = vsel %vm1590_vm4, %v2180_v33, 0.0 }
 0x30e   : > { %v4528_v18 = vpop.f32.mrf.mxu1 }
 0x30f   : > { %2079 = vst.msk [vmem:[%s4404_s10 + $0x58] sm:$0xff] %vm1590_vm4, %v4528_v18  ;;  %v1551_v41 = vpop.permute.xlu1 %1550  ;;  %v2182_v15 = vmul.f32 %v4528_v18, %v4528_v18  ;;  %v2121_v0 = vsel %vm1590_vm4, %v4528_v18, 0.0 }
 0x310   : > { %v1361_v36 = vpop.permute.xlu0 %1360  ;;  %v1850_v38 = vsel %vm1821_vm12, %v1817_v43, %v1551_v41  ;;  %v1363_v59 = vpop.permute.xlu2 %1362 }
 0x311   : > { %2415 = vmatmul.msk.f32.gmra.mxu3 %vm1854_vm13, %v1850_v38  ;;  %v1785_v54 = vsel %vm1755_vm10, %v5237_v13, %v1361_v36  ;;  %v1786_v30 = vsel %vm1755_vm10, %v5238_v10, %v1363_v59 }
 0x312   : > { %v1818_v63 = vsel %vm1788_vm11, %v1785_v54, %v1457_v60 }
 0x317   : > { %v1445_v27 = vpop.permute.xlu1 %1444 }
 0x318   : > { %v1812_v28 = vsel %vm1788_vm11, %v1779_v52, %v1445_v27  ;;  %v1541_v35 = vpop.permute.xlu0 %1540  ;;  %v1365_v47 = vpop.permute.xlu2 %1364 }
 0x319   : > { %v1845_v62 = vsel %vm1821_vm12, %v1812_v28, %v1541_v35  ;;  %v1787_v55 = vsel %vm1755_vm10, %v4094_v50, %v1365_v47 }
 0x31a   : > { %2410 = vmatmul.msk.f32.gmra.mxu2 %vm1854_vm13, %v1845_v62 }
 0x31d   : > { %v4543_v42 = vpop.f32.mrf.mxu2 }
 0x31e   : > { %2086 = vst.msk [vmem:[%s4404_s10 + $0x90] sm:$0xff] %vm1590_vm4, %v4543_v42  ;;  %v2189_v4 = vmul.f32 %v4543_v42, %v4543_v42 }
 0x31f   : > { %v1553_v57 = vpop.permute.xlu1 %1552 }
 0x320   : > { %v1851_v26 = vsel %vm1821_vm12, %v1818_v63, %v1553_v57  ;;  %v1459_v39 = vpop.permute.xlu0 %1458 }
 0x321   : > { %2416 = vmatmul.msk.f32.gmra.mxu3 %vm1854_vm13, %v1851_v26  ;;  %v1819_v24 = vsel %vm1788_vm11, %v1786_v30, %v1459_v39 }
 0x324   : > { %v4551_v19 = vpop.f32.mrf.mxu3 }
 0x325   : > { %2092 = vst.msk [vmem:[%s4404_s10 + $0xc0] sm:$0xff] %vm1590_vm4, %v4551_v19 }
 0x327   : > { %v1555_v34 = vpop.permute.xlu1 %1554  ;;  %v1990_v37 = vpop.f32.mrf.mxu0 }
 0x328   : > { %2074 = vst.msk [vmem:[%s4404_s10 + $0x30] sm:$0xff] %vm1590_vm4, %v1990_v37  ;;  %v2111_v7 = vsel %vm1590_vm4, %v1990_v37, 0.0  ;;  %v2177_v49 = vmul.f32 %v1990_v37, %v1990_v37  ;;  %v1852_v32 = vsel %vm1821_vm12, %v1819_v24, %v1555_v34  ;;  %v1461_v48 = vpop.permute.xlu0 %1460 }
 0x329   : > { %v2112_v29 = vadd.f32 %v2111_v7, %v2110_v16  ;;  %2417 = vmatmul.msk.f32.gmra.mxu3 %vm1854_vm13, %v1852_v32  ;;  %v1820_v61 = vsel %vm1788_vm11, %v1787_v55, %v1461_v48  ;;  %v2181_v16 = vmul.f32 %v4481_v44, %v4481_v44  ;;  %v2187_v32 = vmul.f32 %v4488_v6, %v4488_v6 }
 0x32a   : > { %v2214_v3 = vsel %vm1590_vm4, %v2177_v49, 0.0  ;;  %v2131_v48 = vsel %vm1590_vm4, %v4488_v6, 0.0  ;;  %v2188_v55 = vmul.f32 %v4512_v22, %v4512_v22  ;;  %v2135_v6 = vsel %vm1590_vm4, %v4543_v42, 0.0 }
 0x32b   : > { %v2215_v2 = vadd.f32 %v2214_v3, %v2213_v51  ;;  %v2119_v51 = vsel %vm1590_vm4, %v4481_v44, 0.0  ;;  %v2222_v36 = vsel %vm1590_vm4, %v2181_v16, 0.0  ;;  %v2224_v44 = vsel %vm1590_vm4, %v2182_v15, 0.0 }
 0x32e   : > { %v2008_v14 = vpop.f32.mrf.mxu1 }
 0x32f   : > { %2080 = vst.msk [vmem:[%s4404_s10 + $0x60] sm:$0xff] %vm1590_vm4, %v2008_v14  ;;  %v1557_v56 = vpop.permute.xlu1 %1556  ;;  %v2183_v38 = vmul.f32 %v2008_v14, %v2008_v14  ;;  %v2123_v60 = vsel %vm1590_vm4, %v2008_v14, 0.0 }
 0x330   : > { %v1853_v17 = vsel %vm1821_vm12, %v1820_v61, %v1557_v56 }
 0x331   : > { %2418 = vmatmul.msk.f32.gmra.mxu3 %vm1854_vm13, %v1853_v17  ;;  %v2226_v62 = vsel %vm1590_vm4, %v2183_v38, 0.0  ;;  %v2234_v17 = vsel %vm1590_vm4, %v2187_v32, 0.0 }
 0x33d   : > { %v4572_v11 = vpop.f32.mrf.mxu2 }
 0x33e   : > { %2087 = vst.msk [vmem:[%s4404_s10 + $0x98] sm:$0xff] %vm1590_vm4, %v4572_v11 }
 0x344   : > { %v4577_v53 = vpop.f32.mrf.mxu3 }
 0x345   : > { %2093 = vst.msk [vmem:[%s4404_s10 + $0xc8] sm:$0xff] %vm1590_vm4, %v4577_v53 }
 0x347   : > { %v1993_v50 = vpop.f32.mrf.mxu0 }
 0x348   : > { %2075 = vst.msk [vmem:[%s4404_s10 + $0x38] sm:$0xff] %vm1590_vm4, %v1993_v50  ;;  %v2113_v1 = vsel %vm1590_vm4, %v1993_v50, 0.0  ;;  %v2178_v5 = vmul.f32 %v1993_v50, %v1993_v50  ;;  %v2133_v50 = vsel %vm1590_vm4, %v4512_v22, 0.0  ;;  %v2137_v22 = vsel %vm1590_vm4, %v4572_v11, 0.0 }
 0x349   : > { %v2114_v23 = vadd.f32 %v2113_v1, %v2112_v29 }
 0x34a   : > { %v2216_v12 = vsel %vm1590_vm4, %v2178_v5, 0.0 }
 0x34b   : > { %v2116_v45 = vadd.f32 %v2115_v46, %v2114_v23  ;;  %v2217_v58 = vadd.f32 %v2216_v12, %v2215_v2  ;;  %v2236_v23 = vsel %vm1590_vm4, %v2188_v55, 0.0  ;;  %v2190_v46 = vmul.f32 %v4572_v11, %v4572_v11 }
 0x34d   : > { %v2118_v31 = vadd.f32 %v2117_v21, %v2116_v45  ;;  %v2219_v20 = vadd.f32 %v2218_v25, %v2217_v58  ;;  %v2238_v45 = vsel %vm1590_vm4, %v2189_v4, 0.0  ;;  %v2240_v16 = vsel %vm1590_vm4, %v2190_v46, 0.0 }
 0x34f   : > { %v2120_v8 = vadd.f32 %v2119_v51, %v2118_v31  ;;  %v2221_v43 = vadd.f32 %v2220_v9, %v2219_v20  ;;  %v2011_v41 = vpop.f32.mrf.mxu1 }
 0x350   : > { %2081 = vst.msk [vmem:[%s4404_s10 + $0x68] sm:$0xff] %vm1590_vm4, %v2011_v41  ;;  %v2184_v27 = vmul.f32 %v2011_v41, %v2011_v41  ;;  %v2125_v18 = vsel %vm1590_vm4, %v2011_v41, 0.0 }
 0x351   : > { %v2223_v40 = vadd.f32 %v2222_v36, %v2221_v43  ;;  %v2122_v52 = vadd.f32 %v2121_v0, %v2120_v8 }
 0x352   : > { %v2228_v57 = vsel %vm1590_vm4, %v2184_v27, 0.0  ;;  %v2195_v27 = vmul.f32 %v4551_v19, %v4551_v19 }
 0x353   : > { %v2124_v28 = vadd.f32 %v2123_v60, %v2122_v52  ;;  %v2225_v35 = vadd.f32 %v2224_v44, %v2223_v40 }
 0x355   : > { %v2126_v13 = vadd.f32 %v2125_v18, %v2124_v28  ;;  %v2227_v54 = vadd.f32 %v2226_v62, %v2225_v35 }
 0x357   : > { %v2229_v63 = vadd.f32 %v2228_v57, %v2227_v54  ;;  %v2196_v54 = vmul.f32 %v4577_v53, %v4577_v53 }
 0x35d   : > { %v2032_v26 = vpop.f32.mrf.mxu2 }
 0x35e   : > { %2088 = vst.msk [vmem:[%s4404_s10 + $0xa0] sm:$0xff] %vm1590_vm4, %v2032_v26  ;;  %v2191_v58 = vmul.f32 %v2032_v26, %v2032_v26  ;;  %v2139_v31 = vsel %vm1590_vm4, %v2032_v26, 0.0 }
 0x360   : > { %v2242_v9 = vsel %vm1590_vm4, %v2191_v58, 0.0 }
 0x364   : > { %v4614_v59 = vpop.f32.mrf.mxu3 }
 0x365   : > { %2094 = vst.msk [vmem:[%s4404_s10 + $0xd0] sm:$0xff] %vm1590_vm4, %v4614_v59 }
 0x367   : > { %v2014_v39 = vpop.f32.mrf.mxu1 }
 0x368   : > { %2082 = vst.msk [vmem:[%s4404_s10 + $0x70] sm:$0xff] %vm1590_vm4, %v2014_v39  ;;  %v2185_v30 = vmul.f32 %v2014_v39, %v2014_v39  ;;  %v2127_v24 = vsel %vm1590_vm4, %v2014_v39, 0.0  ;;  %v2250_v39 = vsel %vm1590_vm4, %v2195_v27, 0.0 }
 0x369   : > { %v2128_v7 = vadd.f32 %v2127_v24, %v2126_v13  ;;  %v2147_v13 = vsel %vm1590_vm4, %v4551_v19, 0.0  ;;  %v2252_v19 = vsel %vm1590_vm4, %v2196_v54, 0.0 }
 0x36a   : > { %v2230_v37 = vsel %vm1590_vm4, %v2185_v30, 0.0  ;;  %v2197_v30 = vmul.f32 %v4614_v59, %v4614_v59 }
 0x36b   : > { %v2231_v47 = vadd.f32 %v2230_v37, %v2229_v63 }
 0x375   : > { %v2035_v10 = vpop.f32.mrf.mxu2 }
 0x376   : > { %2089 = vst.msk [vmem:[%s4404_s10 + $0xa8] sm:$0xff] %vm1590_vm4, %v2035_v10  ;;  %v2192_v11 = vmul.f32 %v2035_v10, %v2035_v10  ;;  %v2141_v43 = vsel %vm1590_vm4, %v2035_v10, 0.0  ;;  %v2149_v10 = vsel %vm1590_vm4, %v4577_v53, 0.0  ;;  %v2254_v53 = vsel %vm1590_vm4, %v2197_v30, 0.0 }
 0x378   : > { %v2244_v0 = vsel %vm1590_vm4, %v2192_v11, 0.0 }
 0x37c   : > { %v4624_v34 = vpop.f32.mrf.mxu3 }
 0x37d   : > { %2095 = vst.msk [vmem:[%s4404_s10 + $0xd8] sm:$0xff] %vm1590_vm4, %v4624_v34  ;;  %v2198_v32 = vmul.f32 %v4624_v34, %v4624_v34 }
 0x37f   : > { %v2017_v49 = vpop.f32.mrf.mxu1  ;;  %v2256_v55 = vsel %vm1590_vm4, %v2198_v32, 0.0 }
 0x380   : > { %2083 = vst.msk [vmem:[%s4404_s10 + $0x78] sm:$0xff] %vm1590_vm4, %v2017_v49  ;;  %v2129_v29 = vsel %vm1590_vm4, %v2017_v49, 0.0  ;;  %v2186_v3 = vmul.f32 %v2017_v49, %v2017_v49 }
 0x381   : > { %v2130_v2 = vadd.f32 %v2129_v29, %v2128_v7  ;;  %v2151_v7 = vsel %vm1590_vm4, %v4614_v59, 0.0 }
 0x382   : > { %v2232_v14 = vsel %vm1590_vm4, %v2186_v3, 0.0 }
 0x383   : > { %v2132_v61 = vadd.f32 %v2131_v48, %v2130_v2  ;;  %v2233_v56 = vadd.f32 %v2232_v14, %v2231_v47  ;;  %v2153_v47 = vsel %vm1590_vm4, %v4624_v34, 0.0 }
 0x385   : > { %v2134_v1 = vadd.f32 %v2133_v50, %v2132_v61  ;;  %v2235_v5 = vadd.f32 %v2234_v17, %v2233_v56 }
 0x387   : > { %v2136_v33 = vadd.f32 %v2135_v6, %v2134_v1  ;;  %v2237_v12 = vadd.f32 %v2236_v23, %v2235_v5 }
 0x389   : > { %v2239_v25 = vadd.f32 %v2238_v45, %v2237_v12  ;;  %v2138_v21 = vadd.f32 %v2137_v22, %v2136_v33 }
 0x38b   : > { %v2140_v42 = vadd.f32 %v2139_v31, %v2138_v21  ;;  %v2241_v20 = vadd.f32 %v2240_v16, %v2239_v25 }
 0x38d   : > { %v2038_v51 = vpop.f32.mrf.mxu2  ;;  %v2243_v15 = vadd.f32 %v2242_v9, %v2241_v20  ;;  %v2142_v36 = vadd.f32 %v2141_v43, %v2140_v42 }
 0x38e   : > { %2090 = vst.msk [vmem:[%s4404_s10 + $0xb0] sm:$0xff] %vm1590_vm4, %v2038_v51  ;;  %v2193_v41 = vmul.f32 %v2038_v51, %v2038_v51  ;;  %v2143_v38 = vsel %vm1590_vm4, %v2038_v51, 0.0 }
 0x38f   : > { %v2245_v40 = vadd.f32 %v2244_v0, %v2243_v15  ;;  %v2144_v44 = vadd.f32 %v2143_v38, %v2142_v36 }
 0x390   : > { %v2246_v52 = vsel %vm1590_vm4, %v2193_v41, 0.0 }
 0x391   : > { %v2247_v62 = vadd.f32 %v2246_v52, %v2245_v40 }
 0x394   : > { %v2056_v8 = vpop.f32.mrf.mxu3 }
 0x395   : > { %2096 = vst.msk [vmem:[%s4404_s10 + $0xe0] sm:$0xff] %vm1590_vm4, %v2056_v8  ;;  %v2199_v14 = vmul.f32 %v2056_v8, %v2056_v8  ;;  %v2155_v61 = vsel %vm1590_vm4, %v2056_v8, 0.0 }
 0x397   : > { %v2258_v50 = vsel %vm1590_vm4, %v2199_v14, 0.0 }
 0x39d   : > { %v2041_v60 = vpop.f32.mrf.mxu2 }
 0x39e   : > { %2091 = vst.msk [vmem:[%s4404_s10 + $0xb8] sm:$0xff] %vm1590_vm4, %v2041_v60  ;;  %v2145_v28 = vsel %vm1590_vm4, %v2041_v60, 0.0  ;;  %v2194_v35 = vmul.f32 %v2041_v60, %v2041_v60 }
 0x39f   : > { %v2146_v18 = vadd.f32 %v2145_v28, %v2144_v44 }
 0x3a0   : > { %v2248_v57 = vsel %vm1590_vm4, %v2194_v35, 0.0 }
 0x3a1   : > { %v2148_v63 = vadd.f32 %v2147_v13, %v2146_v18  ;;  %v2249_v26 = vadd.f32 %v2248_v57, %v2247_v62 }
 0x3a3   : > { %v2150_v24 = vadd.f32 %v2149_v10, %v2148_v63  ;;  %v2251_v37 = vadd.f32 %v2250_v39, %v2249_v26 }
 0x3a4   : > { %v2059_v49 = vpop.f32.mrf.mxu3 }
 0x3a5   : > { %v2152_v29 = vadd.f32 %v2151_v7, %v2150_v24  ;;  %v2253_v3 = vadd.f32 %v2252_v19, %v2251_v37  ;;  %2097 = vst.msk [vmem:[%s4404_s10 + $0xe8] sm:$0xff] %vm1590_vm4, %v2059_v49  ;;  %v2200_v4 = vmul.f32 %v2059_v49, %v2059_v49  ;;  %v2157_v5 = vsel %vm1590_vm4, %v2059_v49, 0.0 }
 0x3a7   : > { %v2255_v2 = vadd.f32 %v2254_v53, %v2253_v3  ;;  %v2154_v48 = vadd.f32 %v2153_v47, %v2152_v29  ;;  %v2260_v6 = vsel %vm1590_vm4, %v2200_v4, 0.0 }
 0x3a9   : > { %v2257_v59 = vadd.f32 %v2256_v55, %v2255_v2  ;;  %v2156_v56 = vadd.f32 %v2155_v61, %v2154_v48 }
 0x3ab   : > { %v2259_v1 = vadd.f32 %v2258_v50, %v2257_v59  ;;  %v2158_v23 = vadd.f32 %v2157_v5, %v2156_v56 }
 0x3ac   : > { %v2062_v17 = vpop.f32.mrf.mxu3 }
 0x3ad   : > { %2098 = vst.msk [vmem:[%s4404_s10 + $0xf0] sm:$0xff] %vm1590_vm4, %v2062_v17  ;;  %v2201_v34 = vmul.f32 %v2062_v17, %v2062_v17  ;;  %v2159_v46 = vsel %vm1590_vm4, %v2062_v17, 0.0  ;;  %v2261_v33 = vadd.f32 %v2260_v6, %v2259_v1 }
 0x3ae   : > { %v2160_v45 = vadd.f32 %v2159_v46, %v2158_v23 }
 0x3af   : > { %v2262_v12 = vsel %vm1590_vm4, %v2201_v34, 0.0 }
 0x3b0   : > { %v2263_v21 = vadd.f32 %v2262_v12, %v2261_v33 }
 0x3b4   : > { %v2065_v22 = vpop.f32.mrf.mxu3 }
 0x3b5   : > { %2099 = vst.msk [vmem:[%s4404_s10 + $0xf8] sm:$0xff] %vm1590_vm4, %v2065_v22  ;;  %v2161_v58 = vsel %vm1590_vm4, %v2065_v22, 0.0  ;;  %v2202_v25 = vmul.f32 %v2065_v22, %v2065_v22 }
 0x3b6   : > { %v2162_v16 = vadd.f32 %v2161_v58, %v2160_v45 }
 0x3b7   : > { %v2264_v31 = vsel %vm1590_vm4, %v2202_v25, 0.0 }
 0x3b8   : > { %v2163_v42 = vrot.slane %v2162_v16, 4  ;;  %v2265_v20 = vadd.f32 %v2264_v31, %v2263_v21 }
 0x3ba   : > { %v2164_v9 = vadd.f32 %v2163_v42, %v2162_v16  ;;  %v2266_v51 = vrot.slane %v2265_v20, 4 }
 0x3bc   : > { %v2165_v15 = vrot.slane %v2164_v9, 2  ;;  %v2267_v8 = vadd.f32 %v2266_v51, %v2265_v20 }
 0x3be   : > { %v2166_v11 = vadd.f32 %v2165_v15, %v2164_v9  ;;  %v2268_v43 = vrot.slane %v2267_v8, 2 }
 0x3c0   : > { %v2167_v41 = vrot.slane %v2166_v11, 1  ;;  %v2269_v36 = vadd.f32 %v2268_v43, %v2267_v8 }
 0x3c2   : > { %v2168_v0 = vadd.f32 %v2167_v41, %v2166_v11  ;;  %v2270_v38 = vrot.slane %v2269_v36, 1 }
 0x3c4   : > { %2170 = vst.msk [vmem:[%s265_s13] sm:$0x1] %vm2169_vm14, %v2168_v0  ;;  %v2271_v40 = vadd.f32 %v2270_v38, %v2269_v36 }
 0x3c6   : > { %2272 = vst.msk [vmem:[%s268_s16] sm:$0x1] %vm2169_vm14, %v2271_v40 }
 0x3c7 PF: > { %s17_s21 = sadd.s32 1, %s2475_s21  }
 0x3c8   : > { %p14_p4 = scmp.ge.s32.totalorder %s17_s21, 4  }
 0x3ca   :  { %16 = sbr.rel (!%p14_p4) target bundleno = 1 (0x1), region = 90 }

</bundles_post_ra>
